<compile_context>
chip_gen: v7x
topology: tpu7x:2x2x1
jax: 0.10.0
libtpu: 0.0.40
codegen_flags: <defaults>
</compile_context>

<pallas_src>
import math

import numpy as np
import jax
import jax.numpy as jnp
from jax.experimental import pallas as pl
from jax.experimental.pallas import tpu as pltpu


BF16 = jnp.bfloat16


def _mm(a, b):
    # bf16 operands on the MXU, f32 accumulation.
    return jnp.dot(a.astype(BF16), b.astype(BF16), preferred_element_type=jnp.float32)


# ----------------------------------------------------------------------------
# The single fused kernel (processes one batch block of B images per grid step)
# ----------------------------------------------------------------------------
def nnet_fused_kernel(x_ref, a_ref, b1l_ref, qe_ref, qo_ref, hbe_ref, hbo_ref,
                      bmat_ref, b2l_ref, se2_ref, so2_ref, ge_ref, go_ref,
                      w1r_ref, b1row_ref, w2row_ref, b2fc_ref, o_ref):
    B = x_ref.shape[0]                       # batch block size (static)

    # --- conv1 (1->6, k=5) + ReLU as 5 shifted matmuls. ------------------------
    # c1 layout: (B*24, 144) = [b*24 + y, x*6 + oc]
    c1 = _mm(x_ref[:, 0:24, :].reshape(B * 24, 28), a_ref[0])
    for i in range(1, 5):
        c1 = c1 + _mm(x_ref[:, i:i + 24, :].reshape(B * 24, 28), a_ref[i])
    c1 = jnp.maximum(c1 + b1l_ref[...], 0.0)                          # f32 elementwise

    # --- maxpool 2x2 (lane dir via even/odd selection, row dir via block-diag
    #     selection padded to 16 rows per image so later reshapes stay 8-aligned).
    cm1 = jnp.maximum(_mm(c1, qe_ref[...]), _mm(c1, qo_ref[...]))     # (B*24, 72)
    p1 = jnp.maximum(_mm(hbe_ref[...], cm1), _mm(hbo_ref[...], cm1))  # (B*16, 72)
    p1 = p1.reshape(B, 16, 72)                                        # rows 12..15 unused

    # --- conv2 (6->16, k=5) + ReLU as 5 shifted matmuls. -----------------------
    # c2 layout: (B*8, 128) = [b*8 + y, x*16 + oc]
    c2 = _mm(p1[:, 0:8, :].reshape(B * 8, 72), bmat_ref[0])
    for i in range(1, 5):
        c2 = c2 + _mm(p1[:, i:i + 8, :].reshape(B * 8, 72), bmat_ref[i])
    c2 = jnp.maximum(c2 + b2l_ref[...], 0.0)

    # --- maxpool 2x2 -> P: (4*B, 64), row Y*B + b = pooled[b, Y, X*16 + oc] ----
    cm2 = jnp.maximum(_mm(c2, se2_ref[...]), _mm(c2, so2_ref[...]))   # (B*8, 64)
    p2 = jnp.maximum(_mm(ge_ref[...], cm2), _mm(go_ref[...], cm2))    # (4*B, 64)

    # (Dropout2d is identity in eval mode.)

    # --- fc1 (256->64) + ReLU.  CHW flatten folded into W1r; 4 matmuls, M=B. ---
    h = _mm(p2[0:B, :], w1r_ref[0])
    for Y in range(1, 4):
        h = h + _mm(p2[Y * B:(Y + 1) * B, :], w1r_ref[Y])
    h = jnp.maximum(h + b1row_ref[...], 0.0)                          # (B, 64)

    # --- fc2 (64->1): VPU multiply + lane reduction (skips an N=1 MXU pass). ---
    t = jnp.sum(h * w2row_ref[...], axis=-1, keepdims=True) + b2fc_ref[...]   # (B, 1)

    # --- hybrid quantum head: H then RY(t); E[measured bit] = P(|1>) = (1+sin t)/2
    q = 0.5 * (1.0 + jnp.sin(t))                                      # (B, 1) f32
    o_ref[:, 0:1] = q
    o_ref[:, 1:2] = 1.0 - q


CONST_ORDER = ("A", "b1lane", "Qe", "Qo", "HBe", "HBo", "B", "b2lane",
               "Se2", "So2", "Ge", "Go", "W1r", "b1row", "w2row", "b2fc")


def _const_spec(arr):
    zeros = (0,) * arr.ndim
    # Same block every grid step -> DMA'd once, VMEM-resident for the whole call.
    return pl.BlockSpec(arr.shape, lambda b, _z=zeros: _z)


def nnet_forward(x_nchw, consts, b_blk):
    batch = x_nchw.shape[0]
    assert batch % b_blk == 0 and b_blk % 8 == 0, (batch, b_blk)
    x_img = x_nchw.reshape(batch, 28, 28).astype(jnp.float32)
    const_args = tuple(consts[k] for k in CONST_ORDER)

    in_specs = [pl.BlockSpec((b_blk, 28, 28), lambda b: (b, 0, 0))]
    in_specs += [_const_spec(c) for c in const_args]

    return pl.pallas_call(
        nnet_fused_kernel,
        out_shape=jax.ShapeDtypeStruct((batch, 2), jnp.float32),
        grid=(batch // b_blk,),
        in_specs=in_specs,
        out_specs=pl.BlockSpec((b_blk, 2), lambda b: (b, 0)),
        compiler_params=pltpu.CompilerParams(
            dimension_semantics=("parallel",)),
    )(x_img, *const_args)


# ----------------------------------------------------------------------------
# One-time host-side weight preparation (all layout/index math lives here).
# ----------------------------------------------------------------------------
def prepare_constants(params, b_blk):
    w1 = np.asarray(params["conv1_w"], np.float32)    # (6, 1, 5, 5)
    b1 = np.asarray(params["conv1_b"], np.float32)    # (6,)
    w2 = np.asarray(params["conv2_w"], np.float32)    # (16, 6, 5, 5)
    b2 = np.asarray(params["conv2_b"], np.float32)    # (16,)
    fw1 = np.asarray(params["fc1_w"], np.float32)     # (64, 256)
    fb1 = np.asarray(params["fc1_b"], np.float32)     # (64,)
    fw2 = np.asarray(params["fc2_w"], np.float32)     # (1, 64)
    fb2 = np.asarray(params["fc2_b"], np.float32)     # (1,)

    # conv1 as 5 shifted matmuls: A[i, x+j, x*6+oc] = w1[oc, 0, i, j]
    A = np.zeros((5, 28, 24 * 6), np.float32)
    for i in range(5):
        for x in range(24):
            for j in range(5):
                A[i, x + j, x * 6:x * 6 + 6] = w1[:, 0, i, j]
    b1lane = np.tile(b1, 24)[None, :]                                  # (1, 144)

    # pool1 lane-direction even/odd selections (144 -> 72).
    Qe = np.zeros((144, 72), np.float32)
    Qo = np.zeros((144, 72), np.float32)
    for X in range(12):
        for ic in range(6):
            Qe[(2 * X) * 6 + ic, X * 6 + ic] = 1.0
            Qo[(2 * X + 1) * 6 + ic, X * 6 + ic] = 1.0

    # pool1 row-direction block-diagonal selections, padded to 16 rows / image.
    HBe = np.zeros((b_blk * 16, b_blk * 24), np.float32)
    HBo = np.zeros((b_blk * 16, b_blk * 24), np.float32)
    for b in range(b_blk):
        for Y in range(12):
            HBe[b * 16 + Y, b * 24 + 2 * Y] = 1.0
            HBo[b * 16 + Y, b * 24 + 2 * Y + 1] = 1.0

    # conv2 as 5 shifted matmuls: Bm[i, (x+j)*6+ic, x*16+oc] = w2[oc, ic, i, j]
    Bm = np.zeros((5, 72, 128), np.float32)
    for i in range(5):
        for x in range(8):
            for j in range(5):
                for ic in range(6):
                    Bm[i, (x + j) * 6 + ic, x * 16:x * 16 + 16] = w2[:, ic, i, j]
    b2lane = np.tile(b2, 8)[None, :]                                   # (1, 128)

    # pool2 lane-direction selections (128 -> 64).
    Se2 = np.zeros((128, 64), np.float32)
    So2 = np.zeros((128, 64), np.float32)
    for X in range(4):
        for oc in range(16):
            Se2[(2 * X) * 16 + oc, X * 16 + oc] = 1.0
            So2[(2 * X + 1) * 16 + oc, X * 16 + oc] = 1.0

    # pool2 row-direction + fc1-row regrouping:  P[Y*b + b_i, :] = pooled[b_i, Y, :]
    Ge = np.zeros((4 * b_blk, b_blk * 8), np.float32)
    Go = np.zeros((4 * b_blk, b_blk * 8), np.float32)
    for Y in range(4):
        for b in range(b_blk):
            Ge[Y * b_blk + b, b * 8 + 2 * Y] = 1.0
            Go[Y * b_blk + b, b * 8 + 2 * Y + 1] = 1.0

    # fc1 re-laid out to consume pooled rows [X*16+oc] directly; torch's CHW flatten
    # (index oc*16 + Y*4 + X) is folded into the weight permutation.
    W1r = np.zeros((4, 64, 64), np.float32)
    for Y in range(4):
        for X in range(4):
            for oc in range(16):
                W1r[Y, X * 16 + oc, :] = fw1[:, oc * 16 + Y * 4 + X]
    b1row = fb1[None, :]                                               # (1, 64)
    w2row = fw2.copy()                                                 # (1, 64)
    b2fc = fb2.reshape(1, 1)

    vals = dict(A=A, b1lane=b1lane, Qe=Qe, Qo=Qo, HBe=HBe, HBo=HBo, B=Bm, b2lane=b2lane,
                Se2=Se2, So2=So2, Ge=Ge, Go=Go, W1r=W1r, b1row=b1row,
                w2row=w2row, b2fc=b2fc)
    bf16_keys = {"A", "Qe", "Qo", "HBe", "HBo", "B", "Se2", "So2", "Ge", "Go", "W1r"}
    return {k: jnp.asarray(v, dtype=(BF16 if k in bf16_keys else jnp.float32))
            for k, v in vals.items()}


# ----------------------------------------------------------------------------
# Deterministic parameter init (PyTorch-default-like uniform)
# ----------------------------------------------------------------------------
def init_params(key):
    ks = jax.random.split(key, 8)

    def u(k, shape, fan_in):
        bound = 1.0 / math.sqrt(fan_in)
        return jax.random.uniform(k, shape, jnp.float32, -bound, bound)

    return dict(
        conv1_w=u(ks[0], (6, 1, 5, 5), 1 * 25),
        conv1_b=u(ks[1], (6,), 1 * 25),
        conv2_w=u(ks[2], (16, 6, 5, 5), 6 * 25),
        conv2_b=u(ks[3], (16,), 6 * 25),
        fc1_w=u(ks[4], (64, 256), 256),
        fc1_b=u(ks[5], (64,), 256),
        fc2_w=u(ks[6], (1, 64), 64),
        fc2_b=u(ks[7], (1,), 64),
    )


# ----------------------------------------------------------------------------
# Plain-JAX reference (for numerical sanity check only)
# ----------------------------------------------------------------------------
def reference_forward(x_nchw, params):
    y = jax.lax.conv_general_dilated(
        x_nchw, params["conv1_w"], window_strides=(1, 1), padding="VALID",
        dimension_numbers=("NCHW", "OIHW", "NCHW"))
    y = jnp.maximum(y + params["conv1_b"].reshape(1, -1, 1, 1), 0.0)
    y = jax.lax.reduce_window(y, -jnp.inf, jax.lax.max,
                              (1, 1, 2, 2), (1, 1, 2, 2), "VALID")
    y = jax.lax.conv_general_dilated(
        y, params["conv2_w"], window_strides=(1, 1), padding="VALID",
        dimension_numbers=("NCHW", "OIHW", "NCHW"))
    y = jnp.maximum(y + params["conv2_b"].reshape(1, -1, 1, 1), 0.0)
    y = jax.lax.reduce_window(y, -jnp.inf, jax.lax.max,
                              (1, 1, 2, 2), (1, 1, 2, 2), "VALID")
    flat = y.reshape(y.shape[0], -1)
    h = jnp.maximum(flat @ params["fc1_w"].T + params["fc1_b"], 0.0)
    t = h @ params["fc2_w"].T + params["fc2_b"]
    q = 0.5 * (1.0 + jnp.sin(t))
    return jnp.concatenate([q, 1.0 - q], axis=-1)


if __name__ == "__main__":
    key = jax.random.PRNGKey(0)
    k_in, k_par = jax.random.split(key)

    params = init_params(k_par)
    B_BLK = 16                 # conv1 M = 24*16 = 384 >= 256 -> fills v6e/v7x MXU
    BATCH = 32                 # grid = (2,), "parallel" -> one block per v7x TensorCore
    consts = prepare_constants(params, B_BLK)
    x = jax.random.normal(k_in, (BATCH, 1, 28, 28), jnp.float32)

    fwd = jax.jit(lambda xx: nnet_forward(xx, consts, B_BLK))
    out = jax.block_until_ready(fwd(x))

    ref = reference_forward(x, params)

    assert out.shape == (BATCH, 2), out.shape
    assert bool(jnp.all(jnp.isfinite(out)))
    # outputs are (p, 1 - p)
    assert float(jnp.max(jnp.abs(out[:, 0] + out[:, 1] - 1.0))) < 1e-5
    # bf16 weights / bf16 MXU operands vs. the f32 XLA reference
    assert float(jnp.max(jnp.abs(out - ref))) < 5e-2, (out, ref)
    print("KERNEL_OK")
</pallas_src>

<mosaic_0001>
module attributes {stable_mosaic.version = 11 : i64} {
  func.func @nnet_fused_kernel(%arg0: i32, %arg1: memref<16x28x28xf32, #tpu.memory_space<vmem>>, %arg2: memref<5x28x144xbf16, #tpu.memory_space<vmem>>, %arg3: memref<1x144xf32, #tpu.memory_space<vmem>>, %arg4: memref<144x72xbf16, #tpu.memory_space<vmem>>, %arg5: memref<144x72xbf16, #tpu.memory_space<vmem>>, %arg6: memref<256x384xbf16, #tpu.memory_space<vmem>>, %arg7: memref<256x384xbf16, #tpu.memory_space<vmem>>, %arg8: memref<5x72x128xbf16, #tpu.memory_space<vmem>>, %arg9: memref<1x128xf32, #tpu.memory_space<vmem>>, %arg10: memref<128x64xbf16, #tpu.memory_space<vmem>>, %arg11: memref<128x64xbf16, #tpu.memory_space<vmem>>, %arg12: memref<64x128xbf16, #tpu.memory_space<vmem>>, %arg13: memref<64x128xbf16, #tpu.memory_space<vmem>>, %arg14: memref<4x64x64xbf16, #tpu.memory_space<vmem>>, %arg15: memref<1x64xf32, #tpu.memory_space<vmem>>, %arg16: memref<1x64xf32, #tpu.memory_space<vmem>>, %arg17: memref<1x1xf32, #tpu.memory_space<vmem>>, %arg18: memref<16x2xf32, #tpu.memory_space<vmem>>) attributes {dimension_semantics = [#tpu.dimension_semantics<parallel>], iteration_bounds = array<i64: 2>, scalar_prefetch = 0 : i64, scratch_operands = 0 : i64, tpu.core_type = #tpu.core_type<tc>, window_params = [{transform_indices = @transform_0, window_bounds = array<i64: 16, 28, 28>}, {pipeline_mode = #tpu.pipeline_mode<synchronous>, transform_indices = @transform_1, window_bounds = array<i64: 5, 28, 144>}, {pipeline_mode = #tpu.pipeline_mode<synchronous>, transform_indices = @transform_2, window_bounds = array<i64: 1, 144>}, {pipeline_mode = #tpu.pipeline_mode<synchronous>, transform_indices = @transform_3, window_bounds = array<i64: 144, 72>}, {pipeline_mode = #tpu.pipeline_mode<synchronous>, transform_indices = @transform_4, window_bounds = array<i64: 144, 72>}, {pipeline_mode = #tpu.pipeline_mode<synchronous>, transform_indices = @transform_5, window_bounds = array<i64: 256, 384>}, {pipeline_mode = #tpu.pipeline_mode<synchronous>, transform_indices = @transform_6, window_bounds = array<i64: 256, 384>}, {pipeline_mode = #tpu.pipeline_mode<synchronous>, transform_indices = @transform_7, window_bounds = array<i64: 5, 72, 128>}, {pipeline_mode = #tpu.pipeline_mode<synchronous>, transform_indices = @transform_8, window_bounds = array<i64: 1, 128>}, {pipeline_mode = #tpu.pipeline_mode<synchronous>, transform_indices = @transform_9, window_bounds = array<i64: 128, 64>}, {pipeline_mode = #tpu.pipeline_mode<synchronous>, transform_indices = @transform_10, window_bounds = array<i64: 128, 64>}, {pipeline_mode = #tpu.pipeline_mode<synchronous>, transform_indices = @transform_11, window_bounds = array<i64: 64, 128>}, {pipeline_mode = #tpu.pipeline_mode<synchronous>, transform_indices = @transform_12, window_bounds = array<i64: 64, 128>}, {pipeline_mode = #tpu.pipeline_mode<synchronous>, transform_indices = @transform_13, window_bounds = array<i64: 4, 64, 64>}, {pipeline_mode = #tpu.pipeline_mode<synchronous>, transform_indices = @transform_14, window_bounds = array<i64: 1, 64>}, {pipeline_mode = #tpu.pipeline_mode<synchronous>, transform_indices = @transform_15, window_bounds = array<i64: 1, 64>}, {pipeline_mode = #tpu.pipeline_mode<synchronous>, transform_indices = @transform_16, window_bounds = array<i64: 1, 1>}, {transform_indices = @transform_17, window_bounds = array<i64: 16, 2>}]} {
    %c0 = arith.constant 0 : index
    %c0_0 = arith.constant 0 : index
    %c0_1 = arith.constant 0 : index
    %0 = vector.load %arg1[%c0, %c0_0, %c0_1] : memref<16x28x28xf32, #tpu.memory_space<vmem>>, vector<16x24x28xf32>
    %1 = vector.shape_cast %0 : vector<16x24x28xf32> to vector<384x28xf32>
    %c0_2 = arith.constant 0 : index
    %c0_3 = arith.constant 0 : index
    %c0_4 = arith.constant 0 : index
    %2 = vector.load %arg2[%c0_2, %c0_3, %c0_4] : memref<5x28x144xbf16, #tpu.memory_space<vmem>>, vector<1x28x144xbf16>
    %3 = vector.shape_cast %2 : vector<1x28x144xbf16> to vector<28x144xbf16>
    %4 = arith.truncf %1 : vector<384x28xf32> to vector<384x28xbf16>
    %cst = arith.constant dense<0.000000e+00> : vector<384x144xf32>
    %5 = tpu.matmul %4, %3, %cst {dimension_numbers = #tpu.dot_dimension_numbers<[1], [0], [0], [1], [0, 0, 1, 1], [], []>} : vector<384x28xbf16>, vector<28x144xbf16>, vector<384x144xf32> -> vector<384x144xf32>
    %c0_5 = arith.constant 0 : index
    %c1 = arith.constant 1 : index
    %c0_6 = arith.constant 0 : index
    %6 = vector.load %arg1[%c0_5, %c1, %c0_6] : memref<16x28x28xf32, #tpu.memory_space<vmem>>, vector<16x24x28xf32>
    %7 = vector.shape_cast %6 : vector<16x24x28xf32> to vector<384x28xf32>
    %c1_7 = arith.constant 1 : index
    %c0_8 = arith.constant 0 : index
    %c0_9 = arith.constant 0 : index
    %8 = vector.load %arg2[%c1_7, %c0_8, %c0_9] : memref<5x28x144xbf16, #tpu.memory_space<vmem>>, vector<1x28x144xbf16>
    %9 = vector.shape_cast %8 : vector<1x28x144xbf16> to vector<28x144xbf16>
    %10 = arith.truncf %7 : vector<384x28xf32> to vector<384x28xbf16>
    %cst_10 = arith.constant dense<0.000000e+00> : vector<384x144xf32>
    %11 = tpu.matmul %10, %9, %cst_10 {dimension_numbers = #tpu.dot_dimension_numbers<[1], [0], [0], [1], [0, 0, 1, 1], [], []>} : vector<384x28xbf16>, vector<28x144xbf16>, vector<384x144xf32> -> vector<384x144xf32>
    %12 = arith.addf %5, %11 : vector<384x144xf32>
    %c0_11 = arith.constant 0 : index
    %c2 = arith.constant 2 : index
    %c0_12 = arith.constant 0 : index
    %13 = vector.load %arg1[%c0_11, %c2, %c0_12] : memref<16x28x28xf32, #tpu.memory_space<vmem>>, vector<16x24x28xf32>
    %14 = vector.shape_cast %13 : vector<16x24x28xf32> to vector<384x28xf32>
    %c2_13 = arith.constant 2 : index
    %c0_14 = arith.constant 0 : index
    %c0_15 = arith.constant 0 : index
    %15 = vector.load %arg2[%c2_13, %c0_14, %c0_15] : memref<5x28x144xbf16, #tpu.memory_space<vmem>>, vector<1x28x144xbf16>
    %16 = vector.shape_cast %15 : vector<1x28x144xbf16> to vector<28x144xbf16>
    %17 = arith.truncf %14 : vector<384x28xf32> to vector<384x28xbf16>
    %cst_16 = arith.constant dense<0.000000e+00> : vector<384x144xf32>
    %18 = tpu.matmul %17, %16, %cst_16 {dimension_numbers = #tpu.dot_dimension_numbers<[1], [0], [0], [1], [0, 0, 1, 1], [], []>} : vector<384x28xbf16>, vector<28x144xbf16>, vector<384x144xf32> -> vector<384x144xf32>
    %19 = arith.addf %12, %18 : vector<384x144xf32>
    %c0_17 = arith.constant 0 : index
    %c3 = arith.constant 3 : index
    %c0_18 = arith.constant 0 : index
    %20 = vector.load %arg1[%c0_17, %c3, %c0_18] : memref<16x28x28xf32, #tpu.memory_space<vmem>>, vector<16x24x28xf32>
    %21 = vector.shape_cast %20 : vector<16x24x28xf32> to vector<384x28xf32>
    %c3_19 = arith.constant 3 : index
    %c0_20 = arith.constant 0 : index
    %c0_21 = arith.constant 0 : index
    %22 = vector.load %arg2[%c3_19, %c0_20, %c0_21] : memref<5x28x144xbf16, #tpu.memory_space<vmem>>, vector<1x28x144xbf16>
    %23 = vector.shape_cast %22 : vector<1x28x144xbf16> to vector<28x144xbf16>
    %24 = arith.truncf %21 : vector<384x28xf32> to vector<384x28xbf16>
    %cst_22 = arith.constant dense<0.000000e+00> : vector<384x144xf32>
    %25 = tpu.matmul %24, %23, %cst_22 {dimension_numbers = #tpu.dot_dimension_numbers<[1], [0], [0], [1], [0, 0, 1, 1], [], []>} : vector<384x28xbf16>, vector<28x144xbf16>, vector<384x144xf32> -> vector<384x144xf32>
    %26 = arith.addf %19, %25 : vector<384x144xf32>
    %c0_23 = arith.constant 0 : index
    %c4 = arith.constant 4 : index
    %c0_24 = arith.constant 0 : index
    %27 = vector.load %arg1[%c0_23, %c4, %c0_24] : memref<16x28x28xf32, #tpu.memory_space<vmem>>, vector<16x24x28xf32>
    %28 = vector.shape_cast %27 : vector<16x24x28xf32> to vector<384x28xf32>
    %c4_25 = arith.constant 4 : index
    %c0_26 = arith.constant 0 : index
    %c0_27 = arith.constant 0 : index
    %29 = vector.load %arg2[%c4_25, %c0_26, %c0_27] : memref<5x28x144xbf16, #tpu.memory_space<vmem>>, vector<1x28x144xbf16>
    %30 = vector.shape_cast %29 : vector<1x28x144xbf16> to vector<28x144xbf16>
    %31 = arith.truncf %28 : vector<384x28xf32> to vector<384x28xbf16>
    %cst_28 = arith.constant dense<0.000000e+00> : vector<384x144xf32>
    %32 = tpu.matmul %31, %30, %cst_28 {dimension_numbers = #tpu.dot_dimension_numbers<[1], [0], [0], [1], [0, 0, 1, 1], [], []>} : vector<384x28xbf16>, vector<28x144xbf16>, vector<384x144xf32> -> vector<384x144xf32>
    %33 = arith.addf %26, %32 : vector<384x144xf32>
    %c0_29 = arith.constant 0 : index
    %c0_30 = arith.constant 0 : index
    %34 = vector.load %arg3[%c0_29, %c0_30] : memref<1x144xf32, #tpu.memory_space<vmem>>, vector<1x144xf32>
    %35 = vector.broadcast %34 : vector<1x144xf32> to vector<384x144xf32>
    %36 = arith.addf %33, %35 : vector<384x144xf32>
    %cst_31 = arith.constant 0.000000e+00 : f32
    %37 = vector.broadcast %cst_31 : f32 to vector<384x144xf32>
    %38 = arith.maximumf %36, %37 : vector<384x144xf32>
    %c0_32 = arith.constant 0 : index
    %c0_33 = arith.constant 0 : index
    %39 = vector.load %arg4[%c0_32, %c0_33] : memref<144x72xbf16, #tpu.memory_space<vmem>>, vector<144x72xbf16>
    %40 = arith.truncf %38 : vector<384x144xf32> to vector<384x144xbf16>
    %cst_34 = arith.constant dense<0.000000e+00> : vector<384x72xf32>
    %41 = tpu.matmul %40, %39, %cst_34 {dimension_numbers = #tpu.dot_dimension_numbers<[1], [0], [0], [1], [0, 0, 1, 1], [], []>} : vector<384x144xbf16>, vector<144x72xbf16>, vector<384x72xf32> -> vector<384x72xf32>
    %c0_35 = arith.constant 0 : index
    %c0_36 = arith.constant 0 : index
    %42 = vector.load %arg5[%c0_35, %c0_36] : memref<144x72xbf16, #tpu.memory_space<vmem>>, vector<144x72xbf16>
    %43 = arith.truncf %38 : vector<384x144xf32> to vector<384x144xbf16>
    %cst_37 = arith.constant dense<0.000000e+00> : vector<384x72xf32>
    %44 = tpu.matmul %43, %42, %cst_37 {dimension_numbers = #tpu.dot_dimension_numbers<[1], [0], [0], [1], [0, 0, 1, 1], [], []>} : vector<384x144xbf16>, vector<144x72xbf16>, vector<384x72xf32> -> vector<384x72xf32>
    %45 = arith.maximumf %41, %44 : vector<384x72xf32>
    %c0_38 = arith.constant 0 : index
    %c0_39 = arith.constant 0 : index
    %46 = vector.load %arg6[%c0_38, %c0_39] : memref<256x384xbf16, #tpu.memory_space<vmem>>, vector<256x384xbf16>
    %47 = arith.truncf %45 : vector<384x72xf32> to vector<384x72xbf16>
    %cst_40 = arith.constant dense<0.000000e+00> : vector<256x72xf32>
    %48 = tpu.matmul %46, %47, %cst_40 {dimension_numbers = #tpu.dot_dimension_numbers<[1], [0], [0], [1], [0, 0, 1, 1], [], []>} : vector<256x384xbf16>, vector<384x72xbf16>, vector<256x72xf32> -> vector<256x72xf32>
    %c0_41 = arith.constant 0 : index
    %c0_42 = arith.constant 0 : index
    %49 = vector.load %arg7[%c0_41, %c0_42] : memref<256x384xbf16, #tpu.memory_space<vmem>>, vector<256x384xbf16>
    %50 = arith.truncf %45 : vector<384x72xf32> to vector<384x72xbf16>
    %cst_43 = arith.constant dense<0.000000e+00> : vector<256x72xf32>
    %51 = tpu.matmul %49, %50, %cst_43 {dimension_numbers = #tpu.dot_dimension_numbers<[1], [0], [0], [1], [0, 0, 1, 1], [], []>} : vector<256x384xbf16>, vector<384x72xbf16>, vector<256x72xf32> -> vector<256x72xf32>
    %52 = arith.maximumf %48, %51 : vector<256x72xf32>
    %53 = vector.shape_cast %52 : vector<256x72xf32> to vector<16x16x72xf32>
    %54 = vector.extract_strided_slice %53 {offsets = [0, 0, 0], sizes = [16, 8, 72], strides = [1, 1, 1]} : vector<16x16x72xf32> to vector<16x8x72xf32>
    %55 = vector.shape_cast %54 : vector<16x8x72xf32> to vector<128x72xf32>
    %c0_44 = arith.constant 0 : index
    %c0_45 = arith.constant 0 : index
    %c0_46 = arith.constant 0 : index
    %56 = vector.load %arg8[%c0_44, %c0_45, %c0_46] : memref<5x72x128xbf16, #tpu.memory_space<vmem>>, vector<1x72x128xbf16>
    %57 = vector.shape_cast %56 : vector<1x72x128xbf16> to vector<72x128xbf16>
    %58 = arith.truncf %55 : vector<128x72xf32> to vector<128x72xbf16>
    %cst_47 = arith.constant dense<0.000000e+00> : vector<128x128xf32>
    %59 = tpu.matmul %58, %57, %cst_47 {dimension_numbers = #tpu.dot_dimension_numbers<[1], [0], [0], [1], [0, 0, 1, 1], [], []>} : vector<128x72xbf16>, vector<72x128xbf16>, vector<128x128xf32> -> vector<128x128xf32>
    %60 = vector.extract_strided_slice %53 {offsets = [0, 1, 0], sizes = [16, 8, 72], strides = [1, 1, 1]} : vector<16x16x72xf32> to vector<16x8x72xf32>
    %61 = vector.shape_cast %60 : vector<16x8x72xf32> to vector<128x72xf32>
    %c1_48 = arith.constant 1 : index
    %c0_49 = arith.constant 0 : index
    %c0_50 = arith.constant 0 : index
    %62 = vector.load %arg8[%c1_48, %c0_49, %c0_50] : memref<5x72x128xbf16, #tpu.memory_space<vmem>>, vector<1x72x128xbf16>
    %63 = vector.shape_cast %62 : vector<1x72x128xbf16> to vector<72x128xbf16>
    %64 = arith.truncf %61 : vector<128x72xf32> to vector<128x72xbf16>
    %cst_51 = arith.constant dense<0.000000e+00> : vector<128x128xf32>
    %65 = tpu.matmul %64, %63, %cst_51 {dimension_numbers = #tpu.dot_dimension_numbers<[1], [0], [0], [1], [0, 0, 1, 1], [], []>} : vector<128x72xbf16>, vector<72x128xbf16>, vector<128x128xf32> -> vector<128x128xf32>
    %66 = arith.addf %59, %65 : vector<128x128xf32>
    %67 = vector.extract_strided_slice %53 {offsets = [0, 2, 0], sizes = [16, 8, 72], strides = [1, 1, 1]} : vector<16x16x72xf32> to vector<16x8x72xf32>
    %68 = vector.shape_cast %67 : vector<16x8x72xf32> to vector<128x72xf32>
    %c2_52 = arith.constant 2 : index
    %c0_53 = arith.constant 0 : index
    %c0_54 = arith.constant 0 : index
    %69 = vector.load %arg8[%c2_52, %c0_53, %c0_54] : memref<5x72x128xbf16, #tpu.memory_space<vmem>>, vector<1x72x128xbf16>
    %70 = vector.shape_cast %69 : vector<1x72x128xbf16> to vector<72x128xbf16>
    %71 = arith.truncf %68 : vector<128x72xf32> to vector<128x72xbf16>
    %cst_55 = arith.constant dense<0.000000e+00> : vector<128x128xf32>
    %72 = tpu.matmul %71, %70, %cst_55 {dimension_numbers = #tpu.dot_dimension_numbers<[1], [0], [0], [1], [0, 0, 1, 1], [], []>} : vector<128x72xbf16>, vector<72x128xbf16>, vector<128x128xf32> -> vector<128x128xf32>
    %73 = arith.addf %66, %72 : vector<128x128xf32>
    %74 = vector.extract_strided_slice %53 {offsets = [0, 3, 0], sizes = [16, 8, 72], strides = [1, 1, 1]} : vector<16x16x72xf32> to vector<16x8x72xf32>
    %75 = vector.shape_cast %74 : vector<16x8x72xf32> to vector<128x72xf32>
    %c3_56 = arith.constant 3 : index
    %c0_57 = arith.constant 0 : index
    %c0_58 = arith.constant 0 : index
    %76 = vector.load %arg8[%c3_56, %c0_57, %c0_58] : memref<5x72x128xbf16, #tpu.memory_space<vmem>>, vector<1x72x128xbf16>
    %77 = vector.shape_cast %76 : vector<1x72x128xbf16> to vector<72x128xbf16>
    %78 = arith.truncf %75 : vector<128x72xf32> to vector<128x72xbf16>
    %cst_59 = arith.constant dense<0.000000e+00> : vector<128x128xf32>
    %79 = tpu.matmul %78, %77, %cst_59 {dimension_numbers = #tpu.dot_dimension_numbers<[1], [0], [0], [1], [0, 0, 1, 1], [], []>} : vector<128x72xbf16>, vector<72x128xbf16>, vector<128x128xf32> -> vector<128x128xf32>
    %80 = arith.addf %73, %79 : vector<128x128xf32>
    %81 = vector.extract_strided_slice %53 {offsets = [0, 4, 0], sizes = [16, 8, 72], strides = [1, 1, 1]} : vector<16x16x72xf32> to vector<16x8x72xf32>
    %82 = vector.shape_cast %81 : vector<16x8x72xf32> to vector<128x72xf32>
    %c4_60 = arith.constant 4 : index
    %c0_61 = arith.constant 0 : index
    %c0_62 = arith.constant 0 : index
    %83 = vector.load %arg8[%c4_60, %c0_61, %c0_62] : memref<5x72x128xbf16, #tpu.memory_space<vmem>>, vector<1x72x128xbf16>
    %84 = vector.shape_cast %83 : vector<1x72x128xbf16> to vector<72x128xbf16>
    %85 = arith.truncf %82 : vector<128x72xf32> to vector<128x72xbf16>
    %cst_63 = arith.constant dense<0.000000e+00> : vector<128x128xf32>
    %86 = tpu.matmul %85, %84, %cst_63 {dimension_numbers = #tpu.dot_dimension_numbers<[1], [0], [0], [1], [0, 0, 1, 1], [], []>} : vector<128x72xbf16>, vector<72x128xbf16>, vector<128x128xf32> -> vector<128x128xf32>
    %87 = arith.addf %80, %86 : vector<128x128xf32>
    %c0_64 = arith.constant 0 : index
    %c0_65 = arith.constant 0 : index
    %88 = vector.load %arg9[%c0_64, %c0_65] : memref<1x128xf32, #tpu.memory_space<vmem>>, vector<1x128xf32>
    %89 = vector.broadcast %88 : vector<1x128xf32> to vector<128x128xf32>
    %90 = arith.addf %87, %89 : vector<128x128xf32>
    %cst_66 = arith.constant 0.000000e+00 : f32
    %91 = vector.broadcast %cst_66 : f32 to vector<128x128xf32>
    %92 = arith.maximumf %90, %91 : vector<128x128xf32>
    %c0_67 = arith.constant 0 : index
    %c0_68 = arith.constant 0 : index
    %93 = vector.load %arg10[%c0_67, %c0_68] : memref<128x64xbf16, #tpu.memory_space<vmem>>, vector<128x64xbf16>
    %94 = arith.truncf %92 : vector<128x128xf32> to vector<128x128xbf16>
    %cst_69 = arith.constant dense<0.000000e+00> : vector<128x64xf32>
    %95 = tpu.matmul %94, %93, %cst_69 {dimension_numbers = #tpu.dot_dimension_numbers<[1], [0], [0], [1], [0, 0, 1, 1], [], []>} : vector<128x128xbf16>, vector<128x64xbf16>, vector<128x64xf32> -> vector<128x64xf32>
    %c0_70 = arith.constant 0 : index
    %c0_71 = arith.constant 0 : index
    %96 = vector.load %arg11[%c0_70, %c0_71] : memref<128x64xbf16, #tpu.memory_space<vmem>>, vector<128x64xbf16>
    %97 = arith.truncf %92 : vector<128x128xf32> to vector<128x128xbf16>
    %cst_72 = arith.constant dense<0.000000e+00> : vector<128x64xf32>
    %98 = tpu.matmul %97, %96, %cst_72 {dimension_numbers = #tpu.dot_dimension_numbers<[1], [0], [0], [1], [0, 0, 1, 1], [], []>} : vector<128x128xbf16>, vector<128x64xbf16>, vector<128x64xf32> -> vector<128x64xf32>
    %99 = arith.maximumf %95, %98 : vector<128x64xf32>
    %c0_73 = arith.constant 0 : index
    %c0_74 = arith.constant 0 : index
    %100 = vector.load %arg12[%c0_73, %c0_74] : memref<64x128xbf16, #tpu.memory_space<vmem>>, vector<64x128xbf16>
    %101 = arith.truncf %99 : vector<128x64xf32> to vector<128x64xbf16>
    %cst_75 = arith.constant dense<0.000000e+00> : vector<64x64xf32>
    %102 = tpu.matmul %100, %101, %cst_75 {dimension_numbers = #tpu.dot_dimension_numbers<[1], [0], [0], [1], [0, 0, 1, 1], [], []>} : vector<64x128xbf16>, vector<128x64xbf16>, vector<64x64xf32> -> vector<64x64xf32>
    %c0_76 = arith.constant 0 : index
    %c0_77 = arith.constant 0 : index
    %103 = vector.load %arg13[%c0_76, %c0_77] : memref<64x128xbf16, #tpu.memory_space<vmem>>, vector<64x128xbf16>
    %104 = arith.truncf %99 : vector<128x64xf32> to vector<128x64xbf16>
    %cst_78 = arith.constant dense<0.000000e+00> : vector<64x64xf32>
    %105 = tpu.matmul %103, %104, %cst_78 {dimension_numbers = #tpu.dot_dimension_numbers<[1], [0], [0], [1], [0, 0, 1, 1], [], []>} : vector<64x128xbf16>, vector<128x64xbf16>, vector<64x64xf32> -> vector<64x64xf32>
    %106 = arith.maximumf %102, %105 : vector<64x64xf32>
    %107 = vector.extract_strided_slice %106 {offsets = [0, 0], sizes = [16, 64], strides = [1, 1]} : vector<64x64xf32> to vector<16x64xf32>
    %c0_79 = arith.constant 0 : index
    %c0_80 = arith.constant 0 : index
    %c0_81 = arith.constant 0 : index
    %108 = vector.load %arg14[%c0_79, %c0_80, %c0_81] : memref<4x64x64xbf16, #tpu.memory_space<vmem>>, vector<1x64x64xbf16>
    %109 = vector.shape_cast %108 : vector<1x64x64xbf16> to vector<64x64xbf16>
    %110 = arith.truncf %107 : vector<16x64xf32> to vector<16x64xbf16>
    %cst_82 = arith.constant dense<0.000000e+00> : vector<16x64xf32>
    %111 = tpu.matmul %110, %109, %cst_82 {dimension_numbers = #tpu.dot_dimension_numbers<[1], [0], [0], [1], [0, 0, 1, 1], [], []>} : vector<16x64xbf16>, vector<64x64xbf16>, vector<16x64xf32> -> vector<16x64xf32>
    %112 = vector.extract_strided_slice %106 {offsets = [16, 0], sizes = [16, 64], strides = [1, 1]} : vector<64x64xf32> to vector<16x64xf32>
    %c1_83 = arith.constant 1 : index
    %c0_84 = arith.constant 0 : index
    %c0_85 = arith.constant 0 : index
    %113 = vector.load %arg14[%c1_83, %c0_84, %c0_85] : memref<4x64x64xbf16, #tpu.memory_space<vmem>>, vector<1x64x64xbf16>
    %114 = vector.shape_cast %113 : vector<1x64x64xbf16> to vector<64x64xbf16>
    %115 = arith.truncf %112 : vector<16x64xf32> to vector<16x64xbf16>
    %cst_86 = arith.constant dense<0.000000e+00> : vector<16x64xf32>
    %116 = tpu.matmul %115, %114, %cst_86 {dimension_numbers = #tpu.dot_dimension_numbers<[1], [0], [0], [1], [0, 0, 1, 1], [], []>} : vector<16x64xbf16>, vector<64x64xbf16>, vector<16x64xf32> -> vector<16x64xf32>
    %117 = arith.addf %111, %116 : vector<16x64xf32>
    %118 = vector.extract_strided_slice %106 {offsets = [32, 0], sizes = [16, 64], strides = [1, 1]} : vector<64x64xf32> to vector<16x64xf32>
    %c2_87 = arith.constant 2 : index
    %c0_88 = arith.constant 0 : index
    %c0_89 = arith.constant 0 : index
    %119 = vector.load %arg14[%c2_87, %c0_88, %c0_89] : memref<4x64x64xbf16, #tpu.memory_space<vmem>>, vector<1x64x64xbf16>
    %120 = vector.shape_cast %119 : vector<1x64x64xbf16> to vector<64x64xbf16>
    %121 = arith.truncf %118 : vector<16x64xf32> to vector<16x64xbf16>
    %cst_90 = arith.constant dense<0.000000e+00> : vector<16x64xf32>
    %122 = tpu.matmul %121, %120, %cst_90 {dimension_numbers = #tpu.dot_dimension_numbers<[1], [0], [0], [1], [0, 0, 1, 1], [], []>} : vector<16x64xbf16>, vector<64x64xbf16>, vector<16x64xf32> -> vector<16x64xf32>
    %123 = arith.addf %117, %122 : vector<16x64xf32>
    %124 = vector.extract_strided_slice %106 {offsets = [48, 0], sizes = [16, 64], strides = [1, 1]} : vector<64x64xf32> to vector<16x64xf32>
    %c3_91 = arith.constant 3 : index
    %c0_92 = arith.constant 0 : index
    %c0_93 = arith.constant 0 : index
    %125 = vector.load %arg14[%c3_91, %c0_92, %c0_93] : memref<4x64x64xbf16, #tpu.memory_space<vmem>>, vector<1x64x64xbf16>
    %126 = vector.shape_cast %125 : vector<1x64x64xbf16> to vector<64x64xbf16>
    %127 = arith.truncf %124 : vector<16x64xf32> to vector<16x64xbf16>
    %cst_94 = arith.constant dense<0.000000e+00> : vector<16x64xf32>
    %128 = tpu.matmul %127, %126, %cst_94 {dimension_numbers = #tpu.dot_dimension_numbers<[1], [0], [0], [1], [0, 0, 1, 1], [], []>} : vector<16x64xbf16>, vector<64x64xbf16>, vector<16x64xf32> -> vector<16x64xf32>
    %129 = arith.addf %123, %128 : vector<16x64xf32>
    %c0_95 = arith.constant 0 : index
    %c0_96 = arith.constant 0 : index
    %130 = vector.load %arg15[%c0_95, %c0_96] : memref<1x64xf32, #tpu.memory_space<vmem>>, vector<1x64xf32>
    %131 = vector.broadcast %130 : vector<1x64xf32> to vector<16x64xf32>
    %132 = arith.addf %129, %131 : vector<16x64xf32>
    %cst_97 = arith.constant 0.000000e+00 : f32
    %133 = vector.broadcast %cst_97 : f32 to vector<16x64xf32>
    %134 = arith.maximumf %132, %133 : vector<16x64xf32>
    %c0_98 = arith.constant 0 : index
    %c0_99 = arith.constant 0 : index
    %135 = vector.load %arg16[%c0_98, %c0_99] : memref<1x64xf32, #tpu.memory_space<vmem>>, vector<1x64xf32>
    %136 = vector.broadcast %135 : vector<1x64xf32> to vector<16x64xf32>
    %137 = arith.mulf %134, %136 : vector<16x64xf32>
    %cst_100 = arith.constant dense<0.000000e+00> : vector<16xf32>
    %138 = vector.multi_reduction <add>, %137, %cst_100 [1] : vector<16x64xf32> to vector<16xf32>
    %139 = vector.shape_cast %138 : vector<16xf32> to vector<16x1xf32>
    %c0_101 = arith.constant 0 : index
    %c0_102 = arith.constant 0 : index
    %140 = vector.load %arg17[%c0_101, %c0_102] : memref<1x1xf32, #tpu.memory_space<vmem>>, vector<1x1xf32>
    %141 = vector.broadcast %140 : vector<1x1xf32> to vector<16x1xf32>
    %142 = arith.addf %139, %141 : vector<16x1xf32>
    %143 = math.sin %142 : vector<16x1xf32>
    %cst_103 = arith.constant 1.000000e+00 : f32
    %144 = vector.broadcast %cst_103 : f32 to vector<16x1xf32>
    %145 = arith.addf %144, %143 : vector<16x1xf32>
    %cst_104 = arith.constant 5.000000e-01 : f32
    %146 = vector.broadcast %cst_104 : f32 to vector<16x1xf32>
    %147 = arith.mulf %146, %145 : vector<16x1xf32>
    %c0_105 = arith.constant 0 : index
    %c0_106 = arith.constant 0 : index
    %148 = vector.load %arg18[%c0_105, %c0_106] : memref<16x2xf32, #tpu.memory_space<vmem>>, vector<16x1xf32>
    tpu.vector_store %arg18[%c0_105, %c0_106], %147 {strides = array<i32>} : memref<16x2xf32, #tpu.memory_space<vmem>>, vector<16x1xf32>,
    %cst_107 = arith.constant 1.000000e+00 : f32
    %149 = vector.broadcast %cst_107 : f32 to vector<16x1xf32>
    %150 = arith.subf %149, %147 : vector<16x1xf32>
    %c0_108 = arith.constant 0 : index
    %c1_109 = arith.constant 1 : index
    %151 = vector.load %arg18[%c0_108, %c1_109] : memref<16x2xf32, #tpu.memory_space<vmem>>, vector<16x1xf32>
    tpu.vector_store %arg18[%c0_108, %c1_109], %150 {strides = array<i32>} : memref<16x2xf32, #tpu.memory_space<vmem>>, vector<16x1xf32>,
    return
  }
  func.func @transform_0(%arg0: i32) -> (i32, i32, i32) {
    %c0_i32 = arith.constant 0 : i32
    %c0_i32_0 = arith.constant 0 : i32
    %c0_i32_1 = arith.constant 0 : i32
    return %arg0, %c0_i32, %c0_i32_0 : i32, i32, i32
  }
  func.func @transform_1(%arg0: i32) -> (i32, i32, i32) {
    %c0_i32 = arith.constant 0 : i32
    %c0_i32_0 = arith.constant 0 : i32
    %c0_i32_1 = arith.constant 0 : i32
    %c0_i32_2 = arith.constant 0 : i32
    return %c0_i32, %c0_i32_0, %c0_i32_1 : i32, i32, i32
  }
  func.func @transform_2(%arg0: i32) -> (i32, i32) {
    %c0_i32 = arith.constant 0 : i32
    %c0_i32_0 = arith.constant 0 : i32
    %c0_i32_1 = arith.constant 0 : i32
    return %c0_i32, %c0_i32_0 : i32, i32
  }
  func.func @transform_3(%arg0: i32) -> (i32, i32) {
    %c0_i32 = arith.constant 0 : i32
    %c0_i32_0 = arith.constant 0 : i32
    %c0_i32_1 = arith.constant 0 : i32
    return %c0_i32, %c0_i32_0 : i32, i32
  }
  func.func @transform_4(%arg0: i32) -> (i32, i32) {
    %c0_i32 = arith.constant 0 : i32
    %c0_i32_0 = arith.constant 0 : i32
    %c0_i32_1 = arith.constant 0 : i32
    return %c0_i32, %c0_i32_0 : i32, i32
  }
  func.func @transform_5(%arg0: i32) -> (i32, i32) {
    %c0_i32 = arith.constant 0 : i32
    %c0_i32_0 = arith.constant 0 : i32
    %c0_i32_1 = arith.constant 0 : i32
    return %c0_i32, %c0_i32_0 : i32, i32
  }
  func.func @transform_6(%arg0: i32) -> (i32, i32) {
    %c0_i32 = arith.constant 0 : i32
    %c0_i32_0 = arith.constant 0 : i32
    %c0_i32_1 = arith.constant 0 : i32
    return %c0_i32, %c0_i32_0 : i32, i32
  }
  func.func @transform_7(%arg0: i32) -> (i32, i32, i32) {
    %c0_i32 = arith.constant 0 : i32
    %c0_i32_0 = arith.constant 0 : i32
    %c0_i32_1 = arith.constant 0 : i32
    %c0_i32_2 = arith.constant 0 : i32
    return %c0_i32, %c0_i32_0, %c0_i32_1 : i32, i32, i32
  }
  func.func @transform_8(%arg0: i32) -> (i32, i32) {
    %c0_i32 = arith.constant 0 : i32
    %c0_i32_0 = arith.constant 0 : i32
    %c0_i32_1 = arith.constant 0 : i32
    return %c0_i32, %c0_i32_0 : i32, i32
  }
  func.func @transform_9(%arg0: i32) -> (i32, i32) {
    %c0_i32 = arith.constant 0 : i32
    %c0_i32_0 = arith.constant 0 : i32
    %c0_i32_1 = arith.constant 0 : i32
    return %c0_i32, %c0_i32_0 : i32, i32
  }
  func.func @transform_10(%arg0: i32) -> (i32, i32) {
    %c0_i32 = arith.constant 0 : i32
    %c0_i32_0 = arith.constant 0 : i32
    %c0_i32_1 = arith.constant 0 : i32
    return %c0_i32, %c0_i32_0 : i32, i32
  }
  func.func @transform_11(%arg0: i32) -> (i32, i32) {
    %c0_i32 = arith.constant 0 : i32
    %c0_i32_0 = arith.constant 0 : i32
    %c0_i32_1 = arith.constant 0 : i32
    return %c0_i32, %c0_i32_0 : i32, i32
  }
  func.func @transform_12(%arg0: i32) -> (i32, i32) {
    %c0_i32 = arith.constant 0 : i32
    %c0_i32_0 = arith.constant 0 : i32
    %c0_i32_1 = arith.constant 0 : i32
    return %c0_i32, %c0_i32_0 : i32, i32
  }
  func.func @transform_13(%arg0: i32) -> (i32, i32, i32) {
    %c0_i32 = arith.constant 0 : i32
    %c0_i32_0 = arith.constant 0 : i32
    %c0_i32_1 = arith.constant 0 : i32
    %c0_i32_2 = arith.constant 0 : i32
    return %c0_i32, %c0_i32_0, %c0_i32_1 : i32, i32, i32
  }
  func.func @transform_14(%arg0: i32) -> (i32, i32) {
    %c0_i32 = arith.constant 0 : i32
    %c0_i32_0 = arith.constant 0 : i32
    %c0_i32_1 = arith.constant 0 : i32
    return %c0_i32, %c0_i32_0 : i32, i32
  }
  func.func @transform_15(%arg0: i32) -> (i32, i32) {
    %c0_i32 = arith.constant 0 : i32
    %c0_i32_0 = arith.constant 0 : i32
    %c0_i32_1 = arith.constant 0 : i32
    return %c0_i32, %c0_i32_0 : i32, i32
  }
  func.func @transform_16(%arg0: i32) -> (i32, i32) {
    %c0_i32 = arith.constant 0 : i32
    %c0_i32_0 = arith.constant 0 : i32
    %c0_i32_1 = arith.constant 0 : i32
    return %c0_i32, %c0_i32_0 : i32, i32
  }
  func.func @transform_17(%arg0: i32) -> (i32, i32) {
    %c0_i32 = arith.constant 0 : i32
    %c0_i32_0 = arith.constant 0 : i32
    return %arg0, %c0_i32 : i32, i32
  }
}

</mosaic_0001>

<bundles_post_ra>
// kernel: _lambda_.1
= control target key start
LH: loop header
LB: loop body
LE: loop exit
PB: predicated region body
PF: predicated region fallthrough
CT: control target
= control target key end

     0   :  { %s9953_s26 = smov 0   ;;  %s12638_s0 = inlined_call_operand.vmem [shape: f32[32,28,28], index: 0, kind: input, shape index: {}]   ;;  %s12639_s1 = inlined_call_operand.vmem [shape: bf16[5,28,144], index: 1, kind: input, shape index: {}]   ;;  %s12640_s2 = inlined_call_operand.vmem [shape: f32[1,144], index: 2, kind: input, shape index: {}]   ;;  %s12641_s3 = inlined_call_operand.vmem [shape: bf16[144,72], index: 3, kind: input, shape index: {}]   ;;  %s12642_s4 = inlined_call_operand.vmem [shape: bf16[144,72], index: 4, kind: input, shape index: {}]   ;;  %s12643_s5 = inlined_call_operand.vmem [shape: bf16[256,384], index: 5, kind: input, shape index: {}]   ;;  %s12644_s6 = inlined_call_operand.vmem [shape: bf16[256,384], index: 6, kind: input, shape index: {}]   ;;  %s12645_s7 = inlined_call_operand.vmem [shape: bf16[5,72,128], index: 7, kind: input, shape index: {}]   ;;  %s12646_s8 = inlined_call_operand.vmem [shape: f32[1,128], index: 8, kind: input, shape index: {}]   ;;  %s12647_s9 = inlined_call_operand.vmem [shape: bf16[128,64], index: 9, kind: input, shape index: {}]   ;;  %s12648_s10 = inlined_call_operand.vmem [shape: bf16[128,64], index: 10, kind: input, shape index: {}]   ;;  %s12649_s11 = inlined_call_operand.vmem [shape: bf16[64,128], index: 11, kind: input, shape index: {}]   ;;  %s12650_s12 = inlined_call_operand.vmem [shape: bf16[64,128], index: 12, kind: input, shape index: {}]   ;;  %s12651_s13 = inlined_call_operand.vmem [shape: bf16[4,64,64], index: 13, kind: input, shape index: {}]   ;;  %s12652_s14 = inlined_call_operand.vmem [shape: f32[1,64], index: 14, kind: input, shape index: {}]   ;;  %s12653_s15 = inlined_call_operand.vmem [shape: f32[1,64], index: 15, kind: input, shape index: {}]   ;;  %s12654_s16 = inlined_call_operand.<no memory space> [shape: f32[1,1], index: 16, kind: input, shape index: {}]   ;;  %s12655_s17 = inlined_call_operand.vmem [shape: f32[32,2], index: 17, kind: output, shape index: {}]  }
   0x1   :  { %12674 = sst [smem:[#allocation35_spill]] %s12638_s0  ;;  %v22_v0 = vstv %s12654_s16 }
   0x2   :  { %12675 = sst [smem:[#allocation36_spill]] %s12639_s1  ;;  %23 = vst [vmem:[#allocation2] sm:$0x1] %v22_v0 }
   0x3 LB: > { %s7798_s27 = sadd.s32 4294967295, %s9848_s26   ;;  %p7802_p0 = scmp.ge.s32.totalorder %s9848_s26, 1  ;;  %s9848_s26 = sphi %s9953_s26, %s29_s26  }
   0x4   : > { %p491_p1 = scmp.lt.s32.totalorder %s9848_s26, 3 }
   0x6   : > { %p492_p2 = pnand %p7802_p0, %p491_p1 }
   0x8   : > { %495 = sbr.rel (%p492_p2) target bundleno = 3546 (0xdda), region = 88 }
   0xf   : > { %s12676_s0 = sld [smem:[#allocation36_spill]]  ;;  %vm802_vm0 = vcmask 1045504   ;;  %v9850_v3 = vmov 0   ;;  %s7803_s18 = sshll.u32 %s7798_s27, 4  ;;  %vm729_vm1 = vcmask 228352   ;;  %vm3401_vm2 = vcmask 130048  }
  0x10   : > { %841 = vmatprep.mubr.bf16.mxu0 %v9850_v3  ;;  %3474 = vmatprep.subr.bf16.mxu1 %v9850_v3  ;;  %p545_p3 = scmp.lt.s32.totalorder %s7803_s18, 31  ;;  %s12677_s25 = sld [smem:[#allocation35_spill]]  ;;  %vm5568_vm3 = vcmask 1043456   ;;  %vm5433_vm4 = vcmask 1046528   ;;  %vm6069_vm5 = vcmask 1044480   ;;  %vm5543_vm6 = vcmask 588800  }
  0x11   : > { %vm9852_vm7 = vmmov 0   ;;  %vm7206_vm8 = vcmask 523264  }
  0x12   : > { %s12794_s18 = smov (!%p545_p3, %s7803_s18), 31 }
  0x13   : > { %s8314_s22 = sshll.u32 %s12794_s18, 5  ;;  %s9859_s18 = smov 1  }
  0x15   : > { %v9593_v1 = vld [vmem:[%s12676_s0 + $0x24] ss:$8 sps:$4 sm:$0xff]   ;;  %v9595_v2 = vld [vmem:[%s12676_s0 + $0x20] ss:$8 sps:$4 sm:$0xff]  }
  0x16   : > { %809 = vmatprep.subr.bf16.mxu0 %v9593_v1  ;;  %v9596_v4 = vld [vmem:[%s12676_s0 + $0x34] ss:$8 sps:$4 sm:$0x3f]   ;;  %v9598_v5 = vld [vmem:[%s12676_s0 + $0x30] ss:$8 sps:$4 sm:$0x3f]   ;;  %s9982_s28 = scalar_lea.vmem %s12677_s25, %s8314_s22 }
  0x17   : > { %810 = vmatpush1.bf16.msra.mxu0 %v9595_v2  ;;  %v804_v6 = vsel %vm802_vm0, %v9598_v5, 0  ;;  %v634_v7 = vld [vmem:[%s9982_s28 + $0x1] sm:$0xff]  ;;  %v635_v8 = vld [vmem:[%s9982_s28 + $0x9] sm:$0xff]  ;;  %v636_v10 = vld [vmem:[%s9982_s28 + $0x11] sm:$0xff]  ;;  %s7806_s25 = sshll.u32 %s7798_s27, 1 }
  0x18   : > { %7816 = vmatprep.subr.msk.bf16.mxu0 %vm802_vm0, %v9596_v4  ;;  %v687_v9 = vpack.c.bf16 %v635_v8, %v634_v7  ;;  %v637_v11 = vld [vmem:[%s9982_s28 + $0x21] sm:$0xff]  ;;  %v638_v15 = vld [vmem:[%s9982_s28 + $0x29] sm:$0xff]  ;;  %v639_v16 = vld [vmem:[%s9982_s28 + $0x31] sm:$0xff]  ;;  %p552_p4 = scmp.lt.s32.totalorder %s7806_s25, 3 }
  0x19   : > { %v688_v12 = vpack.c.bf16 %v637_v11, %v636_v10  ;;  %v9599_v13 = vld [vmem:[%s12676_s0] ss:$8 sps:$4 sm:$0xff]   ;;  %v9601_v14 = vld [vmem:[%s12676_s0 + $0x4] ss:$8 sps:$4 sm:$0xff]   ;;  %v689_v17 = vpack.c.bf16 %v639_v16, %v638_v15  ;;  %v642_v21 = vld [vmem:[%s9982_s28 + $0x51] sm:$0xff] }
  0x1a   : > { %v640_v18 = vld [vmem:[%s9982_s28 + $0x41] sm:$0xff]  ;;  %v641_v19 = vld [vmem:[%s9982_s28 + $0x49] sm:$0xff]  ;;  %v645_v25 = vld [vmem:[%s9982_s28 + $0x71] sm:$0xff]  ;;  %s12796_s25 = smov (!%p552_p4, %s7806_s25), 3 }
  0x1b   : > { %812 = vmatpush1.bf16.msra.mxu0 %v804_v6  ;;  %v690_v20 = vpack.c.bf16 %v641_v19, %v640_v18  ;;  %v643_v22 = vld [vmem:[%s9982_s28 + $0x61] sm:$0xff]  ;;  %v644_v24 = vld [vmem:[%s9982_s28 + $0x69] sm:$0xff]  ;;  %v648_v30 = vld [vmem:[%s9982_s28 + $0x91] sm:$0xff]  ;;  %s7807_s27 = sshll.u32 %s12796_s25, 3 }
  0x1c   : > { %1178 = vmatprep.subr.bf16.mxu0 %v9601_v14  ;;  %v691_v23 = vpack.c.bf16 %v643_v22, %v642_v21  ;;  %v692_v26 = vpack.c.bf16 %v645_v25, %v644_v24  ;;  %v646_v27 = vld [vmem:[%s9982_s28 + $0x81] sm:$0xff]  ;;  %v647_v28 = vld [vmem:[%s9982_s28 + $0x89] sm:$0xff]  ;;  %v9602_v33 = vld [vmem:[%s12676_s0 + $0x14] ss:$8 sps:$4 sm:$0x3f]   ;;  %s555_s30 = scalar_lea.vmem %s12655_s17, %s7807_s27 }
  0x1d   : > { %v693_v29 = vpack.c.bf16 %v647_v28, %v646_v27  ;;  %v649_v31 = vld [vmem:[%s9982_s28 + $0xa1] sm:$0xff]  ;;  %v9604_v34 = vld [vmem:[%s12676_s0 + $0x10] ss:$8 sps:$4 sm:$0x3f]  }
  0x1e   : > { %7817 = vmatmul.mubr.msk.bf16.vlgmr.msra.gmra.mrb[0].mxu0 %vm729_vm1, %v687_v9  ;;  %v694_v32 = vpack.c.bf16 %v649_v31, %v648_v30  ;;  %v650_v35 = vld [vmem:[%s9982_s28 + $0xa9] sm:$0xff]  ;;  %v651_v36 = vld [vmem:[%s9982_s28 + $0xb1] sm:$0xff]  ;;  %v1173_v37 = vsel %vm802_vm0, %v9604_v34, 0  ;;  %v652_v39 = vld [vmem:[%s9982_s28 + $0xc1] sm:$0xff] }
  0x1f   : > { %851 = vmatprep.mubr.bf16.mxu0 %v9850_v3  ;;  %1179 = vmatpush1.bf16.msra.mxu0 %v9599_v13  ;;  %v695_v38 = vpack.c.bf16 %v651_v36, %v650_v35  ;;  %v653_v40 = vld [vmem:[%s9982_s28 + $0xc9] sm:$0xff]  ;;  %v654_v42 = vld [vmem:[%s9982_s28 + $0xd1] sm:$0xff]  ;;  %v655_v43 = vld [vmem:[%s9982_s28 + $0xe1] sm:$0xff] }
  0x20   : > { %7845 = vmatprep.subr.msk.bf16.mxu0 %vm802_vm0, %v9602_v33  ;;  %v696_v41 = vpack.c.bf16 %v653_v40, %v652_v39  ;;  %v697_v44 = vpack.c.bf16 %v655_v43, %v654_v42  ;;  %v656_v45 = vld [vmem:[%s9982_s28 + $0xe9] sm:$0xff]  ;;  %v657_v46 = vld [vmem:[%s9982_s28 + $0xf1] sm:$0xff]  ;;  %v658_v48 = vld [vmem:[%s9982_s28 + $0x101] sm:$0xff] }
  0x21   : > { %v698_v47 = vpack.c.bf16 %v657_v46, %v656_v45  ;;  %v659_v49 = vld [vmem:[%s9982_s28 + $0x109] sm:$0xff]  ;;  %v660_v51 = vld [vmem:[%s9982_s28 + $0x111] sm:$0xff]  ;;  %v661_v52 = vld [vmem:[%s9982_s28 + $0x121] sm:$0xff] }
  0x22   : > { %v699_v50 = vpack.c.bf16 %v659_v49, %v658_v48  ;;  %v700_v53 = vpack.c.bf16 %v661_v52, %v660_v51  ;;  %v662_v54 = vld [vmem:[%s9982_s28 + $0x129] sm:$0xff]  ;;  %v663_v55 = vld [vmem:[%s9982_s28 + $0x131] sm:$0xff]  ;;  %v664_v57 = vld [vmem:[%s9982_s28 + $0x141] sm:$0xff] }
  0x23   : > { %1181 = vmatpush1.bf16.msra.mxu0 %v1173_v37  ;;  %v701_v56 = vpack.c.bf16 %v663_v55, %v662_v54  ;;  %v665_v58 = vld [vmem:[%s9982_s28 + $0x149] sm:$0xff]  ;;  %v666_v60 = vld [vmem:[%s9982_s28 + $0x151] sm:$0xff]  ;;  %v667_v61 = vld [vmem:[%s9982_s28 + $0x161] sm:$0xff] }
  0x24   : > { %v702_v59 = vpack.c.bf16 %v665_v58, %v664_v57  ;;  %v703_v62 = vpack.c.bf16 %v667_v61, %v666_v60  ;;  %v668_v63 = vld [vmem:[%s9982_s28 + $0x169] sm:$0xff]  ;;  %v669_v0 = vld [vmem:[%s9982_s28 + $0x171] sm:$0xff]  ;;  %v670_v2 = vld [vmem:[%s9982_s28 + $0x181] sm:$0xff] }
  0x25   : > { %v704_v1 = vpack.c.bf16 %v669_v0, %v668_v63  ;;  %v671_v4 = vld [vmem:[%s9982_s28 + $0x189] sm:$0xff]  ;;  %v672_v6 = vld [vmem:[%s9982_s28 + $0x191] sm:$0xff]  ;;  %v673_v7 = vld [vmem:[%s9982_s28 + $0x1a1] sm:$0xff] }
  0x26   : > { %7818 = vmatmul.mubr.msk.bf16.gmra.mrb[4].mxu0 %vm729_vm1, %v688_v12  ;;  %v705_v5 = vpack.c.bf16 %v671_v4, %v670_v2  ;;  %v706_v8 = vpack.c.bf16 %v673_v7, %v672_v6  ;;  %v674_v9 = vld [vmem:[%s9982_s28 + $0x1a9] sm:$0xff]  ;;  %v675_v10 = vld [vmem:[%s9982_s28 + $0x1b1] sm:$0xff]  ;;  %v676_v12 = vld [vmem:[%s9982_s28 + $0x1c1] sm:$0xff] }
  0x27   : > { %861 = vmatprep.mubr.bf16.mxu0 %v9850_v3  ;;  %v707_v11 = vpack.c.bf16 %v675_v10, %v674_v9  ;;  %v677_v13 = vld [vmem:[%s9982_s28 + $0x1c9] sm:$0xff]  ;;  %v678_v15 = vld [vmem:[%s9982_s28 + $0x1d1] sm:$0xff]  ;;  %v679_v16 = vld [vmem:[%s9982_s28 + $0x1e1] sm:$0xff] }
  0x28   : > { %v708_v14 = vpack.c.bf16 %v677_v13, %v676_v12  ;;  %v680_v18 = vld [vmem:[%s9982_s28 + $0x1e9] sm:$0xff]  ;;  %v681_v19 = vld [vmem:[%s9982_s28 + $0x1f1] sm:$0xff]  ;;  %v558_v21 = vld [vmem:[%s9982_s28] sm:$0xff] }
  0x29   : > { %v559_v22 = vld [vmem:[%s9982_s28 + $0x8] sm:$0xff]  ;;  %v561_v27 = vld [vmem:[%s9982_s28 + $0x20] sm:$0xff]  ;;  %v563_v30 = vld [vmem:[%s9982_s28 + $0x30] sm:$0xff] }
  0x2a   : > { %v9605_v24 = vld [vmem:[%s12676_s0 + $0x40] ss:$8 sps:$4 sm:$0xff]   ;;  %v9607_v25 = vld [vmem:[%s12676_s0 + $0x44] ss:$8 sps:$4 sm:$0xff]   ;;  %v566_v35 = vld [vmem:[%s9982_s28 + $0x50] sm:$0xff] }
  0x2b   : > { %1624 = vmatprep.subr.bf16.mxu0 %v9607_v25  ;;  %v565_v33 = vld [vmem:[%s9982_s28 + $0x48] sm:$0xff]  ;;  %v567_v36 = vld [vmem:[%s9982_s28 + $0x60] sm:$0xff]  ;;  %v569_v39 = vld [vmem:[%s9982_s28 + $0x70] sm:$0xff] }
  0x2c   : > { %v614_v37 = vpack.c.bf16 %v567_v36, %v566_v35  ;;  %v571_v42 = vld [vmem:[%s9982_s28 + $0x88] sm:$0xff]  ;;  %v573_v45 = vld [vmem:[%s9982_s28 + $0xa0] sm:$0xff]  ;;  %v9610_v48 = vld [vmem:[%s12676_s0 + $0x50] ss:$8 sps:$4 sm:$0x3f]  }
  0x2d   : > { %v574_v49 = vld [vmem:[%s9982_s28 + $0xa8] sm:$0xff]  ;;  %v1619_v51 = vsel %vm802_vm0, %v9610_v48, 0  ;;  %v579_v57 = vld [vmem:[%s9982_s28 + $0xe0] sm:$0xff]  ;;  %v581_v60 = vld [vmem:[%s9982_s28 + $0xf0] sm:$0xff] }
  0x2e   : > { %7819 = vmatmul.mubr.msk.bf16.gmra.mrb[8].mxu0 %vm729_vm1, %v689_v17  ;;  %v709_v17 = vpack.c.bf16 %v679_v16, %v678_v15  ;;  %v577_v54 = vld [vmem:[%s9982_s28 + $0xc8] sm:$0xff]  ;;  %v585_v2 = vld [vmem:[%s9982_s28 + $0x120] sm:$0xff]  ;;  %v587_v6 = vld [vmem:[%s9982_s28 + $0x130] sm:$0xff] }
  0x2f   : > { %871 = vmatprep.mubr.bf16.mxu0 %v9850_v3  ;;  %v583_v63 = vld [vmem:[%s9982_s28 + $0x108] sm:$0xff]  ;;  %v591_v12 = vld [vmem:[%s9982_s28 + $0x160] sm:$0xff]  ;;  %v593_v15 = vld [vmem:[%s9982_s28 + $0x170] sm:$0xff] }
  0x30   : > { %v589_v9 = vld [vmem:[%s9982_s28 + $0x148] sm:$0xff] }
  0x31   : > { %v1451_v35 = vld [vmem:[%s9982_s28 + $0x2] sm:$0xff]  ;;  %v1452_v36 = vld [vmem:[%s9982_s28 + $0xa] sm:$0xff] }
  0x36   : > { %7820 = vmatmul.mubr.msk.bf16.gmra.mrb[12].mxu0 %vm729_vm1, %v690_v20  ;;  %v710_v20 = vpack.c.bf16 %v681_v19, %v680_v18  ;;  %v595_v18 = vld [vmem:[%s9982_s28 + $0x188] sm:$0xff] }
  0x37   : > { %881 = vmatprep.mubr.bf16.mxu0 %v9850_v3 }
  0x3e   : > { %7821 = vmatmul.mubr.msk.bf16.gmra.mrb[16].mxu0 %vm729_vm1, %v691_v23  ;;  %v610_v23 = vpack.c.bf16 %v559_v22, %v558_v21  ;;  %v597_v21 = vld [vmem:[%s9982_s28 + $0x1a0] sm:$0xff] }
  0x3f   : > { %891 = vmatprep.mubr.bf16.mxu0 %v9850_v3 }
  0x46   : > { %7822 = vmatmul.mubr.msk.bf16.gmra.mrb[20].mxu0 %vm729_vm1, %v692_v26  ;;  %v560_v26 = vld [vmem:[%s9982_s28 + $0x10] sm:$0xff] }
  0x47   : > { %901 = vmatprep.mubr.bf16.mxu0 %v9850_v3  ;;  %v611_v28 = vpack.c.bf16 %v561_v27, %v560_v26  ;;  %v600_v26 = vld [vmem:[%s9982_s28 + $0x1c0] sm:$0xff]  ;;  %v601_v27 = vld [vmem:[%s9982_s28 + $0x1c8] sm:$0xff] }
  0x4e   : > { %7823 = vmatmul.mubr.msk.bf16.gmra.mrb[24].mxu0 %vm729_vm1, %v693_v29  ;;  %v562_v29 = vld [vmem:[%s9982_s28 + $0x28] sm:$0xff] }
  0x4f   : > { %911 = vmatprep.mubr.bf16.mxu0 %v9850_v3  ;;  %v612_v31 = vpack.c.bf16 %v563_v30, %v562_v29  ;;  %v602_v29 = vld [vmem:[%s9982_s28 + $0x1d0] sm:$0xff]  ;;  %v603_v30 = vld [vmem:[%s9982_s28 + $0x1e0] sm:$0xff] }
  0x56   : > { %7824 = vmatmul.mubr.msk.bf16.gmra.mrb[28].mxu0 %vm729_vm1, %v694_v32  ;;  %v564_v32 = vld [vmem:[%s9982_s28 + $0x40] sm:$0xff] }
  0x57   : > { %921 = vmatprep.mubr.bf16.mxu0 %v9850_v3  ;;  %v613_v34 = vpack.c.bf16 %v565_v33, %v564_v32  ;;  %v604_v32 = vld [vmem:[%s9982_s28 + $0x1e8] sm:$0xff]  ;;  %v605_v33 = vld [vmem:[%s9982_s28 + $0x1f0] sm:$0xff] }
  0x5e   : > { %7825 = vmatmul.mubr.msk.bf16.gmra.mrb[32].mxu0 %vm729_vm1, %v695_v38  ;;  %v568_v38 = vld [vmem:[%s9982_s28 + $0x68] sm:$0xff] }
  0x5f   : > { %931 = vmatprep.mubr.bf16.mxu0 %v9850_v3  ;;  %v615_v40 = vpack.c.bf16 %v569_v39, %v568_v38  ;;  %v9611_v38 = vld [vmem:[%s12676_s0 + $0x60] ss:$8 sps:$4 sm:$0xff]   ;;  %v9613_v39 = vld [vmem:[%s12676_s0 + $0x64] ss:$8 sps:$4 sm:$0xff]  }
  0x66   : > { %7826 = vmatmul.mubr.msk.bf16.gmra.mrb[36].mxu0 %vm729_vm1, %v696_v41  ;;  %v570_v41 = vld [vmem:[%s9982_s28 + $0x80] sm:$0xff] }
  0x67   : > { %941 = vmatprep.mubr.bf16.mxu0 %v9850_v3  ;;  %v616_v43 = vpack.c.bf16 %v571_v42, %v570_v41  ;;  %v1454_v41 = vld [vmem:[%s9982_s28 + $0x22] sm:$0xff] }
  0x6e   : > { %7827 = vmatmul.mubr.msk.bf16.gmra.mrb[40].mxu0 %vm729_vm1, %v697_v44  ;;  %v572_v44 = vld [vmem:[%s9982_s28 + $0x90] sm:$0xff] }
  0x6f   : > { %951 = vmatprep.mubr.bf16.mxu0 %v9850_v3  ;;  %v617_v46 = vpack.c.bf16 %v573_v45, %v572_v44  ;;  %v1456_v44 = vld [vmem:[%s9982_s28 + $0x32] sm:$0xff] }
  0x76   : > { %7828 = vmatmul.mubr.msk.bf16.gmra.mrb[44].mxu0 %vm729_vm1, %v698_v47  ;;  %v9608_v47 = vld [vmem:[%s12676_s0 + $0x54] ss:$8 sps:$4 sm:$0x3f]  }
  0x77   : > { %961 = vmatprep.mubr.bf16.mxu0 %v9850_v3 }
  0x7e   : > { %7829 = vmatmul.mubr.msk.bf16.gmra.mrb[48].mxu0 %vm729_vm1, %v699_v50  ;;  %v575_v50 = vld [vmem:[%s9982_s28 + $0xb0] sm:$0xff] }
  0x7f   : > { %971 = vmatprep.mubr.bf16.mxu0 %v9850_v3  ;;  %v618_v52 = vpack.c.bf16 %v575_v50, %v574_v49  ;;  %v1459_v49 = vld [vmem:[%s9982_s28 + $0x52] sm:$0xff]  ;;  %v1460_v50 = vld [vmem:[%s9982_s28 + $0x62] sm:$0xff] }
  0x86   : > { %7830 = vmatmul.mubr.msk.bf16.gmra.mrb[52].mxu0 %vm729_vm1, %v700_v53  ;;  %v576_v53 = vld [vmem:[%s9982_s28 + $0xc0] sm:$0xff] }
  0x87   : > { %981 = vmatprep.mubr.bf16.mxu0 %v9850_v3  ;;  %v619_v55 = vpack.c.bf16 %v577_v54, %v576_v53  ;;  %v1462_v53 = vld [vmem:[%s9982_s28 + $0x72] sm:$0xff] }
  0x8e   : > { %7831 = vmatmul.mubr.msk.bf16.gmra.mrb[56].mxu0 %vm729_vm1, %v701_v56  ;;  %v578_v56 = vld [vmem:[%s9982_s28 + $0xd0] sm:$0xff] }
  0x8f   : > { %991 = vmatprep.mubr.bf16.mxu0 %v9850_v3  ;;  %v620_v58 = vpack.c.bf16 %v579_v57, %v578_v56  ;;  %v1464_v56 = vld [vmem:[%s9982_s28 + $0x8a] sm:$0xff] }
  0x96   : > { %7832 = vmatmul.mubr.msk.bf16.gmra.mrb[60].mxu0 %vm729_vm1, %v702_v59  ;;  %v580_v59 = vld [vmem:[%s9982_s28 + $0xe8] sm:$0xff] }
  0x97   : > { %1001 = vmatprep.mubr.bf16.mxu0 %v9850_v3  ;;  %v621_v61 = vpack.c.bf16 %v581_v60, %v580_v59  ;;  %v1466_v59 = vld [vmem:[%s9982_s28 + $0xa2] sm:$0xff] }
  0x9e   : > { %7833 = vmatmul.mubr.msk.bf16.gmra.mrb[64].mxu0 %vm729_vm1, %v703_v62  ;;  %v582_v62 = vld [vmem:[%s9982_s28 + $0x100] sm:$0xff] }
  0x9f   : > { %1011 = vmatprep.mubr.bf16.mxu0 %v9850_v3  ;;  %v622_v0 = vpack.c.bf16 %v583_v63, %v582_v62  ;;  %v9616_v62 = vld [vmem:[%s12676_s0 + $0x70] ss:$8 sps:$4 sm:$0x3f]  }
  0xa0   : > { %v1467_v63 = vld [vmem:[%s9982_s28 + $0xaa] sm:$0xff] }
  0xa6   : > { %7834 = vmatmul.mubr.msk.bf16.gmra.mrb[68].mxu0 %vm729_vm1, %v704_v1  ;;  %v584_v1 = vld [vmem:[%s9982_s28 + $0x110] sm:$0xff] }
  0xa7   : > { %1021 = vmatprep.mubr.bf16.mxu0 %v9850_v3  ;;  %v623_v4 = vpack.c.bf16 %v585_v2, %v584_v1  ;;  %v2161_v1 = vsel %vm802_vm0, %v9616_v62, 0 }
  0xae   : > { %7835 = vmatmul.mubr.msk.bf16.gmra.mrb[72].mxu0 %vm729_vm1, %v705_v5  ;;  %v586_v5 = vld [vmem:[%s9982_s28 + $0x128] sm:$0xff] }
  0xaf   : > { %1031 = vmatprep.mubr.bf16.mxu0 %v9850_v3  ;;  %v624_v7 = vpack.c.bf16 %v587_v6, %v586_v5  ;;  %v1470_v5 = vld [vmem:[%s9982_s28 + $0xca] sm:$0xff] }
  0xb6   : > { %7836 = vmatmul.mubr.msk.bf16.gmra.mrb[76].mxu0 %vm729_vm1, %v706_v8  ;;  %v588_v8 = vld [vmem:[%s9982_s28 + $0x140] sm:$0xff] }
  0xb7   : > { %1041 = vmatprep.mubr.bf16.mxu0 %v9850_v3  ;;  %v625_v10 = vpack.c.bf16 %v589_v9, %v588_v8  ;;  %v1472_v8 = vld [vmem:[%s9982_s28 + $0xe2] sm:$0xff] }
  0xbe   : > { %7837 = vmatmul.mubr.msk.bf16.gmra.mrb[80].mxu0 %vm729_vm1, %v707_v11  ;;  %v590_v11 = vld [vmem:[%s9982_s28 + $0x150] sm:$0xff] }
  0xbf   : > { %1051 = vmatprep.mubr.bf16.mxu0 %v9850_v3  ;;  %v626_v13 = vpack.c.bf16 %v591_v12, %v590_v11  ;;  %v1474_v11 = vld [vmem:[%s9982_s28 + $0xf2] sm:$0xff] }
  0xc6   : > { %7838 = vmatmul.mubr.msk.bf16.gmra.mrb[84].mxu0 %vm729_vm1, %v708_v14  ;;  %v592_v14 = vld [vmem:[%s9982_s28 + $0x168] sm:$0xff] }
  0xc7   : > { %1061 = vmatprep.mubr.bf16.mxu0 %v9850_v3  ;;  %v627_v16 = vpack.c.bf16 %v593_v15, %v592_v14  ;;  %v1476_v14 = vld [vmem:[%s9982_s28 + $0x10a] sm:$0xff] }
  0xce   : > { %7839 = vmatmul.mubr.msk.bf16.gmra.mrb[88].mxu0 %vm729_vm1, %v709_v17  ;;  %v594_v17 = vld [vmem:[%s9982_s28 + $0x180] sm:$0xff] }
  0xcf   : > { %1071 = vmatprep.mubr.bf16.mxu0 %v9850_v3  ;;  %v628_v19 = vpack.c.bf16 %v595_v18, %v594_v17  ;;  %v1478_v17 = vld [vmem:[%s9982_s28 + $0x122] sm:$0xff] }
  0xd6   : > { %7840 = vmatmul.mubr.msk.bf16.gmra.mrb[92].mxu0 %vm729_vm1, %v710_v20  ;;  %v596_v20 = vld [vmem:[%s9982_s28 + $0x190] sm:$0xff] }
  0xd7   : > { %1210 = vmatprep.mubr.bf16.mxu0 %v9850_v3  ;;  %v629_v22 = vpack.c.bf16 %v597_v21, %v596_v20  ;;  %v1480_v20 = vld [vmem:[%s9982_s28 + $0x132] sm:$0xff] }
  0xde   : > { %7846 = vmatmul.mubr.msk.bf16.vlgmr.msra.gmra.mrb[0].mxu0 %vm729_vm1, %v610_v23  ;;  %v598_v23 = vld [vmem:[%s9982_s28 + $0x1a8] sm:$0xff] }
  0xdf   : > { %1220 = vmatprep.mubr.bf16.mxu0 %v9850_v3  ;;  %1625 = vmatpush1.bf16.msra.mxu0 %v9605_v24  ;;  %v599_v24 = vld [vmem:[%s9982_s28 + $0x1b0] sm:$0xff] }
  0xe0   : > { %7878 = vmatprep.subr.msk.bf16.mxu0 %vm802_vm0, %v9608_v47  ;;  %v630_v25 = vpack.c.bf16 %v599_v24, %v598_v23  ;;  %v1458_v47 = vld [vmem:[%s9982_s28 + $0x4a] sm:$0xff] }
  0xe1   : > { %v1482_v23 = vld [vmem:[%s9982_s28 + $0x14a] sm:$0xff] }
  0xe3   : > { %1627 = vmatpush1.bf16.msra.mxu0 %v1619_v51  ;;  %v1508_v51 = vpack.c.bf16 %v1460_v50, %v1459_v49  ;;  %v1993_v49 = vld [vmem:[%s9982_s28 + $0x3] sm:$0xff]  ;;  %v1994_v50 = vld [vmem:[%s9982_s28 + $0xb] sm:$0xff] }
  0xe4   : > { %2166 = vmatprep.subr.bf16.mxu0 %v9613_v39 }
  0xe6   : > { %7847 = vmatmul.mubr.msk.bf16.gmra.mrb[4].mxu0 %vm729_vm1, %v611_v28  ;;  %v631_v28 = vpack.c.bf16 %v601_v27, %v600_v26  ;;  %v1484_v26 = vld [vmem:[%s9982_s28 + $0x162] sm:$0xff] }
  0xe7   : > { %1230 = vmatprep.mubr.bf16.mxu0 %v9850_v3 }
  0xee   : > { %7848 = vmatmul.mubr.msk.bf16.gmra.mrb[8].mxu0 %vm729_vm1, %v612_v31  ;;  %v632_v31 = vpack.c.bf16 %v603_v30, %v602_v29  ;;  %v1486_v29 = vld [vmem:[%s9982_s28 + $0x172] sm:$0xff] }
  0xef   : > { %1240 = vmatprep.mubr.bf16.mxu0 %v9850_v3 }
  0xf6   : > { %7849 = vmatmul.mubr.msk.bf16.gmra.mrb[12].mxu0 %vm729_vm1, %v613_v34  ;;  %v633_v34 = vpack.c.bf16 %v605_v33, %v604_v32  ;;  %v1488_v32 = vld [vmem:[%s9982_s28 + $0x18a] sm:$0xff] }
  0xf7   : > { %1250 = vmatprep.mubr.bf16.mxu0 %v9850_v3 }
  0xfe   : > { %7850 = vmatmul.mubr.msk.bf16.gmra.mrb[16].mxu0 %vm729_vm1, %v614_v37  ;;  %v1504_v37 = vpack.c.bf16 %v1452_v36, %v1451_v35  ;;  %v1490_v35 = vld [vmem:[%s9982_s28 + $0x1a2] sm:$0xff] }
  0xff   : > { %1260 = vmatprep.mubr.bf16.mxu0 %v9850_v3 }
 0x106   : > { %7851 = vmatmul.mubr.msk.bf16.gmra.mrb[20].mxu0 %vm729_vm1, %v615_v40  ;;  %v1453_v40 = vld [vmem:[%s9982_s28 + $0x12] sm:$0xff] }
 0x107   : > { %1270 = vmatprep.mubr.bf16.mxu0 %v9850_v3  ;;  %v1505_v42 = vpack.c.bf16 %v1454_v41, %v1453_v40  ;;  %v1493_v40 = vld [vmem:[%s9982_s28 + $0x1c2] sm:$0xff]  ;;  %v1494_v41 = vld [vmem:[%s9982_s28 + $0x1ca] sm:$0xff] }
 0x10e   : > { %7852 = vmatmul.mubr.msk.bf16.gmra.mrb[24].mxu0 %vm729_vm1, %v616_v43  ;;  %v1455_v43 = vld [vmem:[%s9982_s28 + $0x2a] sm:$0xff] }
 0x10f   : > { %1280 = vmatprep.mubr.bf16.mxu0 %v9850_v3  ;;  %v1506_v45 = vpack.c.bf16 %v1456_v44, %v1455_v43  ;;  %v1495_v43 = vld [vmem:[%s9982_s28 + $0x1d2] sm:$0xff]  ;;  %v1496_v44 = vld [vmem:[%s9982_s28 + $0x1e2] sm:$0xff] }
 0x116   : > { %7853 = vmatmul.mubr.msk.bf16.gmra.mrb[28].mxu0 %vm729_vm1, %v617_v46  ;;  %v1457_v46 = vld [vmem:[%s9982_s28 + $0x42] sm:$0xff] }
 0x117   : > { %1290 = vmatprep.mubr.bf16.mxu0 %v9850_v3  ;;  %v1507_v48 = vpack.c.bf16 %v1458_v47, %v1457_v46  ;;  %v1497_v46 = vld [vmem:[%s9982_s28 + $0x1ea] sm:$0xff]  ;;  %v1498_v47 = vld [vmem:[%s9982_s28 + $0x1f2] sm:$0xff] }
 0x11e   : > { %7854 = vmatmul.mubr.msk.bf16.gmra.mrb[32].mxu0 %vm729_vm1, %v618_v52  ;;  %v1461_v52 = vld [vmem:[%s9982_s28 + $0x6a] sm:$0xff] }
 0x11f   : > { %1300 = vmatprep.mubr.bf16.mxu0 %v9850_v3  ;;  %v1509_v54 = vpack.c.bf16 %v1462_v53, %v1461_v52  ;;  %v9617_v52 = vld [vmem:[%s12676_s0 + $0x80] ss:$8 sps:$4 sm:$0xff]   ;;  %v9619_v53 = vld [vmem:[%s12676_s0 + $0x84] ss:$8 sps:$4 sm:$0xff]  }
 0x126   : > { %7855 = vmatmul.mubr.msk.bf16.gmra.mrb[36].mxu0 %vm729_vm1, %v619_v55  ;;  %v1463_v55 = vld [vmem:[%s9982_s28 + $0x82] sm:$0xff] }
 0x127   : > { %1310 = vmatprep.mubr.bf16.mxu0 %v9850_v3  ;;  %v1510_v57 = vpack.c.bf16 %v1464_v56, %v1463_v55  ;;  %v1996_v55 = vld [vmem:[%s9982_s28 + $0x23] sm:$0xff] }
 0x12e   : > { %7856 = vmatmul.mubr.msk.bf16.gmra.mrb[40].mxu0 %vm729_vm1, %v620_v58  ;;  %v1465_v58 = vld [vmem:[%s9982_s28 + $0x92] sm:$0xff] }
 0x12f   : > { %1320 = vmatprep.mubr.bf16.mxu0 %v9850_v3  ;;  %v1511_v60 = vpack.c.bf16 %v1466_v59, %v1465_v58  ;;  %v1998_v58 = vld [vmem:[%s9982_s28 + $0x33] sm:$0xff] }
 0x136   : > { %7857 = vmatmul.mubr.msk.bf16.gmra.mrb[44].mxu0 %vm729_vm1, %v621_v61  ;;  %v9614_v61 = vld [vmem:[%s12676_s0 + $0x74] ss:$8 sps:$4 sm:$0x3f]  }
 0x137   : > { %1330 = vmatprep.mubr.bf16.mxu0 %v9850_v3 }
 0x13e   : > { %7858 = vmatmul.mubr.msk.bf16.gmra.mrb[48].mxu0 %vm729_vm1, %v622_v0  ;;  %v1468_v0 = vld [vmem:[%s9982_s28 + $0xb2] sm:$0xff] }
 0x13f   : > { %1340 = vmatprep.mubr.bf16.mxu0 %v9850_v3  ;;  %v1512_v2 = vpack.c.bf16 %v1468_v0, %v1467_v63  ;;  %v2001_v63 = vld [vmem:[%s9982_s28 + $0x53] sm:$0xff]  ;;  %v2002_v0 = vld [vmem:[%s9982_s28 + $0x63] sm:$0xff] }
 0x146   : > { %7859 = vmatmul.mubr.msk.bf16.gmra.mrb[52].mxu0 %vm729_vm1, %v623_v4  ;;  %v1469_v4 = vld [vmem:[%s9982_s28 + $0xc2] sm:$0xff] }
 0x147   : > { %1350 = vmatprep.mubr.bf16.mxu0 %v9850_v3  ;;  %v1513_v6 = vpack.c.bf16 %v1470_v5, %v1469_v4  ;;  %v2004_v4 = vld [vmem:[%s9982_s28 + $0x73] sm:$0xff] }
 0x14e   : > { %7860 = vmatmul.mubr.msk.bf16.gmra.mrb[56].mxu0 %vm729_vm1, %v624_v7  ;;  %v1471_v7 = vld [vmem:[%s9982_s28 + $0xd2] sm:$0xff] }
 0x14f   : > { %1360 = vmatprep.mubr.bf16.mxu0 %v9850_v3  ;;  %v1514_v9 = vpack.c.bf16 %v1472_v8, %v1471_v7  ;;  %v2006_v7 = vld [vmem:[%s9982_s28 + $0x8b] sm:$0xff] }
 0x156   : > { %7861 = vmatmul.mubr.msk.bf16.gmra.mrb[60].mxu0 %vm729_vm1, %v625_v10  ;;  %v1473_v10 = vld [vmem:[%s9982_s28 + $0xea] sm:$0xff] }
 0x157   : > { %1370 = vmatprep.mubr.bf16.mxu0 %v9850_v3  ;;  %v1515_v12 = vpack.c.bf16 %v1474_v11, %v1473_v10  ;;  %v2008_v10 = vld [vmem:[%s9982_s28 + $0xa3] sm:$0xff] }
 0x15e   : > { %7862 = vmatmul.mubr.msk.bf16.gmra.mrb[64].mxu0 %vm729_vm1, %v626_v13  ;;  %v1475_v13 = vld [vmem:[%s9982_s28 + $0x102] sm:$0xff] }
 0x15f   : > { %1380 = vmatprep.mubr.bf16.mxu0 %v9850_v3  ;;  %v1516_v15 = vpack.c.bf16 %v1476_v14, %v1475_v13  ;;  %v9622_v13 = vld [vmem:[%s12676_s0 + $0x90] ss:$8 sps:$4 sm:$0x3f]  }
 0x160   : > { %v2009_v14 = vld [vmem:[%s9982_s28 + $0xab] sm:$0xff] }
 0x166   : > { %7863 = vmatmul.mubr.msk.bf16.gmra.mrb[68].mxu0 %vm729_vm1, %v627_v16  ;;  %v1477_v16 = vld [vmem:[%s9982_s28 + $0x112] sm:$0xff] }
 0x167   : > { %1390 = vmatprep.mubr.bf16.mxu0 %v9850_v3  ;;  %v1517_v18 = vpack.c.bf16 %v1478_v17, %v1477_v16  ;;  %v2703_v16 = vsel %vm802_vm0, %v9622_v13, 0  ;;  %v2544_v13 = vld [vmem:[%s9982_s28 + $0x64] sm:$0xff] }
 0x16e   : > { %7864 = vmatmul.mubr.msk.bf16.gmra.mrb[72].mxu0 %vm729_vm1, %v628_v19  ;;  %v1479_v19 = vld [vmem:[%s9982_s28 + $0x12a] sm:$0xff] }
 0x16f   : > { %1400 = vmatprep.mubr.bf16.mxu0 %v9850_v3  ;;  %v1518_v21 = vpack.c.bf16 %v1480_v20, %v1479_v19  ;;  %v2012_v19 = vld [vmem:[%s9982_s28 + $0xcb] sm:$0xff] }
 0x176   : > { %7865 = vmatmul.mubr.msk.bf16.gmra.mrb[76].mxu0 %vm729_vm1, %v629_v22  ;;  %v1481_v22 = vld [vmem:[%s9982_s28 + $0x142] sm:$0xff] }
 0x177   : > { %1410 = vmatprep.mubr.bf16.mxu0 %v9850_v3  ;;  %v1519_v24 = vpack.c.bf16 %v1482_v23, %v1481_v22  ;;  %v2014_v22 = vld [vmem:[%s9982_s28 + $0xe3] sm:$0xff] }
 0x17e   : > { %7866 = vmatmul.mubr.msk.bf16.gmra.mrb[80].mxu0 %vm729_vm1, %v630_v25  ;;  %v1483_v25 = vld [vmem:[%s9982_s28 + $0x152] sm:$0xff] }
 0x17f   : > { %1420 = vmatprep.mubr.bf16.mxu0 %v9850_v3  ;;  %v1520_v27 = vpack.c.bf16 %v1484_v26, %v1483_v25  ;;  %v2016_v25 = vld [vmem:[%s9982_s28 + $0xf3] sm:$0xff] }
 0x186   : > { %7867 = vmatmul.mubr.msk.bf16.gmra.mrb[84].mxu0 %vm729_vm1, %v631_v28  ;;  %v1485_v28 = vld [vmem:[%s9982_s28 + $0x16a] sm:$0xff] }
 0x187   : > { %1430 = vmatprep.mubr.bf16.mxu0 %v9850_v3  ;;  %v1521_v30 = vpack.c.bf16 %v1486_v29, %v1485_v28  ;;  %v2018_v28 = vld [vmem:[%s9982_s28 + $0x10b] sm:$0xff] }
 0x18e   : > { %7868 = vmatmul.mubr.msk.bf16.gmra.mrb[88].mxu0 %vm729_vm1, %v632_v31  ;;  %v1487_v31 = vld [vmem:[%s9982_s28 + $0x182] sm:$0xff] }
 0x18f   : > { %1440 = vmatprep.mubr.bf16.mxu0 %v9850_v3  ;;  %v1522_v33 = vpack.c.bf16 %v1488_v32, %v1487_v31  ;;  %v2020_v31 = vld [vmem:[%s9982_s28 + $0x123] sm:$0xff] }
 0x196   : > { %7869 = vmatmul.mubr.msk.bf16.gmra.mrb[92].mxu0 %vm729_vm1, %v633_v34  ;;  %v1489_v34 = vld [vmem:[%s9982_s28 + $0x192] sm:$0xff] }
 0x197   : > { %1656 = vmatprep.mubr.bf16.mxu0 %v9850_v3  ;;  %v1523_v36 = vpack.c.bf16 %v1490_v35, %v1489_v34  ;;  %v2022_v34 = vld [vmem:[%s9982_s28 + $0x133] sm:$0xff] }
 0x19e   : > { %7879 = vmatmul.mubr.msk.bf16.vlgmr.msra.gmra.mrb[0].mxu0 %vm729_vm1, %v1504_v37  ;;  %v1491_v37 = vld [vmem:[%s9982_s28 + $0x1aa] sm:$0xff] }
 0x19f   : > { %1666 = vmatprep.mubr.bf16.mxu0 %v9850_v3  ;;  %2167 = vmatpush1.bf16.msra.mxu0 %v9611_v38  ;;  %v1492_v38 = vld [vmem:[%s9982_s28 + $0x1b2] sm:$0xff] }
 0x1a0   : > { %7911 = vmatprep.subr.msk.bf16.mxu0 %vm802_vm0, %v9614_v61  ;;  %v1524_v39 = vpack.c.bf16 %v1492_v38, %v1491_v37  ;;  %v2000_v61 = vld [vmem:[%s9982_s28 + $0x4b] sm:$0xff] }
 0x1a1   : > { %v2024_v37 = vld [vmem:[%s9982_s28 + $0x14b] sm:$0xff] }
 0x1a3   : > { %2169 = vmatpush1.bf16.msra.mxu0 %v2161_v1  ;;  %v2050_v1 = vpack.c.bf16 %v2002_v0, %v2001_v63  ;;  %v2535_v63 = vld [vmem:[%s9982_s28 + $0x4] sm:$0xff]  ;;  %v2536_v0 = vld [vmem:[%s9982_s28 + $0xc] sm:$0xff] }
 0x1a4   : > { %2708 = vmatprep.subr.bf16.mxu0 %v9619_v53 }
 0x1a6   : > { %7880 = vmatmul.mubr.msk.bf16.gmra.mrb[4].mxu0 %vm729_vm1, %v1505_v42  ;;  %v1525_v42 = vpack.c.bf16 %v1494_v41, %v1493_v40  ;;  %v2026_v40 = vld [vmem:[%s9982_s28 + $0x163] sm:$0xff] }
 0x1a7   : > { %1676 = vmatprep.mubr.bf16.mxu0 %v9850_v3 }
 0x1ae   : > { %7881 = vmatmul.mubr.msk.bf16.gmra.mrb[8].mxu0 %vm729_vm1, %v1506_v45  ;;  %v1526_v45 = vpack.c.bf16 %v1496_v44, %v1495_v43  ;;  %v2028_v43 = vld [vmem:[%s9982_s28 + $0x173] sm:$0xff] }
 0x1af   : > { %1686 = vmatprep.mubr.bf16.mxu0 %v9850_v3 }
 0x1b6   : > { %7882 = vmatmul.mubr.msk.bf16.gmra.mrb[12].mxu0 %vm729_vm1, %v1507_v48  ;;  %v1527_v48 = vpack.c.bf16 %v1498_v47, %v1497_v46  ;;  %v2030_v46 = vld [vmem:[%s9982_s28 + $0x18b] sm:$0xff] }
 0x1b7   : > { %1696 = vmatprep.mubr.bf16.mxu0 %v9850_v3 }
 0x1be   : > { %7883 = vmatmul.mubr.msk.bf16.gmra.mrb[16].mxu0 %vm729_vm1, %v1508_v51  ;;  %v2046_v51 = vpack.c.bf16 %v1994_v50, %v1993_v49  ;;  %v2032_v49 = vld [vmem:[%s9982_s28 + $0x1a3] sm:$0xff] }
 0x1bf   : > { %1706 = vmatprep.mubr.bf16.mxu0 %v9850_v3 }
 0x1c6   : > { %7884 = vmatmul.mubr.msk.bf16.gmra.mrb[20].mxu0 %vm729_vm1, %v1509_v54  ;;  %v1995_v54 = vld [vmem:[%s9982_s28 + $0x13] sm:$0xff] }
 0x1c7   : > { %1716 = vmatprep.mubr.bf16.mxu0 %v9850_v3  ;;  %v2047_v56 = vpack.c.bf16 %v1996_v55, %v1995_v54  ;;  %v2035_v54 = vld [vmem:[%s9982_s28 + $0x1c3] sm:$0xff]  ;;  %v2036_v55 = vld [vmem:[%s9982_s28 + $0x1cb] sm:$0xff] }
 0x1ce   : > { %7885 = vmatmul.mubr.msk.bf16.gmra.mrb[24].mxu0 %vm729_vm1, %v1510_v57  ;;  %v1997_v57 = vld [vmem:[%s9982_s28 + $0x2b] sm:$0xff] }
 0x1cf   : > { %1726 = vmatprep.mubr.bf16.mxu0 %v9850_v3  ;;  %v2048_v59 = vpack.c.bf16 %v1998_v58, %v1997_v57  ;;  %v2037_v57 = vld [vmem:[%s9982_s28 + $0x1d3] sm:$0xff]  ;;  %v2038_v58 = vld [vmem:[%s9982_s28 + $0x1e3] sm:$0xff] }
 0x1d6   : > { %7886 = vmatmul.mubr.msk.bf16.gmra.mrb[28].mxu0 %vm729_vm1, %v1511_v60  ;;  %v1999_v60 = vld [vmem:[%s9982_s28 + $0x43] sm:$0xff] }
 0x1d7   : > { %1736 = vmatprep.mubr.bf16.mxu0 %v9850_v3  ;;  %v2049_v62 = vpack.c.bf16 %v2000_v61, %v1999_v60  ;;  %v2039_v60 = vld [vmem:[%s9982_s28 + $0x1eb] sm:$0xff]  ;;  %v2040_v61 = vld [vmem:[%s9982_s28 + $0x1f3] sm:$0xff] }
 0x1de   : > { %7887 = vmatmul.mubr.msk.bf16.gmra.mrb[32].mxu0 %vm729_vm1, %v1512_v2  ;;  %v2003_v2 = vld [vmem:[%s9982_s28 + $0x6b] sm:$0xff] }
 0x1df   : > { %1746 = vmatprep.mubr.bf16.mxu0 %v9850_v3  ;;  %v2051_v5 = vpack.c.bf16 %v2004_v4, %v2003_v2  ;;  %v2537_v2 = vld [vmem:[%s9982_s28 + $0x14] sm:$0xff]  ;;  %v2538_v4 = vld [vmem:[%s9982_s28 + $0x24] sm:$0xff] }
 0x1e6   : > { %7888 = vmatmul.mubr.msk.bf16.gmra.mrb[36].mxu0 %vm729_vm1, %v1513_v6  ;;  %v2005_v6 = vld [vmem:[%s9982_s28 + $0x83] sm:$0xff] }
 0x1e7   : > { %1756 = vmatprep.mubr.bf16.mxu0 %v9850_v3  ;;  %v2052_v8 = vpack.c.bf16 %v2006_v7, %v2005_v6  ;;  %v2539_v6 = vld [vmem:[%s9982_s28 + $0x2c] sm:$0xff]  ;;  %v2540_v7 = vld [vmem:[%s9982_s28 + $0x34] sm:$0xff] }
 0x1ee   : > { %7889 = vmatmul.mubr.msk.bf16.gmra.mrb[40].mxu0 %vm729_vm1, %v1514_v9  ;;  %v2007_v9 = vld [vmem:[%s9982_s28 + $0x93] sm:$0xff] }
 0x1ef   : > { %1766 = vmatprep.mubr.bf16.mxu0 %v9850_v3  ;;  %v2053_v11 = vpack.c.bf16 %v2008_v10, %v2007_v9  ;;  %v2541_v9 = vld [vmem:[%s9982_s28 + $0x44] sm:$0xff]  ;;  %v2542_v10 = vld [vmem:[%s9982_s28 + $0x4c] sm:$0xff] }
 0x1f6   : > { %7890 = vmatmul.mubr.msk.bf16.gmra.mrb[44].mxu0 %vm729_vm1, %v1515_v12  ;;  %v9620_v12 = vld [vmem:[%s12676_s0 + $0x94] ss:$8 sps:$4 sm:$0x3f]  }
 0x1f7   : > { %1776 = vmatprep.mubr.bf16.mxu0 %v9850_v3 }
 0x1fe   : > { %7891 = vmatmul.mubr.msk.bf16.gmra.mrb[48].mxu0 %vm729_vm1, %v1516_v15  ;;  %v2010_v15 = vld [vmem:[%s9982_s28 + $0xb3] sm:$0xff] }
 0x1ff   : > { %1786 = vmatprep.mubr.bf16.mxu0 %v9850_v3  ;;  %v2054_v17 = vpack.c.bf16 %v2010_v15, %v2009_v14  ;;  %v2545_v15 = vld [vmem:[%s9982_s28 + $0x6c] sm:$0xff] }
 0x206   : > { %7892 = vmatmul.mubr.msk.bf16.gmra.mrb[52].mxu0 %vm729_vm1, %v1517_v18  ;;  %v2011_v18 = vld [vmem:[%s9982_s28 + $0xc3] sm:$0xff] }
 0x207   : > { %1796 = vmatprep.mubr.bf16.mxu0 %v9850_v3  ;;  %v2055_v20 = vpack.c.bf16 %v2012_v19, %v2011_v18  ;;  %v2547_v18 = vld [vmem:[%s9982_s28 + $0x84] sm:$0xff]  ;;  %v2548_v19 = vld [vmem:[%s9982_s28 + $0x8c] sm:$0xff] }
 0x20e   : > { %7893 = vmatmul.mubr.msk.bf16.gmra.mrb[56].mxu0 %vm729_vm1, %v1518_v21  ;;  %v2013_v21 = vld [vmem:[%s9982_s28 + $0xd3] sm:$0xff] }
 0x20f   : > { %1806 = vmatprep.mubr.bf16.mxu0 %v9850_v3  ;;  %v2056_v23 = vpack.c.bf16 %v2014_v22, %v2013_v21  ;;  %v2549_v21 = vld [vmem:[%s9982_s28 + $0x94] sm:$0xff]  ;;  %v2550_v22 = vld [vmem:[%s9982_s28 + $0xa4] sm:$0xff] }
 0x216   : > { %7894 = vmatmul.mubr.msk.bf16.gmra.mrb[60].mxu0 %vm729_vm1, %v1519_v24  ;;  %v2015_v24 = vld [vmem:[%s9982_s28 + $0xeb] sm:$0xff] }
 0x217   : > { %1816 = vmatprep.mubr.bf16.mxu0 %v9850_v3  ;;  %v2057_v26 = vpack.c.bf16 %v2016_v25, %v2015_v24  ;;  %v9623_v24 = vld [vmem:[%s12641_s3] sm:$0xff]   ;;  %v2551_v25 = vld [vmem:[%s9982_s28 + $0xac] sm:$0xff] }
 0x218   : > { %3475 = vmatpush1.bf16.msra.mxu1 %v9623_v24 }
 0x219   : > { %3476 = vmatprep.subr.bf16.mxu1 %v9850_v3 }
 0x21e   : > { %7895 = vmatmul.mubr.msk.bf16.gmra.mrb[64].mxu0 %vm729_vm1, %v1520_v27  ;;  %v2017_v27 = vld [vmem:[%s9982_s28 + $0x103] sm:$0xff] }
 0x21f   : > { %1826 = vmatprep.mubr.bf16.mxu0 %v9850_v3  ;;  %v2058_v29 = vpack.c.bf16 %v2018_v28, %v2017_v27  ;;  %v9624_v27 = vld [vmem:[%s12641_s3 + $0x8] sm:$0xff]  }
 0x220   : > { %3477 = vmatpush1.bf16.msra.mxu1 %v9624_v27 }
 0x221   : > { %3478 = vmatprep.subr.bf16.mxu1 %v9850_v3 }
 0x226   : > { %7896 = vmatmul.mubr.msk.bf16.gmra.mrb[68].mxu0 %vm729_vm1, %v1521_v30  ;;  %v2019_v30 = vld [vmem:[%s9982_s28 + $0x113] sm:$0xff] }
 0x227   : > { %1836 = vmatprep.mubr.bf16.mxu0 %v9850_v3  ;;  %v2059_v32 = vpack.c.bf16 %v2020_v31, %v2019_v30  ;;  %v2553_v30 = vld [vmem:[%s9982_s28 + $0xc4] sm:$0xff]  ;;  %v2554_v31 = vld [vmem:[%s9982_s28 + $0xcc] sm:$0xff] }
 0x22e   : > { %7897 = vmatmul.mubr.msk.bf16.gmra.mrb[72].mxu0 %vm729_vm1, %v1522_v33  ;;  %v2021_v33 = vld [vmem:[%s9982_s28 + $0x12b] sm:$0xff] }
 0x22f   : > { %1846 = vmatprep.mubr.bf16.mxu0 %v9850_v3  ;;  %v2060_v35 = vpack.c.bf16 %v2022_v34, %v2021_v33  ;;  %v2597_v33 = vpack.c.bf16 %v2554_v31, %v2553_v30  ;;  %v9627_v34 = vld [vmem:[%s12641_s3 + $0x20] sm:$0xff]  }
 0x236   : > { %7898 = vmatmul.mubr.msk.bf16.gmra.mrb[76].mxu0 %vm729_vm1, %v1523_v36  ;;  %v2023_v36 = vld [vmem:[%s9982_s28 + $0x143] sm:$0xff] }
 0x237   : > { %1856 = vmatprep.mubr.bf16.mxu0 %v9850_v3  ;;  %v2061_v38 = vpack.c.bf16 %v2024_v37, %v2023_v36  ;;  %v2556_v36 = vld [vmem:[%s9982_s28 + $0xe4] sm:$0xff] }
 0x238   : > { %v9628_v37 = vld [vmem:[%s12641_s3 + $0x28] sm:$0xff]  }
 0x23e   : > { %7899 = vmatmul.mubr.msk.bf16.gmra.mrb[80].mxu0 %vm729_vm1, %v1524_v39  ;;  %v2025_v39 = vld [vmem:[%s9982_s28 + $0x153] sm:$0xff] }
 0x23f   : > { %1866 = vmatprep.mubr.bf16.mxu0 %v9850_v3  ;;  %v2062_v41 = vpack.c.bf16 %v2026_v40, %v2025_v39  ;;  %v2557_v39 = vld [vmem:[%s9982_s28 + $0xec] sm:$0xff]  ;;  %v2558_v40 = vld [vmem:[%s9982_s28 + $0xf4] sm:$0xff] }
 0x246   : > { %7900 = vmatmul.mubr.msk.bf16.gmra.mrb[84].mxu0 %vm729_vm1, %v1525_v42  ;;  %v2027_v42 = vld [vmem:[%s9982_s28 + $0x16b] sm:$0xff] }
 0x247   : > { %1876 = vmatprep.mubr.bf16.mxu0 %v9850_v3  ;;  %v2063_v44 = vpack.c.bf16 %v2028_v43, %v2027_v42  ;;  %v2599_v42 = vpack.c.bf16 %v2558_v40, %v2557_v39  ;;  %v9630_v43 = vld [vmem:[%s12641_s3 + $0x38] sm:$0xff]  }
 0x24e   : > { %7901 = vmatmul.mubr.msk.bf16.gmra.mrb[88].mxu0 %vm729_vm1, %v1526_v45  ;;  %v2029_v45 = vld [vmem:[%s9982_s28 + $0x183] sm:$0xff] }
 0x24f   : > { %1886 = vmatprep.mubr.bf16.mxu0 %v9850_v3  ;;  %v2064_v47 = vpack.c.bf16 %v2030_v46, %v2029_v45  ;;  %v2560_v45 = vld [vmem:[%s9982_s28 + $0x10c] sm:$0xff]  ;;  %v9631_v46 = vld [vmem:[%s12641_s3 + $0x40] sm:$0xff]  }
 0x256   : > { %7902 = vmatmul.mubr.msk.bf16.gmra.mrb[92].mxu0 %vm729_vm1, %v1527_v48  ;;  %v2031_v48 = vld [vmem:[%s9982_s28 + $0x193] sm:$0xff] }
 0x257   : > { %2198 = vmatprep.mubr.bf16.mxu0 %v9850_v3  ;;  %v2065_v50 = vpack.c.bf16 %v2032_v49, %v2031_v48  ;;  %v2561_v48 = vld [vmem:[%s9982_s28 + $0x114] sm:$0xff]  ;;  %v2562_v49 = vld [vmem:[%s9982_s28 + $0x124] sm:$0xff] }
 0x25e   : > { %7912 = vmatmul.mubr.msk.bf16.vlgmr.msra.gmra.mrb[0].mxu0 %vm729_vm1, %v2046_v51  ;;  %v2033_v51 = vld [vmem:[%s9982_s28 + $0x1ab] sm:$0xff] }
 0x25f   : > { %2208 = vmatprep.mubr.bf16.mxu0 %v9850_v3  ;;  %2709 = vmatpush1.bf16.msra.mxu0 %v9617_v52  ;;  %v2034_v52 = vld [vmem:[%s9982_s28 + $0x1b3] sm:$0xff] }
 0x260   : > { %7944 = vmatprep.subr.msk.bf16.mxu0 %vm802_vm0, %v9620_v12  ;;  %v2066_v53 = vpack.c.bf16 %v2034_v52, %v2033_v51  ;;  %v2543_v12 = vld [vmem:[%s9982_s28 + $0x54] sm:$0xff]  ;;  %v2563_v51 = vld [vmem:[%s9982_s28 + $0x12c] sm:$0xff] }
 0x261   : > { %v2592_v14 = vpack.c.bf16 %v2544_v13, %v2543_v12  ;;  %v2564_v52 = vld [vmem:[%s9982_s28 + $0x134] sm:$0xff]  ;;  %v2580_v13 = vld [vmem:[%s9982_s28 + $0x1e4] sm:$0xff] }
 0x262   : > { %v2579_v12 = vld [vmem:[%s9982_s28 + $0x1d4] sm:$0xff] }
 0x263   : > { %2711 = vmatpush1.bf16.msra.mxu0 %v2703_v16  ;;  %v2546_v16 = vld [vmem:[%s9982_s28 + $0x74] sm:$0xff] }
 0x266   : > { %7913 = vmatmul.mubr.msk.bf16.gmra.mrb[4].mxu0 %vm729_vm1, %v2047_v56  ;;  %v2067_v56 = vpack.c.bf16 %v2036_v55, %v2035_v54  ;;  %v2565_v54 = vld [vmem:[%s9982_s28 + $0x144] sm:$0xff]  ;;  %v2566_v55 = vld [vmem:[%s9982_s28 + $0x14c] sm:$0xff] }
 0x267   : > { %2218 = vmatprep.mubr.bf16.mxu0 %v9850_v3 }
 0x26e   : > { %7914 = vmatmul.mubr.msk.bf16.gmra.mrb[8].mxu0 %vm729_vm1, %v2048_v59  ;;  %v2068_v59 = vpack.c.bf16 %v2038_v58, %v2037_v57  ;;  %v2567_v57 = vld [vmem:[%s9982_s28 + $0x154] sm:$0xff]  ;;  %v2568_v58 = vld [vmem:[%s9982_s28 + $0x164] sm:$0xff] }
 0x26f   : > { %2228 = vmatprep.mubr.bf16.mxu0 %v9850_v3 }
 0x276   : > { %7915 = vmatmul.mubr.msk.bf16.gmra.mrb[12].mxu0 %vm729_vm1, %v2049_v62  ;;  %v2069_v62 = vpack.c.bf16 %v2040_v61, %v2039_v60  ;;  %v2569_v60 = vld [vmem:[%s9982_s28 + $0x16c] sm:$0xff]  ;;  %v2570_v61 = vld [vmem:[%s9982_s28 + $0x174] sm:$0xff] }
 0x277   : > { %2238 = vmatprep.mubr.bf16.mxu0 %v9850_v3 }
 0x27e   : > { %7916 = vmatmul.mubr.msk.bf16.gmra.mrb[16].mxu0 %vm729_vm1, %v2050_v1  ;;  %v2588_v1 = vpack.c.bf16 %v2536_v0, %v2535_v63  ;;  %v2571_v63 = vld [vmem:[%s9982_s28 + $0x184] sm:$0xff]  ;;  %v2572_v0 = vld [vmem:[%s9982_s28 + $0x18c] sm:$0xff] }
 0x27f   : > { %2248 = vmatprep.mubr.bf16.mxu0 %v9850_v3 }
 0x286   : > { %7917 = vmatmul.mubr.msk.bf16.gmra.mrb[20].mxu0 %vm729_vm1, %v2051_v5  ;;  %v2589_v5 = vpack.c.bf16 %v2538_v4, %v2537_v2  ;;  %v2573_v2 = vld [vmem:[%s9982_s28 + $0x194] sm:$0xff]  ;;  %v2574_v4 = vld [vmem:[%s9982_s28 + $0x1a4] sm:$0xff] }
 0x287   : > { %2258 = vmatprep.mubr.bf16.mxu0 %v9850_v3 }
 0x28e   : > { %7918 = vmatmul.mubr.msk.bf16.gmra.mrb[24].mxu0 %vm729_vm1, %v2052_v8  ;;  %v2590_v8 = vpack.c.bf16 %v2540_v7, %v2539_v6  ;;  %v2575_v6 = vld [vmem:[%s9982_s28 + $0x1ac] sm:$0xff]  ;;  %v2576_v7 = vld [vmem:[%s9982_s28 + $0x1b4] sm:$0xff] }
 0x28f   : > { %2268 = vmatprep.mubr.bf16.mxu0 %v9850_v3 }
 0x296   : > { %7919 = vmatmul.mubr.msk.bf16.gmra.mrb[28].mxu0 %vm729_vm1, %v2053_v11  ;;  %v2591_v11 = vpack.c.bf16 %v2542_v10, %v2541_v9  ;;  %v2577_v9 = vld [vmem:[%s9982_s28 + $0x1c4] sm:$0xff]  ;;  %v2578_v10 = vld [vmem:[%s9982_s28 + $0x1cc] sm:$0xff] }
 0x297   : > { %2278 = vmatprep.mubr.bf16.mxu0 %v9850_v3 }
 0x29e   : > { %7920 = vmatmul.mubr.msk.bf16.gmra.mrb[32].mxu0 %vm729_vm1, %v2054_v17  ;;  %v2593_v17 = vpack.c.bf16 %v2546_v16, %v2545_v15  ;;  %v2581_v15 = vld [vmem:[%s9982_s28 + $0x1ec] sm:$0xff]  ;;  %v2582_v16 = vld [vmem:[%s9982_s28 + $0x1f4] sm:$0xff] }
 0x29f   : > { %2288 = vmatprep.mubr.bf16.mxu0 %v9850_v3 }
 0x2a6   : > { %7921 = vmatmul.mubr.msk.bf16.gmra.mrb[36].mxu0 %vm729_vm1, %v2055_v20  ;;  %v2594_v20 = vpack.c.bf16 %v2548_v19, %v2547_v18  ;;  %v3079_v18 = vlaneseq }
 0x2a7   : > { %2298 = vmatprep.mubr.bf16.mxu0 %v9850_v3 }
 0x2a8   : > { %v3080_v19 = vshrl.u32 %v3079_v18, 7 }
 0x2ae   : > { %7922 = vmatmul.mubr.msk.bf16.gmra.mrb[40].mxu0 %vm729_vm1, %v2056_v23  ;;  %v2595_v23 = vpack.c.bf16 %v2550_v22, %v2549_v21  ;;  %v3077_v21 = vld [vmem:[%s12640_s2] sm:$0x3]  ;;  %v3085_v22 = vsub.s32 1, %v3080_v19 }
 0x2af   : > { %2308 = vmatprep.mubr.bf16.mxu0 %v9850_v3 }
 0x2b0   : > { %v10560_v24 = vrot.slane %v3077_v21, %v3085_v22 }
 0x2b6   : > { %7923 = vmatmul.mubr.msk.bf16.gmra.mrb[44].mxu0 %vm729_vm1, %v2057_v26  ;;  %v2552_v26 = vld [vmem:[%s9982_s28 + $0xb4] sm:$0xff] }
 0x2b7   : > { %2318 = vmatprep.mubr.bf16.mxu0 %v9850_v3  ;;  %v2596_v28 = vpack.c.bf16 %v2552_v26, %v2551_v25 }
 0x2be   : > { %7924 = vmatmul.mubr.msk.bf16.gmra.mrb[48].mxu0 %vm729_vm1, %v2058_v29  ;;  %v9625_v29 = vld [vmem:[%s12641_s3 + $0x10] sm:$0xff]  }
 0x2bf   : > { %2328 = vmatprep.mubr.bf16.mxu0 %v9850_v3  ;;  %3479 = vmatpush1.bf16.msra.mxu1 %v9625_v29 }
 0x2c0   : > { %3480 = vmatprep.subr.bf16.mxu1 %v9850_v3 }
 0x2c6   : > { %7925 = vmatmul.mubr.msk.bf16.gmra.mrb[52].mxu0 %vm729_vm1, %v2059_v32  ;;  %v9626_v32 = vld [vmem:[%s12641_s3 + $0x18] sm:$0xff]  }
 0x2c7   : > { %2338 = vmatprep.mubr.bf16.mxu0 %v9850_v3  ;;  %3481 = vmatpush1.bf16.msra.mxu1 %v9626_v32 }
 0x2c8   : > { %3482 = vmatprep.subr.bf16.mxu1 %v9850_v3 }
 0x2cb   : > { %3483 = vmatpush1.bf16.msra.mxu1 %v9627_v34 }
 0x2cc   : > { %3484 = vmatprep.subr.bf16.mxu1 %v9850_v3 }
 0x2ce   : > { %7926 = vmatmul.mubr.msk.bf16.gmra.mrb[56].mxu0 %vm729_vm1, %v2060_v35  ;;  %v2555_v35 = vld [vmem:[%s9982_s28 + $0xd4] sm:$0xff] }
 0x2cf   : > { %2348 = vmatprep.mubr.bf16.mxu0 %v9850_v3  ;;  %3485 = vmatpush1.bf16.msra.mxu1 %v9628_v37 }
 0x2d0   : > { %3486 = vmatprep.subr.bf16.mxu1 %v9850_v3 }
 0x2d6   : > { %7927 = vmatmul.mubr.msk.bf16.gmra.mrb[60].mxu0 %vm729_vm1, %v2061_v38  ;;  %v2598_v38 = vpack.c.bf16 %v2556_v36, %v2555_v35 }
 0x2d7   : > { %2358 = vmatprep.mubr.bf16.mxu0 %v9850_v3 }
 0x2de   : > { %7928 = vmatmul.mubr.msk.bf16.gmra.mrb[64].mxu0 %vm729_vm1, %v2062_v41  ;;  %v9629_v41 = vld [vmem:[%s12641_s3 + $0x30] sm:$0xff]  }
 0x2df   : > { %2368 = vmatprep.mubr.bf16.mxu0 %v9850_v3  ;;  %3487 = vmatpush1.bf16.msra.mxu1 %v9629_v41 }
 0x2e0   : > { %3488 = vmatprep.subr.bf16.mxu1 %v9850_v3 }
 0x2e3   : > { %3489 = vmatpush1.bf16.msra.mxu1 %v9630_v43 }
 0x2e4   : > { %3490 = vmatprep.subr.bf16.mxu1 %v9850_v3 }
 0x2e6   : > { %7929 = vmatmul.mubr.msk.bf16.gmra.mrb[68].mxu0 %vm729_vm1, %v2063_v44  ;;  %v2559_v44 = vld [vmem:[%s9982_s28 + $0x104] sm:$0xff] }
 0x2e7   : > { %2378 = vmatprep.mubr.bf16.mxu0 %v9850_v3  ;;  %3491 = vmatpush1.bf16.msra.mxu1 %v9631_v46 }
 0x2e8   : > { %3771 = vmatprep.subr.bf16.mxu1 %v9850_v3 }
 0x2ee   : > { %7930 = vmatmul.mubr.msk.bf16.gmra.mrb[72].mxu0 %vm729_vm1, %v2064_v47  ;;  %v2600_v47 = vpack.c.bf16 %v2560_v45, %v2559_v44 }
 0x2ef   : > { %2388 = vmatprep.mubr.bf16.mxu0 %v9850_v3 }
 0x2f6   : > { %7931 = vmatmul.mubr.msk.bf16.gmra.mrb[76].mxu0 %vm729_vm1, %v2065_v50  ;;  %v2601_v50 = vpack.c.bf16 %v2562_v49, %v2561_v48 }
 0x2f7   : > { %2398 = vmatprep.mubr.bf16.mxu0 %v9850_v3 }
 0x2fe   : > { %7932 = vmatmul.mubr.msk.bf16.gmra.mrb[80].mxu0 %vm729_vm1, %v2066_v53  ;;  %v2602_v53 = vpack.c.bf16 %v2564_v52, %v2563_v51 }
 0x2ff   : > { %2408 = vmatprep.mubr.bf16.mxu0 %v9850_v3 }
 0x306   : > { %7933 = vmatmul.mubr.msk.bf16.gmra.mrb[84].mxu0 %vm729_vm1, %v2067_v56  ;;  %v2603_v56 = vpack.c.bf16 %v2566_v55, %v2565_v54 }
 0x307   : > { %2418 = vmatprep.mubr.bf16.mxu0 %v9850_v3 }
 0x30e   : > { %7934 = vmatmul.mubr.msk.bf16.gmra.mrb[88].mxu0 %vm729_vm1, %v2068_v59  ;;  %v2604_v59 = vpack.c.bf16 %v2568_v58, %v2567_v57 }
 0x30f   : > { %2428 = vmatprep.mubr.bf16.mxu0 %v9850_v3 }
 0x316   : > { %7935 = vmatmul.mubr.msk.bf16.gmra.mrb[92].mxu0 %vm729_vm1, %v2069_v62  ;;  %v2605_v62 = vpack.c.bf16 %v2570_v61, %v2569_v60  ;;  %v9632_v60 = vld [vmem:[%s12642_s4] sm:$0xff]  }
 0x317   : > { %2740 = vmatprep.mubr.bf16.mxu0 %v9850_v3 }
 0x31e   : > { %7945 = vmatmul.mubr.msk.bf16.vlgmr.msra.gmra.mrb[0].mxu0 %vm729_vm1, %v2588_v1  ;;  %v2606_v1 = vpack.c.bf16 %v2572_v0, %v2571_v63 }
 0x31f   : > { %2750 = vmatprep.mubr.bf16.mxu0 %v9850_v3 }
 0x326   : > { %7946 = vmatmul.mubr.msk.bf16.gmra.mrb[4].mxu0 %vm729_vm1, %v2589_v5  ;;  %v2607_v5 = vpack.c.bf16 %v2574_v4, %v2573_v2 }
 0x327   : > { %2760 = vmatprep.mubr.bf16.mxu0 %v9850_v3 }
 0x32e   : > { %7947 = vmatmul.mubr.msk.bf16.gmra.mrb[8].mxu0 %vm729_vm1, %v2590_v8  ;;  %v2608_v8 = vpack.c.bf16 %v2576_v7, %v2575_v6 }
 0x32f   : > { %2770 = vmatprep.mubr.bf16.mxu0 %v9850_v3 }
 0x336   : > { %7948 = vmatmul.mubr.msk.bf16.gmra.mrb[12].mxu0 %vm729_vm1, %v2591_v11  ;;  %v2609_v11 = vpack.c.bf16 %v2578_v10, %v2577_v9 }
 0x337   : > { %2780 = vmatprep.mubr.bf16.mxu0 %v9850_v3 }
 0x33e   : > { %7949 = vmatmul.mubr.msk.bf16.gmra.mrb[16].mxu0 %vm729_vm1, %v2592_v14  ;;  %v2610_v14 = vpack.c.bf16 %v2580_v13, %v2579_v12 }
 0x33f   : > { %2790 = vmatprep.mubr.bf16.mxu0 %v9850_v3 }
 0x346   : > { %7950 = vmatmul.mubr.msk.bf16.gmra.mrb[20].mxu0 %vm729_vm1, %v2593_v17  ;;  %v2611_v17 = vpack.c.bf16 %v2582_v16, %v2581_v15 }
 0x347   : > { %2800 = vmatprep.mubr.bf16.mxu0 %v9850_v3 }
 0x34e   : > { %7951 = vmatmul.mubr.msk.bf16.gmra.mrb[24].mxu0 %vm729_vm1, %v2594_v20  ;;  %v3081_v20 = vsub.s32 0, %v3080_v19 }
 0x34f   : > { %2810 = vmatprep.mubr.bf16.mxu0 %v9850_v3 }
 0x356   : > { %7952 = vmatmul.mubr.msk.bf16.gmra.mrb[28].mxu0 %vm729_vm1, %v2595_v23  ;;  %v10558_v23 = vrot.slane %v3077_v21, %v3081_v20 }
 0x357   : > { %2820 = vmatprep.mubr.bf16.mxu0 %v9850_v3 }
 0x35e   : > { %7953 = vmatmul.mubr.msk.bf16.gmra.mrb[32].mxu0 %vm729_vm1, %v2596_v28 }
 0x35f   : > { %2830 = vmatprep.mubr.bf16.mxu0 %v9850_v3 }
 0x366   : > { %7954 = vmatmul.mubr.msk.bf16.gmra.mrb[36].mxu0 %vm729_vm1, %v2597_v33 }
 0x367   : > { %2840 = vmatprep.mubr.bf16.mxu0 %v9850_v3 }
 0x36e   : > { %7955 = vmatmul.mubr.msk.bf16.gmra.mrb[40].mxu0 %vm729_vm1, %v2598_v38 }
 0x36f   : > { %2850 = vmatprep.mubr.bf16.mxu0 %v9850_v3 }
 0x376   : > { %7956 = vmatmul.mubr.msk.bf16.gmra.mrb[44].mxu0 %vm729_vm1, %v2599_v42 }
 0x377   : > { %2860 = vmatprep.mubr.bf16.mxu0 %v9850_v3 }
 0x37e   : > { %7957 = vmatmul.mubr.msk.bf16.gmra.mrb[48].mxu0 %vm729_vm1, %v2600_v47 }
 0x37f   : > { %2870 = vmatprep.mubr.bf16.mxu0 %v9850_v3 }
 0x386   : > { %7958 = vmatmul.mubr.msk.bf16.gmra.mrb[52].mxu0 %vm729_vm1, %v2601_v50 }
 0x387   : > { %2880 = vmatprep.mubr.bf16.mxu0 %v9850_v3 }
 0x38e   : > { %7959 = vmatmul.mubr.msk.bf16.gmra.mrb[56].mxu0 %vm729_vm1, %v2602_v53 }
 0x38f   : > { %2890 = vmatprep.mubr.bf16.mxu0 %v9850_v3 }
 0x396   : > { %7960 = vmatmul.mubr.msk.bf16.gmra.mrb[60].mxu0 %vm729_vm1, %v2603_v56 }
 0x397   : > { %2900 = vmatprep.mubr.bf16.mxu0 %v9850_v3 }
 0x39e   : > { %7961 = vmatmul.mubr.msk.bf16.gmra.mrb[64].mxu0 %vm729_vm1, %v2604_v59 }
 0x39f   : > { %2910 = vmatprep.mubr.bf16.mxu0 %v9850_v3 }
 0x3a6   : > { %7962 = vmatmul.mubr.msk.bf16.gmra.mrb[68].mxu0 %vm729_vm1, %v2605_v62 }
 0x3a7   : > { %2920 = vmatprep.mubr.bf16.mxu0 %v9850_v3 }
 0x3ae   : > { %7963 = vmatmul.mubr.msk.bf16.gmra.mrb[72].mxu0 %vm729_vm1, %v2606_v1 }
 0x3af   : > { %2930 = vmatprep.mubr.bf16.mxu0 %v9850_v3 }
 0x3b6   : > { %7964 = vmatmul.mubr.msk.bf16.gmra.mrb[76].mxu0 %vm729_vm1, %v2607_v5 }
 0x3b7   : > { %2940 = vmatprep.mubr.bf16.mxu0 %v9850_v3 }
 0x3be   : > { %7965 = vmatmul.mubr.msk.bf16.gmra.mrb[80].mxu0 %vm729_vm1, %v2608_v8 }
 0x3bf   : > { %2950 = vmatprep.mubr.bf16.mxu0 %v9850_v3 }
 0x3c6   : > { %7966 = vmatmul.mubr.msk.bf16.gmra.mrb[84].mxu0 %vm729_vm1, %v2609_v11 }
 0x3c7   : > { %2960 = vmatprep.mubr.bf16.mxu0 %v9850_v3 }
 0x3ce   : > { %7967 = vmatmul.mubr.msk.bf16.gmra.mrb[88].mxu0 %vm729_vm1, %v2610_v14 }
 0x3cf   : > { %2970 = vmatprep.mubr.bf16.mxu0 %v9850_v3 }
 0x3d6   : > { %7968 = vmatmul.mubr.msk.bf16.gmra.mrb[92].mxu0 %vm729_vm1, %v2611_v17 }
 0x3f1   : > { %v2742_v25 = vpop.f32.mrb[0].mxu0 }
 0x3f2   : > { %v3089_v26 = vadd.f32 %v10558_v23, %v2742_v25  ;;  %v2744_v27 = vpop.f32.mrb[1].mxu0 }
 0x3f3   : > { %v3090_v28 = vadd.f32 %v10560_v24, %v2744_v27  ;;  %v2746_v29 = vpop.f32.mrb[2].mxu0 }
 0x3f4   : > { %v3091_v30 = vadd.f32 %v10558_v23, %v2746_v29  ;;  %v2748_v31 = vpop.f32.mrb[3].mxu0  ;;  %v3185_v33 = vmax.f32 %v3089_v26, 0.0 }
 0x3f5   : > { %v3092_v32 = vadd.f32 %v10560_v24, %v2748_v31  ;;  %v3186_v35 = vmax.f32 %v3090_v28, 0.0 }
 0x3f6   : > { %v3187_v34 = vmax.f32 %v3091_v30, 0.0 }
 0x3f7   : > { %v3188_v36 = vmax.f32 %v3092_v32, 0.0 }
 0x3f8   : > { %v10566_v37 = vpack.c.bf16 %v3187_v34, %v3185_v33 }
 0x3f9   : > { %v2752_v38 = vpop.f32.mrb[4].mxu0  ;;  %v10568_v39 = vpack.c.bf16 %v3188_v36, %v3186_v35  ;;  %v9633_v36 = vld [vmem:[%s12642_s4 + $0x8] sm:$0xff]  }
 0x3fa   : > { %v3093_v40 = vadd.f32 %v10558_v23, %v2752_v38  ;;  %v2754_v41 = vpop.f32.mrb[5].mxu0 }
 0x3fb   : > { %v3094_v42 = vadd.f32 %v10560_v24, %v2754_v41  ;;  %v2756_v43 = vpop.f32.mrb[6].mxu0  ;;  %7978 = vmatprep.mubr.msk.bf16.mxu1 %vm3401_vm2, %v10568_v39 }
 0x3fc   : > { %v3095_v44 = vadd.f32 %v10558_v23, %v2756_v43  ;;  %v2758_v45 = vpop.f32.mrb[7].mxu0  ;;  %3507 = vmatmul.mubr.bf16.vlgmr.msra.gmra.mrb[0].mxu1 %v10566_v37  ;;  %v3189_v47 = vmax.f32 %v3093_v40, 0.0 }
 0x3fd   : > { %v3096_v46 = vadd.f32 %v10560_v24, %v2758_v45  ;;  %v3190_v49 = vmax.f32 %v3094_v42, 0.0  ;;  %3772 = vmatpush1.bf16.msra.mxu1 %v9632_v60  ;;  %v9635_v60 = vld [vmem:[%s12642_s4 + $0x18] sm:$0xff]  }
 0x3fe   : > { %v3191_v48 = vmax.f32 %v3095_v44, 0.0  ;;  %3773 = vmatprep.subr.bf16.mxu1 %v9850_v3 }
 0x3ff   : > { %v3192_v50 = vmax.f32 %v3096_v46, 0.0 }
 0x400   : > { %v10577_v51 = vpack.c.bf16 %v3191_v48, %v3189_v47 }
 0x401   : > { %v10579_v52 = vpack.c.bf16 %v3192_v50, %v3190_v49  ;;  %v2762_v53 = vpop.f32.mrb[8].mxu0  ;;  %3774 = vmatpush1.bf16.msra.mxu1 %v9633_v36  ;;  %v9634_v50 = vld [vmem:[%s12642_s4 + $0x10] sm:$0xff]  }
 0x402   : > { %v3097_v54 = vadd.f32 %v10558_v23, %v2762_v53  ;;  %v2764_v55 = vpop.f32.mrb[9].mxu0  ;;  %3775 = vmatprep.subr.bf16.mxu1 %v9850_v3 }
 0x403   : > { %v3098_v56 = vadd.f32 %v10560_v24, %v2764_v55  ;;  %v2766_v57 = vpop.f32.mrb[10].mxu0  ;;  %7979 = vmatprep.mubr.msk.bf16.mxu1 %vm3401_vm2, %v10579_v52 }
 0x404   : > { %v3099_v58 = vadd.f32 %v10558_v23, %v2766_v57  ;;  %v2768_v59 = vpop.f32.mrb[11].mxu0  ;;  %3515 = vmatmul.mubr.bf16.gmra.mrb[4].mxu1 %v10577_v51  ;;  %v3193_v62 = vmax.f32 %v3097_v54, 0.0 }
 0x405   : > { %v3100_v61 = vadd.f32 %v10560_v24, %v2768_v59  ;;  %v3194_v0 = vmax.f32 %v3098_v56, 0.0  ;;  %3776 = vmatpush1.bf16.msra.mxu1 %v9634_v50 }
 0x406   : > { %v3195_v63 = vmax.f32 %v3099_v58, 0.0  ;;  %3777 = vmatprep.subr.bf16.mxu1 %v9850_v3 }
 0x407   : > { %v3196_v1 = vmax.f32 %v3100_v61, 0.0 }
 0x408   : > { %v10592_v2 = vpack.c.bf16 %v3195_v63, %v3193_v62 }
 0x409   : > { %v10594_v4 = vpack.c.bf16 %v3196_v1, %v3194_v0  ;;  %v2772_v5 = vpop.f32.mrb[12].mxu0  ;;  %3778 = vmatpush1.bf16.msra.mxu1 %v9635_v60 }
 0x40a   : > { %v3101_v6 = vadd.f32 %v10558_v23, %v2772_v5  ;;  %v2774_v7 = vpop.f32.mrb[13].mxu0  ;;  %3779 = vmatprep.subr.bf16.mxu1 %v9850_v3 }
 0x40b   : > { %v3102_v8 = vadd.f32 %v10560_v24, %v2774_v7  ;;  %v2776_v9 = vpop.f32.mrb[14].mxu0  ;;  %7980 = vmatprep.mubr.msk.bf16.mxu1 %vm3401_vm2, %v10594_v4  ;;  %v9636_v7 = vld [vmem:[%s12642_s4 + $0x20] sm:$0xff]  }
 0x40c   : > { %v3103_v10 = vadd.f32 %v10558_v23, %v2776_v9  ;;  %v2778_v11 = vpop.f32.mrb[15].mxu0  ;;  %3523 = vmatmul.mubr.bf16.gmra.mrb[8].mxu1 %v10592_v2  ;;  %v3197_v13 = vmax.f32 %v3101_v6, 0.0 }
 0x40d   : > { %v3104_v12 = vadd.f32 %v10560_v24, %v2778_v11  ;;  %v3198_v15 = vmax.f32 %v3102_v8, 0.0  ;;  %3780 = vmatpush1.bf16.msra.mxu1 %v9636_v7 }
 0x40e   : > { %v3199_v14 = vmax.f32 %v3103_v10, 0.0  ;;  %3781 = vmatprep.subr.bf16.mxu1 %v9850_v3 }
 0x40f   : > { %v3200_v16 = vmax.f32 %v3104_v12, 0.0 }
 0x410   : > { %v10603_v17 = vpack.c.bf16 %v3199_v14, %v3197_v13 }
 0x411   : > { %v10605_v18 = vpack.c.bf16 %v3200_v16, %v3198_v15  ;;  %v2782_v19 = vpop.f32.mrb[16].mxu0  ;;  %v9637_v15 = vld [vmem:[%s12642_s4 + $0x28] sm:$0xff]  }
 0x412   : > { %v3105_v20 = vadd.f32 %v10558_v23, %v2782_v19  ;;  %v2784_v21 = vpop.f32.mrb[17].mxu0  ;;  %3782 = vmatpush1.bf16.msra.mxu1 %v9637_v15 }
 0x413   : > { %v3106_v22 = vadd.f32 %v10560_v24, %v2784_v21  ;;  %v2786_v25 = vpop.f32.mrb[18].mxu0  ;;  %7981 = vmatprep.mubr.msk.bf16.mxu1 %vm3401_vm2, %v10605_v18  ;;  %3783 = vmatprep.subr.bf16.mxu1 %v9850_v3 }
 0x414   : > { %v3107_v26 = vadd.f32 %v10558_v23, %v2786_v25  ;;  %v2788_v27 = vpop.f32.mrb[19].mxu0  ;;  %3531 = vmatmul.mubr.bf16.gmra.mrb[12].mxu1 %v10603_v17  ;;  %v3201_v29 = vmax.f32 %v3105_v20, 0.0 }
 0x415   : > { %v3108_v28 = vadd.f32 %v10560_v24, %v2788_v27  ;;  %v3202_v31 = vmax.f32 %v3106_v22, 0.0  ;;  %v9638_v27 = vld [vmem:[%s12642_s4 + $0x30] sm:$0xff]  }
 0x416   : > { %v3203_v30 = vmax.f32 %v3107_v26, 0.0  ;;  %3784 = vmatpush1.bf16.msra.mxu1 %v9638_v27 }
 0x417   : > { %v3204_v32 = vmax.f32 %v3108_v28, 0.0  ;;  %3785 = vmatprep.subr.bf16.mxu1 %v9850_v3 }
 0x418   : > { %v10614_v33 = vpack.c.bf16 %v3203_v30, %v3201_v29 }
 0x419   : > { %v10616_v34 = vpack.c.bf16 %v3204_v32, %v3202_v31  ;;  %v2792_v35 = vpop.f32.mrb[20].mxu0 }
 0x41a   : > { %v3109_v38 = vadd.f32 %v10558_v23, %v2792_v35  ;;  %v2794_v40 = vpop.f32.mrb[21].mxu0 }
 0x41b   : > { %v3110_v41 = vadd.f32 %v10560_v24, %v2794_v40  ;;  %v2796_v42 = vpop.f32.mrb[22].mxu0  ;;  %7982 = vmatprep.mubr.msk.bf16.mxu1 %vm3401_vm2, %v10616_v34 }
 0x41c   : > { %v3111_v43 = vadd.f32 %v10558_v23, %v2796_v42  ;;  %v2798_v44 = vpop.f32.mrb[23].mxu0  ;;  %3539 = vmatmul.mubr.bf16.gmra.mrb[16].mxu1 %v10614_v33  ;;  %v3205_v46 = vmax.f32 %v3109_v38, 0.0  ;;  %v9639_v38 = vld [vmem:[%s12642_s4 + $0x38] sm:$0xff]  }
 0x41d   : > { %v3112_v45 = vadd.f32 %v10560_v24, %v2798_v44  ;;  %v3206_v48 = vmax.f32 %v3110_v41, 0.0  ;;  %3786 = vmatpush1.bf16.msra.mxu1 %v9639_v38 }
 0x41e   : > { %v3207_v47 = vmax.f32 %v3111_v43, 0.0  ;;  %v9640_v43 = vld [vmem:[%s12642_s4 + $0x40] sm:$0xff]   ;;  %3787 = vmatprep.subr.bf16.mxu1 %v9850_v3 }
 0x41f   : > { %v3208_v49 = vmax.f32 %v3112_v45, 0.0 }
 0x420   : > { %v10632_v53 = vpack.c.bf16 %v3207_v47, %v3205_v46 }
 0x421   : > { %v10634_v54 = vpack.c.bf16 %v3208_v49, %v3206_v48  ;;  %v2802_v55 = vpop.f32.mrb[24].mxu0  ;;  %3788 = vmatpush1.bf16.msra.mxu1 %v9640_v43 }
 0x422   : > { %v3113_v56 = vadd.f32 %v10558_v23, %v2802_v55  ;;  %v2804_v57 = vpop.f32.mrb[25].mxu0 }
 0x423   : > { %v3114_v58 = vadd.f32 %v10560_v24, %v2804_v57  ;;  %v2806_v59 = vpop.f32.mrb[26].mxu0  ;;  %7983 = vmatprep.mubr.msk.bf16.mxu1 %vm3401_vm2, %v10634_v54 }
 0x424   : > { %v3115_v61 = vadd.f32 %v10558_v23, %v2806_v59  ;;  %v2808_v62 = vpop.f32.mrb[27].mxu0  ;;  %3547 = vmatmul.mubr.bf16.gmra.mrb[20].mxu1 %v10632_v53  ;;  %v3209_v0 = vmax.f32 %v3113_v56, 0.0 }
 0x425   : > { %v3116_v63 = vadd.f32 %v10560_v24, %v2808_v62  ;;  %v3210_v5 = vmax.f32 %v3114_v58, 0.0 }
 0x426   : > { %v3211_v1 = vmax.f32 %v3115_v61, 0.0 }
 0x427   : > { %v3212_v6 = vmax.f32 %v3116_v63, 0.0 }
 0x428   : > { %v10651_v8 = vpack.c.bf16 %v3211_v1, %v3209_v0 }
 0x429   : > { %v10653_v9 = vpack.c.bf16 %v3212_v6, %v3210_v5  ;;  %v2812_v10 = vpop.f32.mrb[28].mxu0 }
 0x42a   : > { %v3117_v11 = vadd.f32 %v10558_v23, %v2812_v10  ;;  %v2814_v12 = vpop.f32.mrb[29].mxu0 }
 0x42b   : > { %v3118_v13 = vadd.f32 %v10560_v24, %v2814_v12  ;;  %v2816_v14 = vpop.f32.mrb[30].mxu0  ;;  %7984 = vmatprep.mubr.msk.bf16.mxu1 %vm3401_vm2, %v10653_v9 }
 0x42c   : > { %v3119_v16 = vadd.f32 %v10558_v23, %v2816_v14  ;;  %v2818_v19 = vpop.f32.mrb[31].mxu0  ;;  %3555 = vmatmul.mubr.bf16.gmra.mrb[24].mxu1 %v10651_v8  ;;  %v3213_v21 = vmax.f32 %v3117_v11, 0.0 }
 0x42d   : > { %v3120_v20 = vadd.f32 %v10560_v24, %v2818_v19  ;;  %v3214_v25 = vmax.f32 %v3118_v13, 0.0 }
 0x42e   : > { %v3215_v22 = vmax.f32 %v3119_v16, 0.0 }
 0x42f   : > { %v3216_v26 = vmax.f32 %v3120_v20, 0.0 }
 0x430   : > { %v10670_v28 = vpack.c.bf16 %v3215_v22, %v3213_v21 }
 0x431   : > { %v10672_v29 = vpack.c.bf16 %v3216_v26, %v3214_v25  ;;  %v2822_v30 = vpop.f32.mrb[32].mxu0 }
 0x432   : > { %v3121_v31 = vadd.f32 %v10558_v23, %v2822_v30  ;;  %v2824_v32 = vpop.f32.mrb[33].mxu0 }
 0x433   : > { %v3122_v35 = vadd.f32 %v10560_v24, %v2824_v32  ;;  %v2826_v36 = vpop.f32.mrb[34].mxu0  ;;  %7985 = vmatprep.mubr.msk.bf16.mxu1 %vm3401_vm2, %v10672_v29 }
 0x434   : > { %v3123_v40 = vadd.f32 %v10558_v23, %v2826_v36  ;;  %v2828_v41 = vpop.f32.mrb[35].mxu0  ;;  %3563 = vmatmul.mubr.bf16.gmra.mrb[28].mxu1 %v10670_v28  ;;  %v3217_v44 = vmax.f32 %v3121_v31, 0.0 }
 0x435   : > { %v3124_v42 = vadd.f32 %v10560_v24, %v2828_v41  ;;  %v3218_v46 = vmax.f32 %v3122_v35, 0.0 }
 0x436   : > { %v3219_v45 = vmax.f32 %v3123_v40, 0.0 }
 0x437   : > { %v3220_v47 = vmax.f32 %v3124_v42, 0.0 }
 0x438   : > { %v10689_v48 = vpack.c.bf16 %v3219_v45, %v3217_v44 }
 0x439   : > { %v10691_v49 = vpack.c.bf16 %v3220_v47, %v3218_v46  ;;  %v2832_v50 = vpop.f32.mrb[36].mxu0 }
 0x43a   : > { %v3125_v55 = vadd.f32 %v10558_v23, %v2832_v50  ;;  %v2834_v56 = vpop.f32.mrb[37].mxu0 }
 0x43b   : > { %v3126_v57 = vadd.f32 %v10560_v24, %v2834_v56  ;;  %v2836_v58 = vpop.f32.mrb[38].mxu0  ;;  %7986 = vmatprep.mubr.msk.bf16.mxu1 %vm3401_vm2, %v10691_v49 }
 0x43c   : > { %v3127_v59 = vadd.f32 %v10558_v23, %v2836_v58  ;;  %v2838_v3 = vpop.f32.mrb[39].mxu0  ;;  %3571 = vmatmul.mubr.bf16.gmra.mrb[32].mxu1 %v10689_v48  ;;  %v3221_v61 = vmax.f32 %v3125_v55, 0.0 }
 0x43d   : > { %v3128_v60 = vadd.f32 %v10560_v24, %v2838_v3  ;;  %v3222_v63 = vmax.f32 %v3126_v57, 0.0 }
 0x43e   : > { %v3223_v62 = vmax.f32 %v3127_v59, 0.0 }
 0x43f   : > { %v3224_v0 = vmax.f32 %v3128_v60, 0.0 }
 0x440   : > { %v10700_v1 = vpack.c.bf16 %v3223_v62, %v3221_v61 }
 0x441   : > { %v10702_v5 = vpack.c.bf16 %v3224_v0, %v3222_v63  ;;  %v2842_v6 = vpop.f32.mrb[40].mxu0 }
 0x442   : > { %v3129_v7 = vadd.f32 %v10558_v23, %v2842_v6  ;;  %v2844_v10 = vpop.f32.mrb[41].mxu0 }
 0x443   : > { %v3130_v11 = vadd.f32 %v10560_v24, %v2844_v10  ;;  %v2846_v12 = vpop.f32.mrb[42].mxu0  ;;  %7987 = vmatprep.mubr.msk.bf16.mxu1 %vm3401_vm2, %v10702_v5 }
 0x444   : > { %v3131_v13 = vadd.f32 %v10558_v23, %v2846_v12  ;;  %v2848_v14 = vpop.f32.mrb[43].mxu0  ;;  %3579 = vmatmul.mubr.bf16.gmra.mrb[36].mxu1 %v10700_v1  ;;  %v3225_v16 = vmax.f32 %v3129_v7, 0.0 }
 0x445   : > { %v3132_v15 = vadd.f32 %v10560_v24, %v2848_v14  ;;  %v3226_v20 = vmax.f32 %v3130_v11, 0.0 }
 0x446   : > { %v3227_v19 = vmax.f32 %v3131_v13, 0.0 }
 0x447   : > { %v3228_v21 = vmax.f32 %v3132_v15, 0.0 }
 0x448   : > { %v10711_v22 = vpack.c.bf16 %v3227_v19, %v3225_v16 }
 0x449   : > { %v10713_v25 = vpack.c.bf16 %v3228_v21, %v3226_v20  ;;  %v2852_v26 = vpop.f32.mrb[44].mxu0 }
 0x44a   : > { %v3133_v27 = vadd.f32 %v10558_v23, %v2852_v26  ;;  %v2854_v30 = vpop.f32.mrb[45].mxu0 }
 0x44b   : > { %v3134_v31 = vadd.f32 %v10560_v24, %v2854_v30  ;;  %v2856_v32 = vpop.f32.mrb[46].mxu0  ;;  %7988 = vmatprep.mubr.msk.bf16.mxu1 %vm3401_vm2, %v10713_v25 }
 0x44c   : > { %v3135_v35 = vadd.f32 %v10558_v23, %v2856_v32  ;;  %v2858_v36 = vpop.f32.mrb[47].mxu0  ;;  %3587 = vmatmul.mubr.bf16.gmra.mrb[40].mxu1 %v10711_v22  ;;  %v3229_v40 = vmax.f32 %v3133_v27, 0.0 }
 0x44d   : > { %v3136_v38 = vadd.f32 %v10560_v24, %v2858_v36  ;;  %v3230_v42 = vmax.f32 %v3134_v31, 0.0 }
 0x44e   : > { %v3231_v41 = vmax.f32 %v3135_v35, 0.0 }
 0x44f   : > { %v3232_v43 = vmax.f32 %v3136_v38, 0.0 }
 0x450   : > { %v10722_v44 = vpack.c.bf16 %v3231_v41, %v3229_v40 }
 0x451   : > { %v10724_v45 = vpack.c.bf16 %v3232_v43, %v3230_v42  ;;  %v2862_v46 = vpop.f32.mrb[48].mxu0 }
 0x452   : > { %v3137_v47 = vadd.f32 %v10558_v23, %v2862_v46  ;;  %v2864_v50 = vpop.f32.mrb[49].mxu0 }
 0x453   : > { %v3138_v55 = vadd.f32 %v10560_v24, %v2864_v50  ;;  %v2866_v56 = vpop.f32.mrb[50].mxu0  ;;  %7989 = vmatprep.mubr.msk.bf16.mxu1 %vm3401_vm2, %v10724_v45 }
 0x454   : > { %v3139_v57 = vadd.f32 %v10558_v23, %v2866_v56  ;;  %v2868_v58 = vpop.f32.mrb[51].mxu0  ;;  %3595 = vmatmul.mubr.bf16.gmra.mrb[44].mxu1 %v10722_v44  ;;  %v3233_v3 = vmax.f32 %v3137_v47, 0.0 }
 0x455   : > { %v3140_v59 = vadd.f32 %v10560_v24, %v2868_v58  ;;  %v3234_v61 = vmax.f32 %v3138_v55, 0.0 }
 0x456   : > { %v3235_v60 = vmax.f32 %v3139_v57, 0.0 }
 0x457   : > { %v3236_v62 = vmax.f32 %v3140_v59, 0.0 }
 0x458   : > { %v10733_v63 = vpack.c.bf16 %v3235_v60, %v3233_v3 }
 0x459   : > { %v10735_v0 = vpack.c.bf16 %v3236_v62, %v3234_v61  ;;  %v2872_v6 = vpop.f32.mrb[52].mxu0 }
 0x45a   : > { %v3141_v7 = vadd.f32 %v10558_v23, %v2872_v6  ;;  %v2874_v10 = vpop.f32.mrb[53].mxu0 }
 0x45b   : > { %v3142_v11 = vadd.f32 %v10560_v24, %v2874_v10  ;;  %v2876_v12 = vpop.f32.mrb[54].mxu0  ;;  %7990 = vmatprep.mubr.msk.bf16.mxu1 %vm3401_vm2, %v10735_v0 }
 0x45c   : > { %v3143_v13 = vadd.f32 %v10558_v23, %v2876_v12  ;;  %v2878_v14 = vpop.f32.mrb[55].mxu0  ;;  %3603 = vmatmul.mubr.bf16.gmra.mrb[48].mxu1 %v10733_v63  ;;  %v3237_v16 = vmax.f32 %v3141_v7, 0.0 }
 0x45d   : > { %v3144_v15 = vadd.f32 %v10560_v24, %v2878_v14  ;;  %v3238_v20 = vmax.f32 %v3142_v11, 0.0 }
 0x45e   : > { %v3239_v19 = vmax.f32 %v3143_v13, 0.0 }
 0x45f   : > { %v3240_v21 = vmax.f32 %v3144_v15, 0.0 }
 0x460   : > { %v10744_v26 = vpack.c.bf16 %v3239_v19, %v3237_v16 }
 0x461   : > { %v10746_v27 = vpack.c.bf16 %v3240_v21, %v3238_v20  ;;  %v2882_v30 = vpop.f32.mrb[56].mxu0 }
 0x462   : > { %v3145_v31 = vadd.f32 %v10558_v23, %v2882_v30  ;;  %v2884_v32 = vpop.f32.mrb[57].mxu0 }
 0x463   : > { %v3146_v35 = vadd.f32 %v10560_v24, %v2884_v32  ;;  %v2886_v36 = vpop.f32.mrb[58].mxu0  ;;  %7991 = vmatprep.mubr.msk.bf16.mxu1 %vm3401_vm2, %v10746_v27 }
 0x464   : > { %v3147_v38 = vadd.f32 %v10558_v23, %v2886_v36  ;;  %v2888_v40 = vpop.f32.mrb[59].mxu0  ;;  %3611 = vmatmul.mubr.bf16.gmra.mrb[52].mxu1 %v10744_v26  ;;  %v3241_v42 = vmax.f32 %v3145_v31, 0.0 }
 0x465   : > { %v3148_v41 = vadd.f32 %v10560_v24, %v2888_v40  ;;  %v3242_v46 = vmax.f32 %v3146_v35, 0.0 }
 0x466   : > { %v3243_v43 = vmax.f32 %v3147_v38, 0.0 }
 0x467   : > { %v3244_v47 = vmax.f32 %v3148_v41, 0.0 }
 0x468   : > { %v10755_v50 = vpack.c.bf16 %v3243_v43, %v3241_v42 }
 0x469   : > { %v10757_v55 = vpack.c.bf16 %v3244_v47, %v3242_v46  ;;  %v2892_v56 = vpop.f32.mrb[60].mxu0 }
 0x46a   : > { %v3149_v57 = vadd.f32 %v10558_v23, %v2892_v56  ;;  %v2894_v58 = vpop.f32.mrb[61].mxu0 }
 0x46b   : > { %v3150_v59 = vadd.f32 %v10560_v24, %v2894_v58  ;;  %v2896_v3 = vpop.f32.mrb[62].mxu0  ;;  %7992 = vmatprep.mubr.msk.bf16.mxu1 %vm3401_vm2, %v10757_v55 }
 0x46c   : > { %v3151_v60 = vadd.f32 %v10558_v23, %v2896_v3  ;;  %v2898_v61 = vpop.f32.mrb[63].mxu0  ;;  %3619 = vmatmul.mubr.bf16.gmra.mrb[56].mxu1 %v10755_v50  ;;  %v3245_v6 = vmax.f32 %v3149_v57, 0.0 }
 0x46d   : > { %v3152_v62 = vadd.f32 %v10560_v24, %v2898_v61  ;;  %v3246_v10 = vmax.f32 %v3150_v59, 0.0 }
 0x46e   : > { %v3247_v7 = vmax.f32 %v3151_v60, 0.0 }
 0x46f   : > { %v3248_v11 = vmax.f32 %v3152_v62, 0.0 }
 0x470   : > { %v10766_v12 = vpack.c.bf16 %v3247_v7, %v3245_v6 }
 0x471   : > { %v10768_v13 = vpack.c.bf16 %v3248_v11, %v3246_v10  ;;  %v2902_v14 = vpop.f32.mrb[64].mxu0 }
 0x472   : > { %v3153_v15 = vadd.f32 %v10558_v23, %v2902_v14  ;;  %v2904_v16 = vpop.f32.mrb[65].mxu0 }
 0x473   : > { %v3154_v19 = vadd.f32 %v10560_v24, %v2904_v16  ;;  %v2906_v20 = vpop.f32.mrb[66].mxu0  ;;  %7993 = vmatprep.mubr.msk.bf16.mxu1 %vm3401_vm2, %v10768_v13 }
 0x474   : > { %v3155_v21 = vadd.f32 %v10558_v23, %v2906_v20  ;;  %v2908_v30 = vpop.f32.mrb[67].mxu0  ;;  %3627 = vmatmul.mubr.bf16.gmra.mrb[60].mxu1 %v10766_v12  ;;  %v3249_v32 = vmax.f32 %v3153_v15, 0.0 }
 0x475   : > { %v3156_v31 = vadd.f32 %v10560_v24, %v2908_v30  ;;  %v3250_v36 = vmax.f32 %v3154_v19, 0.0 }
 0x476   : > { %v3251_v35 = vmax.f32 %v3155_v21, 0.0 }
 0x477   : > { %v3252_v38 = vmax.f32 %v3156_v31, 0.0 }
 0x478   : > { %v10777_v40 = vpack.c.bf16 %v3251_v35, %v3249_v32 }
 0x479   : > { %v10779_v41 = vpack.c.bf16 %v3252_v38, %v3250_v36  ;;  %v2912_v42 = vpop.f32.mrb[68].mxu0 }
 0x47a   : > { %v3157_v43 = vadd.f32 %v10558_v23, %v2912_v42  ;;  %v2914_v46 = vpop.f32.mrb[69].mxu0 }
 0x47b   : > { %v3158_v47 = vadd.f32 %v10560_v24, %v2914_v46  ;;  %v2916_v56 = vpop.f32.mrb[70].mxu0  ;;  %7994 = vmatprep.mubr.msk.bf16.mxu1 %vm3401_vm2, %v10779_v41 }
 0x47c   : > { %v3159_v57 = vadd.f32 %v10558_v23, %v2916_v56  ;;  %v2918_v58 = vpop.f32.mrb[71].mxu0  ;;  %3635 = vmatmul.mubr.bf16.gmra.mrb[64].mxu1 %v10777_v40  ;;  %v3253_v3 = vmax.f32 %v3157_v43, 0.0 }
 0x47d   : > { %v3160_v59 = vadd.f32 %v10560_v24, %v2918_v58  ;;  %v3254_v61 = vmax.f32 %v3158_v47, 0.0 }
 0x47e   : > { %v3255_v60 = vmax.f32 %v3159_v57, 0.0 }
 0x47f   : > { %v3256_v62 = vmax.f32 %v3160_v59, 0.0 }
 0x480   : > { %v10788_v6 = vpack.c.bf16 %v3255_v60, %v3253_v3 }
 0x481   : > { %v10790_v7 = vpack.c.bf16 %v3256_v62, %v3254_v61  ;;  %v2922_v10 = vpop.f32.mrb[72].mxu0 }
 0x482   : > { %v3161_v11 = vadd.f32 %v10558_v23, %v2922_v10  ;;  %v2924_v14 = vpop.f32.mrb[73].mxu0 }
 0x483   : > { %v3162_v15 = vadd.f32 %v10560_v24, %v2924_v14  ;;  %v2926_v16 = vpop.f32.mrb[74].mxu0  ;;  %7995 = vmatprep.mubr.msk.bf16.mxu1 %vm3401_vm2, %v10790_v7 }
 0x484   : > { %v3163_v19 = vadd.f32 %v10558_v23, %v2926_v16  ;;  %v2928_v20 = vpop.f32.mrb[75].mxu0  ;;  %3643 = vmatmul.mubr.bf16.gmra.mrb[68].mxu1 %v10788_v6  ;;  %v3257_v30 = vmax.f32 %v3161_v11, 0.0 }
 0x485   : > { %v3164_v21 = vadd.f32 %v10560_v24, %v2928_v20  ;;  %v3258_v32 = vmax.f32 %v3162_v15, 0.0 }
 0x486   : > { %v3259_v31 = vmax.f32 %v3163_v19, 0.0 }
 0x487   : > { %v3260_v35 = vmax.f32 %v3164_v21, 0.0 }
 0x488   : > { %v10799_v36 = vpack.c.bf16 %v3259_v31, %v3257_v30 }
 0x489   : > { %v10801_v38 = vpack.c.bf16 %v3260_v35, %v3258_v32  ;;  %v2932_v42 = vpop.f32.mrb[76].mxu0 }
 0x48a   : > { %v3165_v43 = vadd.f32 %v10558_v23, %v2932_v42  ;;  %v2934_v46 = vpop.f32.mrb[77].mxu0 }
 0x48b   : > { %v3166_v47 = vadd.f32 %v10560_v24, %v2934_v46  ;;  %v2936_v56 = vpop.f32.mrb[78].mxu0  ;;  %7996 = vmatprep.mubr.msk.bf16.mxu1 %vm3401_vm2, %v10801_v38 }
 0x48c   : > { %v3167_v57 = vadd.f32 %v10558_v23, %v2936_v56  ;;  %v2938_v58 = vpop.f32.mrb[79].mxu0  ;;  %3651 = vmatmul.mubr.bf16.gmra.mrb[72].mxu1 %v10799_v36  ;;  %v3261_v3 = vmax.f32 %v3165_v43, 0.0 }
 0x48d   : > { %v3168_v59 = vadd.f32 %v10560_v24, %v2938_v58  ;;  %v3262_v61 = vmax.f32 %v3166_v47, 0.0 }
 0x48e   : > { %v3263_v60 = vmax.f32 %v3167_v57, 0.0 }
 0x48f   : > { %v3264_v62 = vmax.f32 %v3168_v59, 0.0 }
 0x490   : > { %v10810_v10 = vpack.c.bf16 %v3263_v60, %v3261_v3 }
 0x491   : > { %v10812_v11 = vpack.c.bf16 %v3264_v62, %v3262_v61  ;;  %v2942_v14 = vpop.f32.mrb[80].mxu0 }
 0x492   : > { %v3169_v15 = vadd.f32 %v10558_v23, %v2942_v14  ;;  %v2944_v16 = vpop.f32.mrb[81].mxu0 }
 0x493   : > { %v3170_v19 = vadd.f32 %v10560_v24, %v2944_v16  ;;  %v2946_v20 = vpop.f32.mrb[82].mxu0  ;;  %7997 = vmatprep.mubr.msk.bf16.mxu1 %vm3401_vm2, %v10812_v11 }
 0x494   : > { %v3171_v21 = vadd.f32 %v10558_v23, %v2946_v20  ;;  %v2948_v30 = vpop.f32.mrb[83].mxu0  ;;  %3659 = vmatmul.mubr.bf16.gmra.mrb[76].mxu1 %v10810_v10  ;;  %v3265_v32 = vmax.f32 %v3169_v15, 0.0 }
 0x495   : > { %v3172_v31 = vadd.f32 %v10560_v24, %v2948_v30  ;;  %v3266_v42 = vmax.f32 %v3170_v19, 0.0 }
 0x496   : > { %v3267_v35 = vmax.f32 %v3171_v21, 0.0 }
 0x497   : > { %v3268_v43 = vmax.f32 %v3172_v31, 0.0 }
 0x498   : > { %v10821_v46 = vpack.c.bf16 %v3267_v35, %v3265_v32 }
 0x499   : > { %v10823_v47 = vpack.c.bf16 %v3268_v43, %v3266_v42  ;;  %v2952_v56 = vpop.f32.mrb[84].mxu0 }
 0x49a   : > { %v3173_v57 = vadd.f32 %v10558_v23, %v2952_v56  ;;  %v2954_v58 = vpop.f32.mrb[85].mxu0 }
 0x49b   : > { %v3174_v59 = vadd.f32 %v10560_v24, %v2954_v58  ;;  %v2956_v3 = vpop.f32.mrb[86].mxu0  ;;  %7998 = vmatprep.mubr.msk.bf16.mxu1 %vm3401_vm2, %v10823_v47 }
 0x49c   : > { %v3175_v60 = vadd.f32 %v10558_v23, %v2956_v3  ;;  %v2958_v61 = vpop.f32.mrb[87].mxu0  ;;  %3667 = vmatmul.mubr.bf16.gmra.mrb[80].mxu1 %v10821_v46  ;;  %v3269_v14 = vmax.f32 %v3173_v57, 0.0 }
 0x49d   : > { %v3176_v62 = vadd.f32 %v10560_v24, %v2958_v61  ;;  %v3270_v16 = vmax.f32 %v3174_v59, 0.0 }
 0x49e   : > { %v3271_v15 = vmax.f32 %v3175_v60, 0.0 }
 0x49f   : > { %v3272_v19 = vmax.f32 %v3176_v62, 0.0 }
 0x4a0   : > { %v10832_v20 = vpack.c.bf16 %v3271_v15, %v3269_v14 }
 0x4a1   : > { %v10834_v21 = vpack.c.bf16 %v3272_v19, %v3270_v16  ;;  %v2962_v30 = vpop.f32.mrb[88].mxu0 }
 0x4a2   : > { %v3177_v31 = vadd.f32 %v10558_v23, %v2962_v30  ;;  %v2964_v32 = vpop.f32.mrb[89].mxu0 }
 0x4a3   : > { %v3178_v35 = vadd.f32 %v10560_v24, %v2964_v32  ;;  %v2966_v42 = vpop.f32.mrb[90].mxu0  ;;  %7999 = vmatprep.mubr.msk.bf16.mxu1 %vm3401_vm2, %v10834_v21 }
 0x4a4   : > { %v3179_v43 = vadd.f32 %v10558_v23, %v2966_v42  ;;  %v2968_v56 = vpop.f32.mrb[91].mxu0  ;;  %3675 = vmatmul.mubr.bf16.gmra.mrb[84].mxu1 %v10832_v20  ;;  %v3273_v58 = vmax.f32 %v3177_v31, 0.0 }
 0x4a5   : > { %v3180_v57 = vadd.f32 %v10560_v24, %v2968_v56  ;;  %v3274_v3 = vmax.f32 %v3178_v35, 0.0 }
 0x4a6   : > { %v3275_v59 = vmax.f32 %v3179_v43, 0.0 }
 0x4a7   : > { %v3276_v60 = vmax.f32 %v3180_v57, 0.0 }
 0x4a8   : > { %v10843_v61 = vpack.c.bf16 %v3275_v59, %v3273_v58 }
 0x4a9   : > { %v10845_v62 = vpack.c.bf16 %v3276_v60, %v3274_v3  ;;  %v2972_v14 = vpop.f32.mrb[92].mxu0 }
 0x4aa   : > { %v3181_v15 = vadd.f32 %v10558_v23, %v2972_v14  ;;  %v2974_v16 = vpop.f32.mrb[93].mxu0 }
 0x4ab   : > { %v3182_v19 = vadd.f32 %v10560_v24, %v2974_v16  ;;  %v2976_v30 = vpop.f32.mrb[94].mxu0  ;;  %8000 = vmatprep.mubr.msk.bf16.mxu1 %vm3401_vm2, %v10845_v62 }
 0x4ac   : > { %v3183_v32 = vadd.f32 %v10558_v23, %v2976_v30  ;;  %v2978_v31 = vpop.f32.mrb[95].mxu0  ;;  %3683 = vmatmul.mubr.bf16.gmra.mrb[88].mxu1 %v10843_v61  ;;  %v3277_v42 = vmax.f32 %v3181_v15, 0.0 }
 0x4ad   : > { %v3184_v35 = vadd.f32 %v10560_v24, %v2978_v31  ;;  %v3278_v56 = vmax.f32 %v3182_v19, 0.0 }
 0x4ae   : > { %v3279_v43 = vmax.f32 %v3183_v32, 0.0 }
 0x4af   : > { %v3280_v57 = vmax.f32 %v3184_v35, 0.0 }
 0x4b0   : > { %v10854_v58 = vpack.c.bf16 %v3279_v43, %v3277_v42 }
 0x4b1   : > { %v10856_v59 = vpack.c.bf16 %v3280_v57, %v3278_v56 }
 0x4b3   : > { %8001 = vmatprep.mubr.msk.bf16.mxu1 %vm3401_vm2, %v10856_v59 }
 0x4b4   : > { %3691 = vmatmul.mubr.bf16.gmra.mrb[92].mxu1 %v10854_v58 }
 0x4b5   : > { %8011 = vmatprep.mubr.msk.bf16.mxu1 %vm3401_vm2, %v10568_v39 }
 0x4bc   : > { %3804 = vmatmul.mubr.bf16.vlgmr.msra.gmra.mrb[96].mxu1 %v10566_v37 }
 0x4bd   : > { %8012 = vmatprep.mubr.msk.bf16.mxu1 %vm3401_vm2, %v10579_v52 }
 0x4c4   : > { %3812 = vmatmul.mubr.bf16.gmra.mrb[100].mxu1 %v10577_v51 }
 0x4c5   : > { %8013 = vmatprep.mubr.msk.bf16.mxu1 %vm3401_vm2, %v10594_v4 }
 0x4cc   : > { %3820 = vmatmul.mubr.bf16.gmra.mrb[104].mxu1 %v10592_v2 }
 0x4cd   : > { %8014 = vmatprep.mubr.msk.bf16.mxu1 %vm3401_vm2, %v10605_v18 }
 0x4cf   : > { %v10872_v23 = vpop.f32.mrb[0].mxu1 }
 0x4d0   : > { %v3510_v24 = vpop.f32.mrb[1].mxu1 }
 0x4d1   : > { %v10874_v3 = vpop.f32.mrb[2].mxu1 }
 0x4d2   : > { %v3513_v39 = vpop.f32.mrb[3].mxu1 }
 0x4d4   : > { %3828 = vmatmul.mubr.bf16.gmra.mrb[108].mxu1 %v10603_v17 }
 0x4d5   : > { %8015 = vmatprep.mubr.msk.bf16.mxu1 %vm3401_vm2, %v10616_v34 }
 0x4d7   : > { %v10879_v37 = vpop.f32.mrb[4].mxu1 }
 0x4d8   : > { %v3518_v51 = vpop.f32.mrb[5].mxu1 }
 0x4d9   : > { %v10881_v52 = vpop.f32.mrb[6].mxu1 }
 0x4da   : > { %v3521_v2 = vpop.f32.mrb[7].mxu1 }
 0x4dc   : > { %3836 = vmatmul.mubr.bf16.gmra.mrb[112].mxu1 %v10614_v33 }
 0x4dd   : > { %8016 = vmatprep.mubr.msk.bf16.mxu1 %vm3401_vm2, %v10634_v54 }
 0x4df   : > { %v10886_v4 = vpop.f32.mrb[8].mxu1 }
 0x4e0   : > { %v3526_v18 = vpop.f32.mrb[9].mxu1 }
 0x4e1   : > { %v10888_v60 = vpop.f32.mrb[10].mxu1 }
 0x4e2   : > { %v3529_v17 = vpop.f32.mrb[11].mxu1 }
 0x4e4   : > { %3844 = vmatmul.mubr.bf16.gmra.mrb[116].mxu1 %v10632_v53 }
 0x4e5   : > { %8017 = vmatprep.mubr.msk.bf16.mxu1 %vm3401_vm2, %v10653_v9 }
 0x4e7   : > { %v10893_v34 = vpop.f32.mrb[12].mxu1 }
 0x4e8   : > { %v3534_v14 = vpop.f32.mrb[13].mxu1 }
 0x4e9   : > { %v10895_v15 = vpop.f32.mrb[14].mxu1 }
 0x4ea   : > { %v3537_v33 = vpop.f32.mrb[15].mxu1 }
 0x4ec   : > { %3852 = vmatmul.mubr.bf16.gmra.mrb[120].mxu1 %v10651_v8 }
 0x4ed   : > { %8018 = vmatprep.mubr.msk.bf16.mxu1 %vm3401_vm2, %v10672_v29 }
 0x4ef   : > { %v10900_v54 = vpop.f32.mrb[16].mxu1 }
 0x4f0   : > { %v3542_v16 = vpop.f32.mrb[17].mxu1 }
 0x4f1   : > { %v10902_v19 = vpop.f32.mrb[18].mxu1 }
 0x4f2   : > { %v3545_v53 = vpop.f32.mrb[19].mxu1 }
 0x4f4   : > { %3860 = vmatmul.mubr.bf16.gmra.mrb[124].mxu1 %v10670_v28 }
 0x4f5   : > { %8019 = vmatprep.mubr.msk.bf16.mxu1 %vm3401_vm2, %v10691_v49 }
 0x4f7   : > { %v10907_v9 = vpop.f32.mrb[20].mxu1 }
 0x4f8   : > { %v3550_v30 = vpop.f32.mrb[21].mxu1 }
 0x4f9   : > { %v10909_v32 = vpop.f32.mrb[22].mxu1 }
 0x4fa   : > { %v3553_v8 = vpop.f32.mrb[23].mxu1 }
 0x4fc   : > { %3868 = vmatmul.mubr.bf16.gmra.mrb[128].mxu1 %v10689_v48 }
 0x4fd   : > { %8020 = vmatprep.mubr.msk.bf16.mxu1 %vm3401_vm2, %v10702_v5 }
 0x4ff   : > { %v10914_v29 = vpop.f32.mrb[24].mxu1 }
 0x500   : > { %v3558_v31 = vpop.f32.mrb[25].mxu1 }
 0x501   : > { %v10916_v35 = vpop.f32.mrb[26].mxu1 }
 0x502   : > { %v3561_v28 = vpop.f32.mrb[27].mxu1 }
 0x504   : > { %3876 = vmatmul.mubr.bf16.gmra.mrb[132].mxu1 %v10700_v1 }
 0x505   : > { %8021 = vmatprep.mubr.msk.bf16.mxu1 %vm3401_vm2, %v10713_v25 }
 0x507   : > { %v10921_v49 = vpop.f32.mrb[28].mxu1 }
 0x508   : > { %v3566_v42 = vpop.f32.mrb[29].mxu1 }
 0x509   : > { %v10923_v43 = vpop.f32.mrb[30].mxu1 }
 0x50a   : > { %v3569_v48 = vpop.f32.mrb[31].mxu1 }
 0x50c   : > { %3884 = vmatmul.mubr.bf16.gmra.mrb[136].mxu1 %v10711_v22 }
 0x50d   : > { %8022 = vmatprep.mubr.msk.bf16.mxu1 %vm3401_vm2, %v10724_v45 }
 0x50f   : > { %v10928_v5 = vpop.f32.mrb[32].mxu1 }
 0x510   : > { %v3574_v56 = vpop.f32.mrb[33].mxu1 }
 0x511   : > { %v10930_v57 = vpop.f32.mrb[34].mxu1 }
 0x512   : > { %v3577_v1 = vpop.f32.mrb[35].mxu1 }
 0x514   : > { %3892 = vmatmul.mubr.bf16.gmra.mrb[140].mxu1 %v10722_v44 }
 0x515   : > { %8023 = vmatprep.mubr.msk.bf16.mxu1 %vm3401_vm2, %v10735_v0 }
 0x517   : > { %v10935_v25 = vpop.f32.mrb[36].mxu1 }
 0x518   : > { %v3582_v24 = vpop.f32.mrb[37].mxu1 }
 0x519   : > { %v10937_v39 = vpop.f32.mrb[38].mxu1 }
 0x51a   : > { %v3585_v22 = vpop.f32.mrb[39].mxu1 }
 0x51c   : > { %3900 = vmatmul.mubr.bf16.gmra.mrb[144].mxu1 %v10733_v63 }
 0x51d   : > { %8024 = vmatprep.mubr.msk.bf16.mxu1 %vm3401_vm2, %v10746_v27 }
 0x51f   : > { %v10942_v45 = vpop.f32.mrb[40].mxu1 }
 0x520   : > { %v3590_v51 = vpop.f32.mrb[41].mxu1 }
 0x521   : > { %v10944_v2 = vpop.f32.mrb[42].mxu1 }
 0x522   : > { %v3593_v44 = vpop.f32.mrb[43].mxu1 }
 0x524   : > { %3908 = vmatmul.mubr.bf16.gmra.mrb[148].mxu1 %v10744_v26 }
 0x525   : > { %8025 = vmatprep.mubr.msk.bf16.mxu1 %vm3401_vm2, %v10757_v55 }
 0x527   : > { %v10949_v0 = vpop.f32.mrb[44].mxu1 }
 0x528   : > { %v3598_v18 = vpop.f32.mrb[45].mxu1 }
 0x529   : > { %v10951_v17 = vpop.f32.mrb[46].mxu1 }
 0x52a   : > { %v3601_v63 = vpop.f32.mrb[47].mxu1 }
 0x52c   : > { %3916 = vmatmul.mubr.bf16.gmra.mrb[152].mxu1 %v10755_v50 }
 0x52d   : > { %8026 = vmatprep.mubr.msk.bf16.mxu1 %vm3401_vm2, %v10768_v13 }
 0x52f   : > { %v10956_v27 = vpop.f32.mrb[48].mxu1 }
 0x530   : > { %v3606_v14 = vpop.f32.mrb[49].mxu1 }
 0x531   : > { %v10958_v33 = vpop.f32.mrb[50].mxu1 }
 0x532   : > { %v3609_v26 = vpop.f32.mrb[51].mxu1 }
 0x534   : > { %3924 = vmatmul.mubr.bf16.gmra.mrb[156].mxu1 %v10766_v12 }
 0x535   : > { %8027 = vmatprep.mubr.msk.bf16.mxu1 %vm3401_vm2, %v10779_v41 }
 0x537   : > { %v10963_v55 = vpop.f32.mrb[52].mxu1 }
 0x538   : > { %v3614_v16 = vpop.f32.mrb[53].mxu1 }
 0x539   : > { %v10965_v53 = vpop.f32.mrb[54].mxu1 }
 0x53a   : > { %v3617_v50 = vpop.f32.mrb[55].mxu1 }
 0x53c   : > { %3932 = vmatmul.mubr.bf16.gmra.mrb[160].mxu1 %v10777_v40 }
 0x53d   : > { %8028 = vmatprep.mubr.msk.bf16.mxu1 %vm3401_vm2, %v10790_v7 }
 0x53f   : > { %v10970_v13 = vpop.f32.mrb[56].mxu1 }
 0x540   : > { %v3622_v30 = vpop.f32.mrb[57].mxu1 }
 0x541   : > { %v10972_v8 = vpop.f32.mrb[58].mxu1 }
 0x542   : > { %v3625_v12 = vpop.f32.mrb[59].mxu1 }
 0x544   : > { %3940 = vmatmul.mubr.bf16.gmra.mrb[164].mxu1 %v10788_v6 }
 0x545   : > { %8029 = vmatprep.mubr.msk.bf16.mxu1 %vm3401_vm2, %v10801_v38 }
 0x547   : > { %v10977_v41 = vpop.f32.mrb[60].mxu1 }
 0x548   : > { %v3630_v31 = vpop.f32.mrb[61].mxu1 }
 0x549   : > { %v10979_v28 = vpop.f32.mrb[62].mxu1 }
 0x54a   : > { %v3633_v40 = vpop.f32.mrb[63].mxu1 }
 0x54c   : > { %3948 = vmatmul.mubr.bf16.gmra.mrb[168].mxu1 %v10799_v36 }
 0x54d   : > { %8030 = vmatprep.mubr.msk.bf16.mxu1 %vm3401_vm2, %v10812_v11 }
 0x54f   : > { %v10984_v7 = vpop.f32.mrb[64].mxu1 }
 0x550   : > { %v3638_v42 = vpop.f32.mrb[65].mxu1 }
 0x551   : > { %v10986_v48 = vpop.f32.mrb[66].mxu1 }
 0x552   : > { %v3641_v6 = vpop.f32.mrb[67].mxu1 }
 0x554   : > { %3956 = vmatmul.mubr.bf16.gmra.mrb[172].mxu1 %v10810_v10 }
 0x555   : > { %8031 = vmatprep.mubr.msk.bf16.mxu1 %vm3401_vm2, %v10823_v47 }
 0x557   : > { %v10991_v38 = vpop.f32.mrb[68].mxu1 }
 0x558   : > { %v3646_v56 = vpop.f32.mrb[69].mxu1 }
 0x559   : > { %v10993_v1 = vpop.f32.mrb[70].mxu1 }
 0x55a   : > { %v3649_v36 = vpop.f32.mrb[71].mxu1 }
 0x55c   : > { %3964 = vmatmul.mubr.bf16.gmra.mrb[176].mxu1 %v10821_v46 }
 0x55d   : > { %8032 = vmatprep.mubr.msk.bf16.mxu1 %vm3401_vm2, %v10834_v21 }
 0x55f   : > { %v10998_v11 = vpop.f32.mrb[72].mxu1 }
 0x560   : > { %v3654_v24 = vpop.f32.mrb[73].mxu1 }
 0x561   : > { %v11000_v22 = vpop.f32.mrb[74].mxu1 }
 0x562   : > { %v3657_v10 = vpop.f32.mrb[75].mxu1 }
 0x564   : > { %3972 = vmatmul.mubr.bf16.gmra.mrb[180].mxu1 %v10832_v20 }
 0x565   : > { %8033 = vmatprep.mubr.msk.bf16.mxu1 %vm3401_vm2, %v10845_v62 }
 0x567   : > { %v11005_v47 = vpop.f32.mrb[76].mxu1 }
 0x568   : > { %v3662_v51 = vpop.f32.mrb[77].mxu1 }
 0x569   : > { %v11007_v44 = vpop.f32.mrb[78].mxu1 }
 0x56a   : > { %v3665_v46 = vpop.f32.mrb[79].mxu1 }
 0x56c   : > { %3980 = vmatmul.mubr.bf16.gmra.mrb[184].mxu1 %v10843_v61 }
 0x56d   : > { %8034 = vmatprep.mubr.msk.bf16.mxu1 %vm3401_vm2, %v10856_v59 }
 0x56f   : > { %v11012_v21 = vpop.f32.mrb[80].mxu1 }
 0x570   : > { %v3670_v18 = vpop.f32.mrb[81].mxu1 }
 0x571   : > { %v11014_v63 = vpop.f32.mrb[82].mxu1 }
 0x572   : > { %v3673_v20 = vpop.f32.mrb[83].mxu1 }
 0x574   : > { %3988 = vmatmul.mubr.bf16.gmra.mrb[188].mxu1 %v10854_v58  ;;  %v9643_v58 = vld [vmem:[%s12643_s5 + $0x4] ss:$12 sps:$4 sm:$0xff]  }
 0x575   : > { %4420 = vmatprep.mubr.bf16.mxu1 %v9643_v58 }
 0x577   : > { %v11017_v62 = vpop.f32.mrb[84].mxu1 }
 0x578   : > { %v3678_v14 = vpop.f32.mrb[85].mxu1 }
 0x579   : > { %v11019_v26 = vpop.f32.mrb[86].mxu1 }
 0x57a   : > { %v3681_v16 = vpop.f32.mrb[87].mxu1 }
 0x57f   : > { %v11021_v50 = vpop.f32.mrb[88].mxu1 }
 0x580   : > { %v3686_v61 = vpop.f32.mrb[89].mxu1 }
 0x581   : > { %v11023_v30 = vpop.f32.mrb[90].mxu1 }
 0x582   : > { %v3689_v59 = vpop.f32.mrb[91].mxu1 }
 0x587   : > { %v11025_v12 = vpop.f32.mrb[92].mxu1 }
 0x588   : > { %v3694_v31 = vpop.f32.mrb[93].mxu1 }
 0x589   : > { %v11027_v40 = vpop.f32.mrb[94].mxu1 }
 0x58a   : > { %v3697_v42 = vpop.f32.mrb[95].mxu1 }
 0x58f   : > { %v3805_v6 = vpop.f32.mrb[96].mxu1 }
 0x590   : > { %v3996_v56 = vmax.f32 %v10872_v23, %v3805_v6  ;;  %v3807_v36 = vpop.f32.mrb[97].mxu1 }
 0x591   : > { %v3808_v24 = vpop.f32.mrb[98].mxu1 }
 0x592   : > { %v3997_v10 = vmax.f32 %v10874_v3, %v3808_v24  ;;  %v3810_v51 = vpop.f32.mrb[99].mxu1 }
 0x594   : > { %v11034_v46 = vpack.c.bf16 %v3997_v10, %v3996_v56 }
 0x597   : > { %v3813_v18 = vpop.f32.mrb[100].mxu1 }
 0x598   : > { %v3998_v20 = vmax.f32 %v10879_v37, %v3813_v18  ;;  %v3815_v14 = vpop.f32.mrb[101].mxu1 }
 0x599   : > { %v3816_v16 = vpop.f32.mrb[102].mxu1 }
 0x59a   : > { %v3999_v61 = vmax.f32 %v10881_v52, %v3816_v16  ;;  %v3818_v59 = vpop.f32.mrb[103].mxu1 }
 0x59c   : > { %v11038_v31 = vpack.c.bf16 %v3999_v61, %v3998_v20 }
 0x59f   : > { %v3821_v42 = vpop.f32.mrb[104].mxu1 }
 0x5a0   : > { %v4000_v23 = vmax.f32 %v10886_v4, %v3821_v42  ;;  %v3823_v6 = vpop.f32.mrb[105].mxu1 }
 0x5a1   : > { %v3824_v58 = vpop.f32.mrb[106].mxu1 }
 0x5a2   : > { %v4001_v3 = vmax.f32 %v10888_v60, %v3824_v58  ;;  %v3826_v36 = vpop.f32.mrb[107].mxu1 }
 0x5a4   : > { %v11042_v56 = vpack.c.bf16 %v4001_v3, %v4000_v23 }
 0x5a7   : > { %v3829_v24 = vpop.f32.mrb[108].mxu1 }
 0x5a8   : > { %v4002_v37 = vmax.f32 %v10893_v34, %v3829_v24  ;;  %v3831_v10 = vpop.f32.mrb[109].mxu1 }
 0x5a9   : > { %v3832_v51 = vpop.f32.mrb[110].mxu1 }
 0x5aa   : > { %v4003_v52 = vmax.f32 %v10895_v15, %v3832_v51  ;;  %v3834_v18 = vpop.f32.mrb[111].mxu1 }
 0x5ac   : > { %v11046_v20 = vpack.c.bf16 %v4003_v52, %v4002_v37 }
 0x5af   : > { %v3837_v14 = vpop.f32.mrb[112].mxu1 }
 0x5b0   : > { %v4004_v4 = vmax.f32 %v10900_v54, %v3837_v14  ;;  %v3839_v16 = vpop.f32.mrb[113].mxu1 }
 0x5b1   : > { %v3840_v61 = vpop.f32.mrb[114].mxu1 }
 0x5b2   : > { %v4005_v60 = vmax.f32 %v10902_v19, %v3840_v61  ;;  %v3842_v59 = vpop.f32.mrb[115].mxu1 }
 0x5b4   : > { %v11050_v42 = vpack.c.bf16 %v4005_v60, %v4004_v4 }
 0x5b7   : > { %v3845_v23 = vpop.f32.mrb[116].mxu1 }
 0x5b8   : > { %v4006_v34 = vmax.f32 %v10907_v9, %v3845_v23  ;;  %v3847_v6 = vpop.f32.mrb[117].mxu1 }
 0x5b9   : > { %v3848_v58 = vpop.f32.mrb[118].mxu1 }
 0x5ba   : > { %v4007_v15 = vmax.f32 %v10909_v32, %v3848_v58  ;;  %v3850_v3 = vpop.f32.mrb[119].mxu1 }
 0x5bc   : > { %v11054_v36 = vpack.c.bf16 %v4007_v15, %v4006_v34 }
 0x5bf   : > { %v3853_v24 = vpop.f32.mrb[120].mxu1 }
 0x5c0   : > { %v4008_v54 = vmax.f32 %v10914_v29, %v3853_v24  ;;  %v3855_v37 = vpop.f32.mrb[121].mxu1 }
 0x5c1   : > { %v3856_v10 = vpop.f32.mrb[122].mxu1 }
 0x5c2   : > { %v4009_v19 = vmax.f32 %v10916_v35, %v3856_v10  ;;  %v3858_v51 = vpop.f32.mrb[123].mxu1 }
 0x5c4   : > { %v11058_v52 = vpack.c.bf16 %v4009_v19, %v4008_v54 }
 0x5c7   : > { %v3861_v18 = vpop.f32.mrb[124].mxu1 }
 0x5c8   : > { %v4010_v9 = vmax.f32 %v10921_v49, %v3861_v18  ;;  %v3863_v14 = vpop.f32.mrb[125].mxu1 }
 0x5c9   : > { %v3864_v4 = vpop.f32.mrb[126].mxu1 }
 0x5ca   : > { %v4011_v32 = vmax.f32 %v10923_v43, %v3864_v4  ;;  %v3866_v16 = vpop.f32.mrb[127].mxu1 }
 0x5cc   : > { %v11062_v61 = vpack.c.bf16 %v4011_v32, %v4010_v9 }
 0x5cf   : > { %v3869_v60 = vpop.f32.mrb[128].mxu1 }
 0x5d0   : > { %v3871_v59 = vpop.f32.mrb[129].mxu1  ;;  %v4012_v29 = vmax.f32 %v10928_v5, %v3869_v60 }
 0x5d1   : > { %v3872_v23 = vpop.f32.mrb[130].mxu1 }
 0x5d2   : > { %v3874_v34 = vpop.f32.mrb[131].mxu1  ;;  %v4013_v35 = vmax.f32 %v10930_v57, %v3872_v23 }
 0x5d4   : > { %v11066_v6 = vpack.c.bf16 %v4013_v35, %v4012_v29 }
 0x5d6   : > { %8315 = vmatprep.subr.bf16.mxu1 %v11066_v6 }
 0x5d7   : > { %v3877_v49 = vpop.f32.mrb[132].mxu1  ;;  %8316 = vmatpush3.bf16.msra.mxu1 %v11034_v46 }
 0x5d8   : > { %v3879_v58 = vpop.f32.mrb[133].mxu1  ;;  %v4014_v43 = vmax.f32 %v10935_v25, %v3877_v49 }
 0x5d9   : > { %v3880_v15 = vpop.f32.mrb[134].mxu1 }
 0x5da   : > { %v3882_v3 = vpop.f32.mrb[135].mxu1  ;;  %v4015_v24 = vmax.f32 %v10937_v39, %v3880_v15 }
 0x5dc   : > { %v11072_v54 = vpack.c.bf16 %v4015_v24, %v4014_v43 }
 0x5de   : > { %8317 = vmatprep.subr.bf16.mxu1 %v11072_v54 }
 0x5df   : > { %v3885_v5 = vpop.f32.mrb[136].mxu1  ;;  %8318 = vmatpush3.bf16.msra.mxu1 %v11038_v31 }
 0x5e0   : > { %v3887_v57 = vpop.f32.mrb[137].mxu1  ;;  %v4016_v37 = vmax.f32 %v10942_v45, %v3885_v5 }
 0x5e1   : > { %v3888_v10 = vpop.f32.mrb[138].mxu1 }
 0x5e2   : > { %v3890_v19 = vpop.f32.mrb[139].mxu1  ;;  %v4017_v51 = vmax.f32 %v10944_v2, %v3888_v10 }
 0x5e4   : > { %v11078_v18 = vpack.c.bf16 %v4017_v51, %v4016_v37 }
 0x5e6   : > { %8319 = vmatprep.subr.bf16.mxu1 %v11078_v18 }
 0x5e7   : > { %v3893_v25 = vpop.f32.mrb[140].mxu1  ;;  %8320 = vmatpush3.bf16.msra.mxu1 %v11042_v56 }
 0x5e8   : > { %v3895_v39 = vpop.f32.mrb[141].mxu1  ;;  %v4018_v9 = vmax.f32 %v10949_v0, %v3893_v25 }
 0x5e9   : > { %v3896_v14 = vpop.f32.mrb[142].mxu1 }
 0x5ea   : > { %v3898_v4 = vpop.f32.mrb[143].mxu1  ;;  %v4019_v32 = vmax.f32 %v10951_v17, %v3896_v14 }
 0x5ec   : > { %v11084_v16 = vpack.c.bf16 %v4019_v32, %v4018_v9 }
 0x5ee   : > { %8321 = vmatprep.subr.bf16.mxu1 %v11084_v16 }
 0x5ef   : > { %v3901_v45 = vpop.f32.mrb[144].mxu1  ;;  %8322 = vmatpush3.bf16.msra.mxu1 %v11046_v20 }
 0x5f0   : > { %v4020_v2 = vmax.f32 %v10956_v27, %v3901_v45  ;;  %v3903_v60 = vpop.f32.mrb[145].mxu1 }
 0x5f1   : > { %v3904_v59 = vpop.f32.mrb[146].mxu1 }
 0x5f2   : > { %v4021_v29 = vmax.f32 %v10958_v33, %v3904_v59  ;;  %v3906_v23 = vpop.f32.mrb[147].mxu1 }
 0x5f4   : > { %v11090_v34 = vpack.c.bf16 %v4021_v29, %v4020_v2  ;;  %v9646_v2 = vld [vmem:[%s12643_s5 + $0x18] ss:$12 sps:$4 sm:$0xff]  }
 0x5f6   : > { %8323 = vmatprep.subr.bf16.mxu1 %v11090_v34 }
 0x5f7   : > { %v3909_v0 = vpop.f32.mrb[148].mxu1  ;;  %8324 = vmatpush3.bf16.msra.mxu1 %v11050_v42 }
 0x5f8   : > { %v4022_v17 = vmax.f32 %v10963_v55, %v3909_v0  ;;  %v3911_v35 = vpop.f32.mrb[149].mxu1 }
 0x5f9   : > { %v3912_v49 = vpop.f32.mrb[150].mxu1  ;;  %v9649_v35 = vld [vmem:[%s12643_s5 + $0x30] ss:$12 sps:$4 sm:$0xff]  }
 0x5fa   : > { %v4023_v58 = vmax.f32 %v10965_v53, %v3912_v49  ;;  %v3914_v43 = vpop.f32.mrb[151].mxu1 }
 0x5fc   : > { %v11096_v27 = vpack.c.bf16 %v4023_v58, %v4022_v17 }
 0x5fe   : > { %8325 = vmatprep.subr.bf16.mxu1 %v11096_v27 }
 0x5ff   : > { %v3917_v33 = vpop.f32.mrb[152].mxu1  ;;  %8326 = vmatpush3.bf16.msra.mxu1 %v11054_v36 }
 0x600   : > { %v4024_v15 = vmax.f32 %v10970_v13, %v3917_v33  ;;  %v3919_v3 = vpop.f32.mrb[153].mxu1 }
 0x601   : > { %v3920_v24 = vpop.f32.mrb[154].mxu1 }
 0x602   : > { %v4025_v5 = vmax.f32 %v10972_v8, %v3920_v24  ;;  %v3922_v57 = vpop.f32.mrb[155].mxu1  ;;  %v9641_v8 = vld [vmem:[%s12643_s5] ss:$12 sps:$4 sm:$0xff]   ;;  %v9652_v24 = vld [vmem:[%s12643_s5 + $0x48] ss:$12 sps:$4 sm:$0xff]  }
 0x604   : > { %v11102_v55 = vpack.c.bf16 %v4025_v5, %v4024_v15 }
 0x606   : > { %8327 = vmatprep.subr.bf16.mxu1 %v11102_v55 }
 0x607   : > { %v3925_v53 = vpop.f32.mrb[156].mxu1  ;;  %8328 = vmatpush3.bf16.msra.mxu1 %v11058_v52 }
 0x608   : > { %v4026_v37 = vmax.f32 %v10977_v41, %v3925_v53  ;;  %v3927_v10 = vpop.f32.mrb[157].mxu1  ;;  %v9644_v41 = vld [vmem:[%s12643_s5 + $0x1c] ss:$12 sps:$4 sm:$0xff]  }
 0x609   : > { %v3928_v19 = vpop.f32.mrb[158].mxu1 }
 0x60a   : > { %v4027_v51 = vmax.f32 %v10979_v28, %v3928_v19  ;;  %v3930_v25 = vpop.f32.mrb[159].mxu1 }
 0x60c   : > { %v11108_v13 = vpack.c.bf16 %v4027_v51, %v4026_v37  ;;  %v9655_v51 = vld [vmem:[%s12643_s5 + $0x60] ss:$12 sps:$4 sm:$0xff]  }
 0x60e   : > { %8329 = vmatprep.subr.bf16.mxu1 %v11108_v13 }
 0x60f   : > { %v3933_v39 = vpop.f32.mrb[160].mxu1  ;;  %8330 = vmatpush3.bf16.msra.mxu1 %v11062_v61 }
 0x610   : > { %v4028_v9 = vmax.f32 %v10984_v7, %v3933_v39  ;;  %v3935_v14 = vpop.f32.mrb[161].mxu1  ;;  %v9647_v7 = vld [vmem:[%s12643_s5 + $0x34] ss:$12 sps:$4 sm:$0xff]  }
 0x611   : > { %v3936_v28 = vpop.f32.mrb[162].mxu1 }
 0x612   : > { %v4029_v4 = vmax.f32 %v10986_v48, %v3936_v28  ;;  %v3938_v32 = vpop.f32.mrb[163].mxu1  ;;  %4421 = vmatmul.mubr.bf16.vlgmr.msra.gmra.mrb[192].mxu1 %v9641_v8  ;;  %v9658_v28 = vld [vmem:[%s12643_s5 + $0x78] ss:$12 sps:$4 sm:$0xff]  }
 0x613   : > { %4428 = vmatprep.mubr.bf16.mxu1 %v9644_v41 }
 0x614   : > { %v11120_v45 = vpack.c.bf16 %v4029_v4, %v4028_v9 }
 0x616   : > { %8728 = vmatprep.subr.bf16.mxu1 %v11120_v45 }
 0x617   : > { %v3941_v60 = vpop.f32.mrb[164].mxu1  ;;  %8729 = vmatpush3.bf16.msra.mxu1 %v11120_v45 }
 0x618   : > { %v4030_v48 = vmax.f32 %v10991_v38, %v3941_v60  ;;  %v3943_v59 = vpop.f32.mrb[165].mxu1  ;;  %v9650_v38 = vld [vmem:[%s12643_s5 + $0x4c] ss:$12 sps:$4 sm:$0xff]  }
 0x619   : > { %v3944_v29 = vpop.f32.mrb[166].mxu1  ;;  %v9661_v59 = vld [vmem:[%s12643_s5 + $0x90] ss:$12 sps:$4 sm:$0xff]  }
 0x61a   : > { %v4031_v23 = vmax.f32 %v10993_v1, %v3944_v29  ;;  %v3946_v0 = vpop.f32.mrb[167].mxu1  ;;  %4429 = vmatmul.mubr.bf16.gmra.mrb[196].mxu1 %v9646_v2 }
 0x61b   : > { %4436 = vmatprep.mubr.bf16.mxu1 %v9647_v7 }
 0x61c   : > { %v11132_v17 = vpack.c.bf16 %v4031_v23, %v4030_v48 }
 0x61e   : > { %8730 = vmatprep.subr.bf16.mxu1 %v11132_v17 }
 0x61f   : > { %v3949_v49 = vpop.f32.mrb[168].mxu1  ;;  %8731 = vmatpush3.bf16.msra.mxu1 %v11132_v17 }
 0x620   : > { %v4032_v1 = vmax.f32 %v10998_v11, %v3949_v49  ;;  %v3951_v58 = vpop.f32.mrb[169].mxu1  ;;  %v9653_v11 = vld [vmem:[%s12643_s5 + $0x64] ss:$12 sps:$4 sm:$0xff]  }
 0x621   : > { %v3952_v43 = vpop.f32.mrb[170].mxu1 }
 0x622   : > { %v4033_v33 = vmax.f32 %v11000_v22, %v3952_v43  ;;  %v3954_v15 = vpop.f32.mrb[171].mxu1  ;;  %4437 = vmatmul.mubr.bf16.gmra.mrb[200].mxu1 %v9649_v35 }
 0x623   : > { %4444 = vmatprep.mubr.bf16.mxu1 %v9650_v38 }
 0x624   : > { %v11144_v3 = vpack.c.bf16 %v4033_v33, %v4032_v1  ;;  %v9664_v1 = vld [vmem:[%s12643_s5 + $0xa8] ss:$12 sps:$4 sm:$0xff]  }
 0x626   : > { %8732 = vmatprep.subr.bf16.mxu1 %v11144_v3 }
 0x627   : > { %v3957_v5 = vpop.f32.mrb[172].mxu1  ;;  %8733 = vmatpush3.bf16.msra.mxu1 %v11144_v3 }
 0x628   : > { %v4034_v22 = vmax.f32 %v11005_v47, %v3957_v5  ;;  %v3959_v57 = vpop.f32.mrb[173].mxu1  ;;  %v9656_v47 = vld [vmem:[%s12643_s5 + $0x7c] ss:$12 sps:$4 sm:$0xff]  }
 0x629   : > { %v3960_v53 = vpop.f32.mrb[174].mxu1  ;;  %v9673_v57 = vld [vmem:[%s12643_s5 + $0xf0] ss:$12 sps:$4 sm:$0xff]  }
 0x62a   : > { %v4035_v37 = vmax.f32 %v11007_v44, %v3960_v53  ;;  %v3962_v10 = vpop.f32.mrb[175].mxu1  ;;  %4445 = vmatmul.mubr.bf16.gmra.mrb[204].mxu1 %v9652_v24  ;;  %v9676_v53 = vld [vmem:[%s12643_s5 + $0x108] ss:$12 sps:$4 sm:$0xff]  }
 0x62b   : > { %4452 = vmatprep.mubr.bf16.mxu1 %v9653_v11  ;;  %v9667_v11 = vld [vmem:[%s12643_s5 + $0xc0] ss:$12 sps:$4 sm:$0xff]  }
 0x62c   : > { %v11156_v19 = vpack.c.bf16 %v4035_v37, %v4034_v22  ;;  %v9671_v22 = vld [vmem:[%s12643_s5 + $0xf4] ss:$12 sps:$4 sm:$0xff]   ;;  %v9677_v37 = vld [vmem:[%s12643_s5 + $0x124] ss:$12 sps:$4 sm:$0xff]  }
 0x62d   : > { %v9679_v10 = vld [vmem:[%s12643_s5 + $0x120] ss:$12 sps:$4 sm:$0xff]  }
 0x62e   : > { %8734 = vmatprep.subr.bf16.mxu1 %v11156_v19 }
 0x62f   : > { %v3965_v25 = vpop.f32.mrb[176].mxu1  ;;  %8735 = vmatpush3.bf16.msra.mxu1 %v11156_v19 }
 0x630   : > { %v4036_v44 = vmax.f32 %v11012_v21, %v3965_v25  ;;  %v3967_v8 = vpop.f32.mrb[177].mxu1  ;;  %v9659_v21 = vld [vmem:[%s12643_s5 + $0x94] ss:$12 sps:$4 sm:$0xff]   ;;  %v9682_v25 = vld [vmem:[%s12643_s5 + $0x138] ss:$12 sps:$4 sm:$0xff]  }
 0x631   : > { %v3968_v39 = vpop.f32.mrb[178].mxu1  ;;  %v9686_v8 = vld [vmem:[%s12643_s5 + $0x16c] ss:$12 sps:$4 sm:$0xff]  }
 0x632   : > { %v4037_v41 = vmax.f32 %v11014_v63, %v3968_v39  ;;  %v3970_v9 = vpop.f32.mrb[179].mxu1  ;;  %4453 = vmatmul.mubr.bf16.gmra.mrb[208].mxu1 %v9655_v51  ;;  %v9680_v51 = vld [vmem:[%s12643_s5 + $0x13c] ss:$12 sps:$4 sm:$0xff]  }
 0x633   : > { %4460 = vmatprep.mubr.bf16.mxu1 %v9656_v47  ;;  %v9683_v47 = vld [vmem:[%s12643_s5 + $0x154] ss:$12 sps:$4 sm:$0xff]  }
 0x634   : > { %v11168_v14 = vpack.c.bf16 %v4037_v41, %v4036_v44  ;;  %v9685_v44 = vld [vmem:[%s12643_s5 + $0x150] ss:$12 sps:$4 sm:$0xff]   ;;  %v9688_v39 = vld [vmem:[%s12643_s5 + $0x168] ss:$12 sps:$4 sm:$0xff]   ;;  %v9690_v9 = vld [vmem:[%s12643_s5 + $0x20] ss:$12 sps:$4 sm:$0xff]  }
 0x635   : > { %v9689_v41 = vld [vmem:[%s12643_s5 + $0x8] ss:$12 sps:$4 sm:$0xff]  }
 0x636   : > { %8736 = vmatprep.subr.bf16.mxu1 %v11168_v14 }
 0x637   : > { %v3973_v4 = vpop.f32.mrb[180].mxu1  ;;  %8737 = vmatpush3.bf16.msra.mxu1 %v11168_v14 }
 0x638   : > { %v4038_v63 = vmax.f32 %v11017_v62, %v3973_v4  ;;  %v3975_v32 = vpop.f32.mrb[181].mxu1  ;;  %v9662_v62 = vld [vmem:[%s12643_s5 + $0xac] ss:$12 sps:$4 sm:$0xff]   ;;  %v9692_v4 = vld [vmem:[%s12643_s5 + $0x50] ss:$12 sps:$4 sm:$0xff]  }
 0x639   : > { %v3976_v2 = vpop.f32.mrb[182].mxu1  ;;  %v9714_v32 = vld [vmem:[%s12644_s6 + $0x48] ss:$12 sps:$4 sm:$0xff]  }
 0x63a   : > { %v4039_v60 = vmax.f32 %v11019_v26, %v3976_v2  ;;  %v3978_v7 = vpop.f32.mrb[183].mxu1  ;;  %4461 = vmatmul.mubr.bf16.gmra.mrb[212].mxu1 %v9658_v28  ;;  %v9691_v28 = vld [vmem:[%s12643_s5 + $0x38] ss:$12 sps:$4 sm:$0xff]  }
 0x63b   : > { %4468 = vmatprep.mubr.bf16.mxu1 %v9659_v21  ;;  %v9693_v21 = vld [vmem:[%s12643_s5 + $0x68] ss:$12 sps:$4 sm:$0xff]  }
 0x63c   : > { %v11180_v48 = vpack.c.bf16 %v4039_v60, %v4038_v63  ;;  %v9713_v63 = vld [vmem:[%s12644_s6 + $0x34] ss:$12 sps:$4 sm:$0xff]  }
 0x63e   : > { %8738 = vmatprep.subr.bf16.mxu1 %v11180_v48 }
 0x63f   : > { %v3981_v29 = vpop.f32.mrb[184].mxu1  ;;  %8739 = vmatpush3.bf16.msra.mxu1 %v11180_v48 }
 0x640   : > { %v4040_v26 = vmax.f32 %v11021_v50, %v3981_v29  ;;  %v3983_v23 = vpop.f32.mrb[185].mxu1  ;;  %v9665_v50 = vld [vmem:[%s12643_s5 + $0xc4] ss:$12 sps:$4 sm:$0xff]  }
 0x641   : > { %v3984_v0 = vpop.f32.mrb[186].mxu1 }
 0x642   : > { %v4041_v35 = vmax.f32 %v11023_v30, %v3984_v0  ;;  %v3986_v49 = vpop.f32.mrb[187].mxu1  ;;  %4469 = vmatmul.mubr.bf16.gmra.mrb[216].mxu1 %v9661_v59 }
 0x643   : > { %4476 = vmatprep.mubr.bf16.mxu1 %v9662_v62 }
 0x644   : > { %v11192_v38 = vpack.c.bf16 %v4041_v35, %v4040_v26  ;;  %v9722_v26 = vld [vmem:[%s12644_s6 + $0x7c] ss:$12 sps:$4 sm:$0xff]  }
 0x646   : > { %8740 = vmatprep.subr.bf16.mxu1 %v11192_v38 }
 0x647   : > { %v3989_v58 = vpop.f32.mrb[188].mxu1  ;;  %8741 = vmatpush3.bf16.msra.mxu1 %v11192_v38 }
 0x648   : > { %v4042_v30 = vmax.f32 %v11025_v12, %v3989_v58  ;;  %v3991_v43 = vpop.f32.mrb[189].mxu1  ;;  %v9668_v12 = vld [vmem:[%s12643_s5 + $0xdc] ss:$12 sps:$4 sm:$0xff]  }
 0x649   : > { %v3992_v33 = vpop.f32.mrb[190].mxu1 }
 0x64a   : > { %v4043_v15 = vmax.f32 %v11027_v40, %v3992_v33  ;;  %v3994_v24 = vpop.f32.mrb[191].mxu1  ;;  %4477 = vmatmul.mubr.bf16.gmra.mrb[220].mxu1 %v9664_v1  ;;  %v9670_v40 = vld [vmem:[%s12643_s5 + $0xd8] ss:$12 sps:$4 sm:$0xff]  }
 0x64b   : > { %4484 = vmatprep.mubr.bf16.mxu1 %v9665_v50  ;;  %v9720_v1 = vld [vmem:[%s12644_s6 + $0x78] ss:$12 sps:$4 sm:$0xff]   ;;  %v9725_v50 = vld [vmem:[%s12644_s6 + $0x94] ss:$12 sps:$4 sm:$0xff]  }
 0x64c   : > { %v11204_v5 = vpack.c.bf16 %v4043_v15, %v4042_v30 }
 0x64e   : > { %8742 = vmatprep.subr.bf16.mxu1 %v11204_v5 }
 0x64f   : > { %8743 = vmatpush3.bf16.msra.mxu1 %v11204_v5 }
 0x650   : > { %8451 = vmatprep.subr.bf16.mxu1 %v11066_v6  ;;  %v9674_v6 = vld [vmem:[%s12643_s5 + $0x10c] ss:$12 sps:$4 sm:$0xff]  }
 0x652   : > { %4485 = vmatmul.mubr.bf16.gmra.mrb[224].mxu1 %v9667_v11 }
 0x653   : > { %4492 = vmatprep.mubr.bf16.mxu1 %v9668_v12  ;;  %v9728_v12 = vld [vmem:[%s12644_s6 + $0xac] ss:$12 sps:$4 sm:$0xff]  }
 0x65a   : > { %4493 = vmatmul.mubr.bf16.gmra.mrb[228].mxu1 %v9670_v40 }
 0x65b   : > { %4500 = vmatprep.mubr.bf16.mxu1 %v9671_v22 }
 0x662   : > { %4501 = vmatmul.mubr.bf16.gmra.mrb[232].mxu1 %v9673_v57 }
 0x663   : > { %4508 = vmatprep.mubr.bf16.mxu1 %v9674_v6 }
 0x66a   : > { %4509 = vmatmul.mubr.bf16.gmra.mrb[236].mxu1 %v9676_v53 }
 0x66b   : > { %4516 = vmatprep.mubr.bf16.mxu1 %v9677_v37  ;;  %v9726_v37 = vld [vmem:[%s12644_s6 + $0xa8] ss:$12 sps:$4 sm:$0xff]  }
 0x672   : > { %4517 = vmatmul.mubr.bf16.gmra.mrb[240].mxu1 %v9679_v10 }
 0x673   : > { %4524 = vmatprep.mubr.bf16.mxu1 %v9680_v51  ;;  %v9731_v51 = vld [vmem:[%s12644_s6 + $0xc4] ss:$12 sps:$4 sm:$0xff]  }
 0x67a   : > { %4525 = vmatmul.mubr.bf16.gmra.mrb[244].mxu1 %v9682_v25 }
 0x67b   : > { %4532 = vmatprep.mubr.bf16.mxu1 %v9683_v47 }
 0x682   : > { %4533 = vmatmul.mubr.bf16.gmra.mrb[248].mxu1 %v9685_v44 }
 0x683   : > { %4540 = vmatprep.mubr.bf16.mxu1 %v9686_v8 }
 0x68a   : > { %4541 = vmatmul.mubr.bf16.gmra.mrb[252].mxu1 %v9688_v39 }
 0x68b   : > { %8744 = vmatprep.mubr.bf16.mxu1 %v9689_v41  ;;  %v9729_v41 = vld [vmem:[%s12644_s6 + $0xc0] ss:$12 sps:$4 sm:$0xff]  }
 0x692   : > { %8745 = vmatmul.mubr.bf16.vlgmr.msra.gmra.mrb[0].mxu1 %v9690_v9 }
 0x693   : > { %8452 = vmatpush3.bf16.msra.mxu1 %v11034_v46  ;;  %8748 = vmatprep.mubr.bf16.mxu1 %v9691_v28  ;;  %v9694_v46 = vld [vmem:[%s12643_s5 + $0x80] ss:$12 sps:$4 sm:$0xff]   ;;  %v9734_v28 = vld [vmem:[%s12644_s6 + $0xdc] ss:$12 sps:$4 sm:$0xff]  }
 0x694   : > { %8453 = vmatprep.subr.bf16.mxu1 %v11072_v54  ;;  %v9701_v54 = vld [vmem:[%s12643_s5 + $0x128] ss:$12 sps:$4 sm:$0xff]  }
 0x697   : > { %8454 = vmatpush3.bf16.msra.mxu1 %v11038_v31  ;;  %v9695_v31 = vld [vmem:[%s12643_s5 + $0x98] ss:$12 sps:$4 sm:$0xff]  }
 0x698   : > { %8455 = vmatprep.subr.bf16.mxu1 %v11078_v18  ;;  %v9703_v18 = vld [vmem:[%s12643_s5 + $0x158] ss:$12 sps:$4 sm:$0xff]  }
 0x69a   : > { %8749 = vmatmul.mubr.bf16.gmra.mrb[4].mxu1 %v9692_v4 }
 0x69b   : > { %8456 = vmatpush3.bf16.msra.mxu1 %v11042_v56  ;;  %8752 = vmatprep.mubr.bf16.mxu1 %v9693_v21  ;;  %v9696_v56 = vld [vmem:[%s12643_s5 + $0xb0] ss:$12 sps:$4 sm:$0xff]  }
 0x69c   : > { %8457 = vmatprep.subr.bf16.mxu1 %v11084_v16  ;;  %v9704_v16 = vld [vmem:[%s12643_s5 + $0x170] ss:$12 sps:$4 sm:$0xff]  }
 0x69f   : > { %8458 = vmatpush3.bf16.msra.mxu1 %v11046_v20  ;;  %v9697_v20 = vld [vmem:[%s12643_s5 + $0xc8] ss:$12 sps:$4 sm:$0xff]  }
 0x6a0   : > { %8459 = vmatprep.subr.bf16.mxu1 %v11090_v34  ;;  %v9707_v34 = vld [vmem:[%s12644_s6 + $0x4] ss:$12 sps:$4 sm:$0xff]  }
 0x6a2   : > { %8753 = vmatmul.mubr.bf16.gmra.mrb[8].mxu1 %v9694_v46 }
 0x6a3   : > { %8460 = vmatpush3.bf16.msra.mxu1 %v11050_v42  ;;  %8756 = vmatprep.mubr.bf16.mxu1 %v9695_v31  ;;  %v9698_v42 = vld [vmem:[%s12643_s5 + $0xe0] ss:$12 sps:$4 sm:$0xff]  }
 0x6a4   : > { %8461 = vmatprep.subr.bf16.mxu1 %v11096_v27  ;;  %v9705_v27 = vld [vmem:[%s12644_s6] ss:$12 sps:$4 sm:$0xff]  }
 0x6a7   : > { %8462 = vmatpush3.bf16.msra.mxu1 %v11054_v36  ;;  %v9699_v36 = vld [vmem:[%s12643_s5 + $0xf8] ss:$12 sps:$4 sm:$0xff]  }
 0x6a8   : > { %8463 = vmatprep.subr.bf16.mxu1 %v11102_v55  ;;  %v9710_v55 = vld [vmem:[%s12644_s6 + $0x1c] ss:$12 sps:$4 sm:$0xff]  }
 0x6aa   : > { %8757 = vmatmul.mubr.bf16.gmra.mrb[12].mxu1 %v9696_v56 }
 0x6ab   : > { %8464 = vmatpush3.bf16.msra.mxu1 %v11058_v52  ;;  %8760 = vmatprep.mubr.bf16.mxu1 %v9697_v20  ;;  %v9700_v52 = vld [vmem:[%s12643_s5 + $0x110] ss:$12 sps:$4 sm:$0xff]   ;;  %v9732_v20 = vld [vmem:[%s12644_s6 + $0xd8] ss:$12 sps:$4 sm:$0xff]  }
 0x6ac   : > { %8465 = vmatprep.subr.bf16.mxu1 %v11108_v13  ;;  %v9708_v13 = vld [vmem:[%s12644_s6 + $0x18] ss:$12 sps:$4 sm:$0xff]  }
 0x6af   : > { %8466 = vmatpush3.bf16.msra.mxu1 %v11062_v61  ;;  %v9702_v61 = vld [vmem:[%s12643_s5 + $0x140] ss:$12 sps:$4 sm:$0xff]  }
 0x6b0   : > { %8776 = vmatprep.subr.bf16.mxu1 %v11120_v45 }
 0x6b2   : > { %8761 = vmatmul.mubr.bf16.gmra.mrb[16].mxu1 %v9698_v42 }
 0x6b3   : > { %8764 = vmatprep.mubr.bf16.mxu1 %v9699_v36  ;;  %v9737_v36 = vld [vmem:[%s12644_s6 + $0xf4] ss:$12 sps:$4 sm:$0xff]  }
 0x6ba   : > { %8765 = vmatmul.mubr.bf16.gmra.mrb[20].mxu1 %v9700_v52 }
 0x6bb   : > { %8768 = vmatprep.mubr.bf16.mxu1 %v9701_v54 }
 0x6c2   : > { %8769 = vmatmul.mubr.bf16.gmra.mrb[24].mxu1 %v9702_v61 }
 0x6c3   : > { %8772 = vmatprep.mubr.bf16.mxu1 %v9703_v18 }
 0x6ca   : > { %8773 = vmatmul.mubr.bf16.gmra.mrb[28].mxu1 %v9704_v16 }
 0x6cb   : > { %5062 = vmatprep.mubr.bf16.mxu1 %v9707_v34  ;;  %v9735_v34 = vld [vmem:[%s12644_s6 + $0xf0] ss:$12 sps:$4 sm:$0xff]  }
 0x6d2   : > { %5063 = vmatmul.mubr.bf16.vlgmr.msra.gmra.mrb[32].mxu1 %v9705_v27 }
 0x6d3   : > { %8777 = vmatpush3.bf16.msra.mxu1 %v11120_v45  ;;  %5070 = vmatprep.mubr.bf16.mxu1 %v9710_v55  ;;  %v9711_v45 = vld [vmem:[%s12644_s6 + $0x30] ss:$12 sps:$4 sm:$0xff]   ;;  %v9740_v55 = vld [vmem:[%s12644_s6 + $0x10c] ss:$12 sps:$4 sm:$0xff]  }
 0x6d4   : > { %8778 = vmatprep.subr.bf16.mxu1 %v11132_v17 }
 0x6d7   : > { %8779 = vmatpush3.bf16.msra.mxu1 %v11132_v17  ;;  %v9716_v17 = vld [vmem:[%s12644_s6 + $0x4c] ss:$12 sps:$4 sm:$0xff]  }
 0x6d8   : > { %8780 = vmatprep.subr.bf16.mxu1 %v11144_v3 }
 0x6da   : > { %5071 = vmatmul.mubr.bf16.gmra.mrb[36].mxu1 %v9708_v13 }
 0x6db   : > { %8781 = vmatpush3.bf16.msra.mxu1 %v11144_v3  ;;  %5078 = vmatprep.mubr.bf16.mxu1 %v9713_v63 }
 0x6dc   : > { %8782 = vmatprep.subr.bf16.mxu1 %v11156_v19 }
 0x6df   : > { %8783 = vmatpush3.bf16.msra.mxu1 %v11156_v19  ;;  %v9719_v19 = vld [vmem:[%s12644_s6 + $0x64] ss:$12 sps:$4 sm:$0xff]  }
 0x6e0   : > { %8784 = vmatprep.subr.bf16.mxu1 %v11168_v14 }
 0x6e2   : > { %5079 = vmatmul.mubr.bf16.gmra.mrb[40].mxu1 %v9711_v45 }
 0x6e3   : > { %8785 = vmatpush3.bf16.msra.mxu1 %v11168_v14  ;;  %5086 = vmatprep.mubr.bf16.mxu1 %v9716_v17 }
 0x6e4   : > { %8786 = vmatprep.subr.bf16.mxu1 %v11180_v48 }
 0x6e5   : > { %v8331_v3 = vpop.f32.mrb[192].mxu1 }
 0x6e6   : > { %v8332_v2 = vpop.f32.mrb[193].mxu1 }
 0x6e7   : > { %8787 = vmatpush3.bf16.msra.mxu1 %v11180_v48  ;;  %v11356_v60 = vadd.f32 %v8332_v2, %v8331_v3  ;;  %v8334_v7 = vpop.f32.mrb[194].mxu1  ;;  %v9717_v48 = vld [vmem:[%s12644_s6 + $0x60] ss:$12 sps:$4 sm:$0xff]  }
 0x6e8   : > { %8788 = vmatprep.subr.bf16.mxu1 %v11192_v38  ;;  %v8335_v14 = vpop.f32.mrb[195].mxu1 }
 0x6e9   : > { %v11359_v59 = vadd.f32 %v8335_v14, %v8334_v7 }
 0x6ea   : > { %5087 = vmatmul.mubr.bf16.gmra.mrb[44].mxu1 %v9714_v32  ;;  %v9738_v32 = vld [vmem:[%s12644_s6 + $0x108] ss:$12 sps:$4 sm:$0xff]  }
 0x6eb   : > { %8789 = vmatpush3.bf16.msra.mxu1 %v11192_v38  ;;  %5094 = vmatprep.mubr.bf16.mxu1 %v9719_v19  ;;  %v9743_v19 = vld [vmem:[%s12644_s6 + $0x124] ss:$12 sps:$4 sm:$0xff]  }
 0x6ec   : > { %8790 = vmatprep.subr.bf16.mxu1 %v11204_v5 }
 0x6ed   : > { %v8337_v29 = vpop.f32.mrb[196].mxu1 }
 0x6ee   : > { %v8338_v62 = vpop.f32.mrb[197].mxu1 }
 0x6ef   : > { %8791 = vmatpush3.bf16.msra.mxu1 %v11204_v5  ;;  %v11370_v23 = vadd.f32 %v8338_v62, %v8337_v29  ;;  %v8340_v0 = vpop.f32.mrb[198].mxu1  ;;  %v9723_v5 = vld [vmem:[%s12644_s6 + $0x90] ss:$12 sps:$4 sm:$0xff]  }
 0x6f0   : > { %v8341_v35 = vpop.f32.mrb[199].mxu1 }
 0x6f1   : > { %v11372_v49 = vadd.f32 %v8341_v35, %v8340_v0  ;;  %v9746_v35 = vld [vmem:[%s12644_s6 + $0x13c] ss:$12 sps:$4 sm:$0xff]  }
 0x6f2   : > { %5095 = vmatmul.mubr.bf16.gmra.mrb[48].mxu1 %v9717_v48 }
 0x6f3   : > { %5102 = vmatprep.mubr.bf16.mxu1 %v9722_v26  ;;  %v9741_v26 = vld [vmem:[%s12644_s6 + $0x120] ss:$12 sps:$4 sm:$0xff]  }
 0x6f5   : > { %v8343_v38 = vpop.f32.mrb[200].mxu1 }
 0x6f6   : > { %v8344_v58 = vpop.f32.mrb[201].mxu1 }
 0x6f7   : > { %v11380_v30 = vadd.f32 %v8344_v58, %v8343_v38  ;;  %v8346_v43 = vpop.f32.mrb[202].mxu1 }
 0x6f8   : > { %v8347_v33 = vpop.f32.mrb[203].mxu1 }
 0x6f9   : > { %v11382_v15 = vadd.f32 %v8347_v33, %v8346_v43  ;;  %v9744_v33 = vld [vmem:[%s12644_s6 + $0x138] ss:$12 sps:$4 sm:$0xff]  }
 0x6fa   : > { %5103 = vmatmul.mubr.bf16.gmra.mrb[52].mxu1 %v9720_v1 }
 0x6fb   : > { %5110 = vmatprep.mubr.bf16.mxu1 %v9725_v50 }
 0x6fd   : > { %v8349_v24 = vpop.f32.mrb[204].mxu1 }
 0x6fe   : > { %v8350_v11 = vpop.f32.mrb[205].mxu1 }
 0x6ff   : > { %v11390_v40 = vadd.f32 %v8350_v11, %v8349_v24  ;;  %v8352_v22 = vpop.f32.mrb[206].mxu1 }
 0x700   : > { %v8353_v57 = vpop.f32.mrb[207].mxu1 }
 0x701   : > { %v11392_v6 = vadd.f32 %v8353_v57, %v8352_v22 }
 0x702   : > { %5111 = vmatmul.mubr.bf16.gmra.mrb[56].mxu1 %v9723_v5  ;;  %v9749_v5 = vld [vmem:[%s12644_s6 + $0x154] ss:$12 sps:$4 sm:$0xff]  }
 0x703   : > { %5118 = vmatprep.mubr.bf16.mxu1 %v9728_v12 }
 0x705   : > { %v8355_v53 = vpop.f32.mrb[208].mxu1 }
 0x706   : > { %v8356_v10 = vpop.f32.mrb[209].mxu1 }
 0x707   : > { %v11400_v25 = vadd.f32 %v8356_v10, %v8355_v53  ;;  %v8358_v47 = vpop.f32.mrb[210].mxu1 }
 0x708   : > { %v8359_v44 = vpop.f32.mrb[211].mxu1 }
 0x709   : > { %v11402_v8 = vadd.f32 %v8359_v44, %v8358_v47 }
 0x70a   : > { %5119 = vmatmul.mubr.bf16.gmra.mrb[60].mxu1 %v9726_v37  ;;  %v9747_v37 = vld [vmem:[%s12644_s6 + $0x150] ss:$12 sps:$4 sm:$0xff]  }
 0x70b   : > { %5126 = vmatprep.mubr.bf16.mxu1 %v9731_v51  ;;  %v9752_v51 = vld [vmem:[%s12644_s6 + $0x16c] ss:$12 sps:$4 sm:$0xff]  }
 0x70d   : > { %v8361_v39 = vpop.f32.mrb[212].mxu1 }
 0x70e   : > { %v8362_v9 = vpop.f32.mrb[213].mxu1 }
 0x70f   : > { %v11410_v4 = vadd.f32 %v8362_v9, %v8361_v39  ;;  %v8364_v21 = vpop.f32.mrb[214].mxu1 }
 0x710   : > { %v8365_v46 = vpop.f32.mrb[215].mxu1 }
 0x711   : > { %v11412_v31 = vadd.f32 %v8365_v46, %v8364_v21  ;;  %v9753_v46 = vld [vmem:[%s12644_s6 + $0x8] ss:$12 sps:$4 sm:$0xff]  }
 0x712   : > { %5127 = vmatmul.mubr.bf16.gmra.mrb[64].mxu1 %v9729_v41 }
 0x713   : > { %5134 = vmatprep.mubr.bf16.mxu1 %v9734_v28  ;;  %v9750_v28 = vld [vmem:[%s12644_s6 + $0x168] ss:$12 sps:$4 sm:$0xff]  }
 0x715   : > { %v8367_v56 = vpop.f32.mrb[216].mxu1 }
 0x716   : > { %v8368_v42 = vpop.f32.mrb[217].mxu1 }
 0x717   : > { %v11420_v52 = vadd.f32 %v8368_v42, %v8367_v56  ;;  %v8370_v54 = vpop.f32.mrb[218].mxu1 }
 0x718   : > { %v8371_v61 = vpop.f32.mrb[219].mxu1 }
 0x719   : > { %v11422_v18 = vadd.f32 %v8371_v61, %v8370_v54  ;;  %v9754_v61 = vld [vmem:[%s12644_s6 + $0x20] ss:$12 sps:$4 sm:$0xff]  }
 0x71a   : > { %5135 = vmatmul.mubr.bf16.gmra.mrb[68].mxu1 %v9732_v20 }
 0x71b   : > { %5142 = vmatprep.mubr.bf16.mxu1 %v9737_v36 }
 0x71d   : > { %v8373_v16 = vpop.f32.mrb[220].mxu1 }
 0x71e   : > { %v8374_v27 = vpop.f32.mrb[221].mxu1 }
 0x71f   : > { %v11430_v13 = vadd.f32 %v8374_v27, %v8373_v16  ;;  %v8376_v63 = vpop.f32.mrb[222].mxu1 }
 0x720   : > { %v8377_v45 = vpop.f32.mrb[223].mxu1 }
 0x721   : > { %v11432_v17 = vadd.f32 %v8377_v45, %v8376_v63 }
 0x722   : > { %5143 = vmatmul.mubr.bf16.gmra.mrb[72].mxu1 %v9735_v34  ;;  %v9755_v34 = vld [vmem:[%s12644_s6 + $0x38] ss:$12 sps:$4 sm:$0xff]  }
 0x723   : > { %5150 = vmatprep.mubr.bf16.mxu1 %v9740_v55 }
 0x725   : > { %v8379_v3 = vpop.f32.mrb[224].mxu1 }
 0x726   : > { %v8380_v2 = vpop.f32.mrb[225].mxu1 }
 0x727   : > { %v11440_v7 = vadd.f32 %v8380_v2, %v8379_v3  ;;  %v8382_v14 = vpop.f32.mrb[226].mxu1 }
 0x728   : > { %v8383_v29 = vpop.f32.mrb[227].mxu1 }
 0x729   : > { %v11442_v48 = vadd.f32 %v8383_v29, %v8382_v14  ;;  %v9757_v14 = vld [vmem:[%s12644_s6 + $0x68] ss:$12 sps:$4 sm:$0xff]  }
 0x72a   : > { %5151 = vmatmul.mubr.bf16.gmra.mrb[76].mxu1 %v9738_v32  ;;  %v9756_v32 = vld [vmem:[%s12644_s6 + $0x50] ss:$12 sps:$4 sm:$0xff]  }
 0x72b   : > { %5158 = vmatprep.mubr.bf16.mxu1 %v9743_v19 }
 0x72d   : > { %v8385_v62 = vpop.f32.mrb[228].mxu1 }
 0x72e   : > { %v8386_v0 = vpop.f32.mrb[229].mxu1 }
 0x72f   : > { %v11450_v38 = vadd.f32 %v8386_v0, %v8385_v62  ;;  %v8388_v1 = vpop.f32.mrb[230].mxu1 }
 0x730   : > { %v8389_v58 = vpop.f32.mrb[231].mxu1 }
 0x731   : > { %v11452_v50 = vadd.f32 %v8389_v58, %v8388_v1 }
 0x732   : > { %5159 = vmatmul.mubr.bf16.gmra.mrb[80].mxu1 %v9741_v26 }
 0x733   : > { %5166 = vmatprep.mubr.bf16.mxu1 %v9746_v35  ;;  %v9758_v35 = vld [vmem:[%s12644_s6 + $0x80] ss:$12 sps:$4 sm:$0xff]  }
 0x735   : > { %v8391_v43 = vpop.f32.mrb[232].mxu1 }
 0x736   : > { %v8392_v24 = vpop.f32.mrb[233].mxu1 }
 0x737   : > { %v11460_v11 = vadd.f32 %v8392_v24, %v8391_v43  ;;  %v8394_v12 = vpop.f32.mrb[234].mxu1 }
 0x738   : > { %v8395_v22 = vpop.f32.mrb[235].mxu1 }
 0x739   : > { %v11462_v57 = vadd.f32 %v8395_v22, %v8394_v12 }
 0x73a   : > { %5167 = vmatmul.mubr.bf16.gmra.mrb[84].mxu1 %v9744_v33  ;;  %v9759_v33 = vld [vmem:[%s12644_s6 + $0x98] ss:$12 sps:$4 sm:$0xff]  }
 0x73b   : > { %5174 = vmatprep.mubr.bf16.mxu1 %v9749_v5 }
 0x73d   : > { %v8397_v53 = vpop.f32.mrb[236].mxu1 }
 0x73e   : > { %v8398_v10 = vpop.f32.mrb[237].mxu1 }
 0x73f   : > { %v11470_v47 = vadd.f32 %v8398_v10, %v8397_v53  ;;  %v8400_v44 = vpop.f32.mrb[238].mxu1 }
 0x740   : > { %v8401_v39 = vpop.f32.mrb[239].mxu1 }
 0x741   : > { %v11472_v41 = vadd.f32 %v8401_v39, %v8400_v44  ;;  %v9761_v44 = vld [vmem:[%s12644_s6 + $0xc8] ss:$12 sps:$4 sm:$0xff]  }
 0x742   : > { %5175 = vmatmul.mubr.bf16.gmra.mrb[88].mxu1 %v9747_v37  ;;  %v9760_v37 = vld [vmem:[%s12644_s6 + $0xb0] ss:$12 sps:$4 sm:$0xff]  }
 0x743   : > { %5182 = vmatprep.mubr.bf16.mxu1 %v9752_v51 }
 0x745   : > { %v8403_v9 = vpop.f32.mrb[240].mxu1 }
 0x746   : > { %v8404_v21 = vpop.f32.mrb[241].mxu1 }
 0x747   : > { %v11480_v56 = vadd.f32 %v8404_v21, %v8403_v9  ;;  %v8406_v20 = vpop.f32.mrb[242].mxu1 }
 0x748   : > { %v8407_v42 = vpop.f32.mrb[243].mxu1 }
 0x749   : > { %v11482_v36 = vadd.f32 %v8407_v42, %v8406_v20 }
 0x74a   : > { %5183 = vmatmul.mubr.bf16.gmra.mrb[92].mxu1 %v9750_v28 }
 0x74b   : > { %8792 = vmatprep.mubr.bf16.mxu1 %v9753_v46 }
 0x74d   : > { %v8409_v54 = vpop.f32.mrb[244].mxu1 }
 0x74e   : > { %v8410_v16 = vpop.f32.mrb[245].mxu1 }
 0x74f   : > { %v11490_v27 = vadd.f32 %v8410_v16, %v8409_v54  ;;  %v8412_v55 = vpop.f32.mrb[246].mxu1 }
 0x750   : > { %v8413_v63 = vpop.f32.mrb[247].mxu1 }
 0x751   : > { %v11492_v45 = vadd.f32 %v8413_v63, %v8412_v55 }
 0x752   : > { %8793 = vmatmul.mubr.bf16.vlgmr.msra.gmra.mrb[96].mxu1 %v9754_v61 }
 0x753   : > { %8796 = vmatprep.mubr.bf16.mxu1 %v9755_v34 }
 0x755   : > { %v8415_v3 = vpop.f32.mrb[248].mxu1 }
 0x756   : > { %v8416_v2 = vpop.f32.mrb[249].mxu1 }
 0x757   : > { %v11497_v19 = vadd.f32 %v8416_v2, %v8415_v3  ;;  %v8418_v29 = vpop.f32.mrb[250].mxu1  ;;  %v9766_v2 = vld [vmem:[%s12644_s6 + $0x140] ss:$12 sps:$4 sm:$0xff]  }
 0x758   : > { %v8419_v62 = vpop.f32.mrb[251].mxu1 }
 0x759   : > { %v11502_v26 = vadd.f32 %v8419_v62, %v8418_v29 }
 0x75a   : > { %8797 = vmatmul.mubr.bf16.gmra.mrb[100].mxu1 %v9756_v32 }
 0x75b   : > { %8800 = vmatprep.mubr.bf16.mxu1 %v9757_v14 }
 0x75d   : > { %v8421_v0 = vpop.f32.mrb[252].mxu1 }
 0x75e   : > { %v8422_v1 = vpop.f32.mrb[253].mxu1 }
 0x75f   : > { %v11507_v58 = vadd.f32 %v8422_v1, %v8421_v0  ;;  %v8424_v43 = vpop.f32.mrb[254].mxu1  ;;  %v9768_v1 = vld [vmem:[%s12644_s6 + $0x170] ss:$12 sps:$4 sm:$0xff]  }
 0x760   : > { %v8425_v24 = vpop.f32.mrb[255].mxu1 }
 0x761   : > { %v11512_v5 = vadd.f32 %v8425_v24, %v8424_v43 }
 0x762   : > { %8801 = vmatmul.mubr.bf16.gmra.mrb[104].mxu1 %v9758_v35 }
 0x763   : > { %8804 = vmatprep.mubr.bf16.mxu1 %v9759_v33 }
 0x765   : > { %v8746_v12 = vpop.f32.mrb[0].mxu1 }
 0x766   : > { %v11515_v22 = vadd.f32 %v8746_v12, %v11370_v23  ;;  %v4583_v53 = vpop.f32.mrb[1].mxu1 }
 0x767   : > { %v11521_v10 = vadd.f32 %v11356_v60, %v4583_v53  ;;  %v8747_v51 = vpop.f32.mrb[2].mxu1  ;;  %v9762_v60 = vld [vmem:[%s12644_s6 + $0xe0] ss:$12 sps:$4 sm:$0xff]  }
 0x768   : > { %v11527_v39 = vadd.f32 %v8747_v51, %v11372_v49  ;;  %v4586_v9 = vpop.f32.mrb[3].mxu1  ;;  %v9763_v49 = vld [vmem:[%s12644_s6 + $0xf8] ss:$12 sps:$4 sm:$0xff]  }
 0x769   : > { %v11530_v23 = vadd.f32 %v11359_v59, %v4586_v9 }
 0x76a   : > { %8805 = vmatmul.mubr.bf16.gmra.mrb[108].mxu1 %v9760_v37 }
 0x76b   : > { %8808 = vmatprep.mubr.bf16.mxu1 %v9761_v44 }
 0x76d   : > { %v8750_v28 = vpop.f32.mrb[4].mxu1 }
 0x76e   : > { %v11536_v21 = vadd.f32 %v8750_v28, %v11390_v40  ;;  %v4599_v46 = vpop.f32.mrb[5].mxu1 }
 0x76f   : > { %v11539_v20 = vadd.f32 %v11380_v30, %v4599_v46  ;;  %v8751_v59 = vpop.f32.mrb[6].mxu1  ;;  %v9764_v30 = vld [vmem:[%s12644_s6 + $0x110] ss:$12 sps:$4 sm:$0xff]  }
 0x770   : > { %v11545_v42 = vadd.f32 %v8751_v59, %v11392_v6  ;;  %v4602_v54 = vpop.f32.mrb[7].mxu1  ;;  %v9765_v6 = vld [vmem:[%s12644_s6 + $0x128] ss:$12 sps:$4 sm:$0xff]  }
 0x771   : > { %v11548_v61 = vadd.f32 %v11382_v15, %v4602_v54 }
 0x772   : > { %8809 = vmatmul.mubr.bf16.gmra.mrb[112].mxu1 %v9762_v60 }
 0x773   : > { %8812 = vmatprep.mubr.bf16.mxu1 %v9763_v49 }
 0x775   : > { %v8754_v40 = vpop.f32.mrb[8].mxu1 }
 0x776   : > { %v11554_v16 = vadd.f32 %v8754_v40, %v11410_v4  ;;  %v4615_v34 = vpop.f32.mrb[9].mxu1 }
 0x777   : > { %v11560_v55 = vadd.f32 %v11400_v25, %v4615_v34  ;;  %v8755_v15 = vpop.f32.mrb[10].mxu1 }
 0x778   : > { %v11563_v63 = vadd.f32 %v8755_v15, %v11412_v31  ;;  %v4618_v3 = vpop.f32.mrb[11].mxu1  ;;  %v9767_v31 = vld [vmem:[%s12644_s6 + $0x158] ss:$12 sps:$4 sm:$0xff]  }
 0x779   : > { %v11566_v32 = vadd.f32 %v11402_v8, %v4618_v3 }
 0x77a   : > { %8813 = vmatmul.mubr.bf16.gmra.mrb[116].mxu1 %v9764_v30 }
 0x77b   : > { %8816 = vmatprep.mubr.bf16.mxu1 %v9765_v6 }
 0x77d   : > { %v8758_v4 = vpop.f32.mrb[12].mxu1 }
 0x77e   : > { %v11572_v14 = vadd.f32 %v8758_v4, %v11430_v13  ;;  %v4631_v25 = vpop.f32.mrb[13].mxu1  ;;  %v9771_v4 = vld [vmem:[%s12645_s7 + $0x34] sm:$0xff]  }
 0x77f   : > { %v11578_v29 = vadd.f32 %v11420_v52, %v4631_v25  ;;  %v8759_v8 = vpop.f32.mrb[14].mxu1 }
 0x780   : > { %v11581_v62 = vadd.f32 %v8759_v8, %v11432_v17  ;;  %v4634_v0 = vpop.f32.mrb[15].mxu1 }
 0x781   : > { %v11584_v35 = vadd.f32 %v11422_v18, %v4634_v0 }
 0x782   : > { %8817 = vmatmul.mubr.bf16.gmra.mrb[120].mxu1 %v9766_v2 }
 0x783   : > { %8820 = vmatprep.mubr.bf16.mxu1 %v9767_v31 }
 0x785   : > { %v8762_v13 = vpop.f32.mrb[16].mxu1 }
 0x786   : > { %v11590_v43 = vadd.f32 %v8762_v13, %v11450_v38  ;;  %v4647_v52 = vpop.f32.mrb[17].mxu1  ;;  %v9772_v13 = vld [vmem:[%s12645_s7 + $0x3c] sm:$0xff]  }
 0x787   : > { %v11593_v33 = vadd.f32 %v11440_v7, %v4647_v52  ;;  %v8763_v17 = vpop.f32.mrb[18].mxu1 }
 0x788   : > { %v11596_v24 = vadd.f32 %v8763_v17, %v11452_v50  ;;  %v4650_v18 = vpop.f32.mrb[19].mxu1 }
 0x789   : > { %v11599_v12 = vadd.f32 %v11442_v48, %v4650_v18 }
 0x78a   : > { %8821 = vmatmul.mubr.bf16.gmra.mrb[124].mxu1 %v9768_v1 }
 0x78d   : > { %v8766_v53 = vpop.f32.mrb[20].mxu1 }
 0x78e   : > { %v11602_v37 = vadd.f32 %v8766_v53, %v11470_v47  ;;  %v4663_v51 = vpop.f32.mrb[21].mxu1 }
 0x78f   : > { %v11605_v38 = vadd.f32 %v11460_v11, %v4663_v51  ;;  %v8767_v44 = vpop.f32.mrb[22].mxu1 }
 0x790   : > { %v11608_v7 = vadd.f32 %v8767_v44, %v11472_v41  ;;  %v4666_v9 = vpop.f32.mrb[23].mxu1  ;;  %v9773_v44 = vld [vmem:[%s12645_s7 + $0x44] ss:$0 sps:$4 sm:$0xff]  }
 0x791   : > { %v11611_v50 = vadd.f32 %v11462_v57, %v4666_v9  ;;  %v5570_v9 = vsel %vm5568_vm3, %v9773_v44, 0 }
 0x792   : > { %12678 = vst [vmem:[#allocation3_spill] sm:$0xff] %v11608_v7 }
 0x793   : > { %12679 = vst [vmem:[#allocation4_spill] sm:$0xff] %v11611_v50 }
 0x795   : > { %v8770_v28 = vpop.f32.mrb[24].mxu1 }
 0x796   : > { %v11614_v48 = vadd.f32 %v8770_v28, %v11490_v27  ;;  %v4679_v60 = vpop.f32.mrb[25].mxu1 }
 0x797   : > { %v11617_v47 = vadd.f32 %v11480_v56, %v4679_v60  ;;  %v8771_v46 = vpop.f32.mrb[26].mxu1 }
 0x798   : > { %12680 = vst [vmem:[#allocation5_spill] sm:$0xff] %v11614_v48  ;;  %v11620_v11 = vadd.f32 %v8771_v46, %v11492_v45  ;;  %v4682_v49 = vpop.f32.mrb[27].mxu1 }
 0x799   : > { %12681 = vst [vmem:[#allocation6_spill] sm:$0xff] %v11617_v47  ;;  %v11623_v41 = vadd.f32 %v11482_v36, %v4682_v49  ;;  %v9769_v36 = vld [vmem:[%s12645_s7 + $0x24] sm:$0xff]  }
 0x79a   : > { %12682 = vst [vmem:[#allocation7_spill] sm:$0xff] %v11620_v11  ;;  %8824 = vmatprep.subr.bf16.mxu1 %v9769_v36 }
 0x79b   : > { %12683 = vst [vmem:[#allocation8_spill] sm:$0xff] %v11623_v41  ;;  %8825 = vmatpush3.bf16.msra.mxu1 %v9769_v36 }
 0x79d   : > { %v8774_v59 = vpop.f32.mrb[28].mxu1 }
 0x79e   : > { %v11626_v57 = vadd.f32 %v8774_v59, %v11507_v58  ;;  %v4695_v54 = vpop.f32.mrb[29].mxu1 }
 0x79f   : > { %v11629_v27 = vadd.f32 %v11497_v19, %v4695_v54  ;;  %v8775_v40 = vpop.f32.mrb[30].mxu1 }
 0x7a0   : > { %12684 = vst [vmem:[#allocation9_spill] sm:$0xff] %v11626_v57  ;;  %v11632_v56 = vadd.f32 %v8775_v40, %v11512_v5  ;;  %v4698_v30 = vpop.f32.mrb[31].mxu1  ;;  %v9770_v5 = vld [vmem:[%s12645_s7 + $0x2c] sm:$0xff]  }
 0x7a1   : > { %12685 = vst [vmem:[#allocation10_spill] sm:$0xff] %v11629_v27  ;;  %v11635_v45 = vadd.f32 %v11502_v26, %v4698_v30  ;;  %8826 = vmatprep.subr.bf16.mxu1 %v9770_v5 }
 0x7a2   : > { %12686 = vst [vmem:[#allocation11_spill] sm:$0xff] %v11632_v56  ;;  %8827 = vmatpush3.bf16.msra.mxu1 %v9770_v5 }
 0x7a3   : > { %12687 = vst [vmem:[#allocation12_spill] sm:$0xff] %v11635_v45  ;;  %8828 = vmatprep.subr.bf16.mxu1 %v9771_v4 }
 0x7a5   : > { %v8467_v34 = vpop.f32.mrb[32].mxu1 }
 0x7a6   : > { %v8468_v6 = vpop.f32.mrb[33].mxu1  ;;  %8829 = vmatpush3.bf16.msra.mxu1 %v9771_v4 }
 0x7a7   : > { %v11640_v58 = vadd.f32 %v8468_v6, %v8467_v34  ;;  %v8470_v15 = vpop.f32.mrb[34].mxu1  ;;  %8830 = vmatprep.subr.bf16.mxu1 %v9772_v13 }
 0x7a8   : > { %v8471_v19 = vpop.f32.mrb[35].mxu1 }
 0x7a9   : > { %v11642_v3 = vadd.f32 %v8471_v19, %v8470_v15 }
 0x7aa   : > { %8831 = vmatpush3.bf16.msra.mxu1 %v9772_v13 }
 0x7ab   : > { %9562 = vmatprep.subr.msk.bf16.mxu1 %vm5568_vm3, %v9773_v44 }
 0x7ad   : > { %v8473_v26 = vpop.f32.mrb[36].mxu1 }
 0x7ae   : > { %v8474_v2 = vpop.f32.mrb[37].mxu1  ;;  %8833 = vmatpush3.bf16.msra.mxu1 %v5570_v9 }
 0x7af   : > { %v11650_v25 = vadd.f32 %v8474_v2, %v8473_v26  ;;  %v8476_v31 = vpop.f32.mrb[38].mxu1 }
 0x7b0   : > { %v8477_v8 = vpop.f32.mrb[39].mxu1 }
 0x7b1   : > { %v11652_v0 = vadd.f32 %v8477_v8, %v8476_v31 }
 0x7b5   : > { %v8479_v1 = vpop.f32.mrb[40].mxu1 }
 0x7b6   : > { %v8480_v52 = vpop.f32.mrb[41].mxu1 }
 0x7b7   : > { %v11657_v17 = vadd.f32 %v8480_v52, %v8479_v1  ;;  %v8482_v18 = vpop.f32.mrb[42].mxu1 }
 0x7b8   : > { %v8483_v53 = vpop.f32.mrb[43].mxu1 }
 0x7b9   : > { %v11659_v51 = vadd.f32 %v8483_v53, %v8482_v18 }
 0x7bd   : > { %v8485_v28 = vpop.f32.mrb[44].mxu1 }
 0x7be   : > { %v8486_v60 = vpop.f32.mrb[45].mxu1 }
 0x7bf   : > { %v11666_v46 = vadd.f32 %v8486_v60, %v8485_v28  ;;  %v8488_v49 = vpop.f32.mrb[46].mxu1 }
 0x7c0   : > { %v8489_v59 = vpop.f32.mrb[47].mxu1 }
 0x7c1   : > { %v11668_v54 = vadd.f32 %v8489_v59, %v8488_v49 }
 0x7c5   : > { %v8491_v40 = vpop.f32.mrb[48].mxu1 }
 0x7c6   : > { %v8492_v30 = vpop.f32.mrb[49].mxu1 }
 0x7c7   : > { %v11670_v34 = vadd.f32 %v8492_v30, %v8491_v40  ;;  %v8494_v36 = vpop.f32.mrb[50].mxu1 }
 0x7c8   : > { %v8495_v6 = vpop.f32.mrb[51].mxu1 }
 0x7c9   : > { %v11672_v15 = vadd.f32 %v8495_v6, %v8494_v36  ;;  %v11689_v36 = vld [vmem:[%s12645_s7] sm:$0xff]  }
 0x7ca   : > { %8850 = vmatprep.subr.bf16.mxu1 %v11689_v36 }
 0x7cd   : > { %v8497_v19 = vpop.f32.mrb[52].mxu1 }
 0x7ce   : > { %v8498_v5 = vpop.f32.mrb[53].mxu1 }
 0x7cf   : > { %v11674_v26 = vadd.f32 %v8498_v5, %v8497_v19  ;;  %v8500_v4 = vpop.f32.mrb[54].mxu1 }
 0x7d0   : > { %v8501_v2 = vpop.f32.mrb[55].mxu1 }
 0x7d1   : > { %v11676_v31 = vadd.f32 %v8501_v2, %v8500_v4 }
 0x7d5   : > { %v8503_v8 = vpop.f32.mrb[56].mxu1 }
 0x7d6   : > { %v8504_v13 = vpop.f32.mrb[57].mxu1 }
 0x7d7   : > { %v11678_v1 = vadd.f32 %v8504_v13, %v8503_v8  ;;  %v8506_v52 = vpop.f32.mrb[58].mxu1 }
 0x7d8   : > { %v8507_v18 = vpop.f32.mrb[59].mxu1 }
 0x7d9   : > { %v11680_v53 = vadd.f32 %v8507_v18, %v8506_v52 }
 0x7dd   : > { %v8509_v44 = vpop.f32.mrb[60].mxu1 }
 0x7de   : > { %v8510_v9 = vpop.f32.mrb[61].mxu1 }
 0x7df   : > { %v11682_v28 = vadd.f32 %v8510_v9, %v8509_v44  ;;  %v8512_v60 = vpop.f32.mrb[62].mxu1 }
 0x7e0   : > { %v8513_v49 = vpop.f32.mrb[63].mxu1 }
 0x7e1   : > { %v11684_v59 = vadd.f32 %v8513_v49, %v8512_v60 }
 0x7e5   : > { %v8515_v40 = vpop.f32.mrb[64].mxu1 }
 0x7e6   : > { %v8516_v30 = vpop.f32.mrb[65].mxu1 }
 0x7e7   : > { %v11691_v6 = vadd.f32 %v8516_v30, %v8515_v40  ;;  %v8518_v19 = vpop.f32.mrb[66].mxu1 }
 0x7e8   : > { %v8519_v5 = vpop.f32.mrb[67].mxu1 }
 0x7e9   : > { %v11694_v4 = vadd.f32 %v8519_v5, %v8518_v19 }
 0x7ed   : > { %v8521_v2 = vpop.f32.mrb[68].mxu1 }
 0x7ee   : > { %v8522_v8 = vpop.f32.mrb[69].mxu1 }
 0x7ef   : > { %v11696_v13 = vadd.f32 %v8522_v8, %v8521_v2  ;;  %v8524_v52 = vpop.f32.mrb[70].mxu1 }
 0x7f0   : > { %v8525_v18 = vpop.f32.mrb[71].mxu1 }
 0x7f1   : > { %v11698_v44 = vadd.f32 %v8525_v18, %v8524_v52 }
 0x7f5   : > { %v8527_v9 = vpop.f32.mrb[72].mxu1 }
 0x7f6   : > { %v8528_v60 = vpop.f32.mrb[73].mxu1 }
 0x7f7   : > { %v11700_v49 = vadd.f32 %v8528_v60, %v8527_v9  ;;  %v8530_v40 = vpop.f32.mrb[74].mxu1 }
 0x7f8   : > { %v8531_v30 = vpop.f32.mrb[75].mxu1 }
 0x7f9   : > { %v11702_v45 = vadd.f32 %v8531_v30, %v8530_v40 }
 0x7fb   : > { %12688 = vst [vmem:[#allocation13_spill] sm:$0xff] %v11702_v45 }
 0x7fd   : > { %v8533_v56 = vpop.f32.mrb[76].mxu1 }
 0x7fe   : > { %v8534_v27 = vpop.f32.mrb[77].mxu1 }
 0x7ff   : > { %v11704_v19 = vadd.f32 %v8534_v27, %v8533_v56  ;;  %v8536_v5 = vpop.f32.mrb[78].mxu1 }
 0x800   : > { %v8537_v57 = vpop.f32.mrb[79].mxu1 }
 0x801   : > { %v11706_v2 = vadd.f32 %v8537_v57, %v8536_v5 }
 0x805   : > { %v8539_v8 = vpop.f32.mrb[80].mxu1 }
 0x806   : > { %v8540_v41 = vpop.f32.mrb[81].mxu1 }
 0x807   : > { %v11708_v52 = vadd.f32 %v8540_v41, %v8539_v8  ;;  %v8542_v18 = vpop.f32.mrb[82].mxu1 }
 0x808   : > { %v8543_v11 = vpop.f32.mrb[83].mxu1 }
 0x809   : > { %12689 = vst [vmem:[#allocation14_spill] sm:$0xff] %v11708_v52  ;;  %v11710_v9 = vadd.f32 %v8543_v11, %v8542_v18 }
 0x80b   : > { %12690 = vst [vmem:[#allocation15_spill] sm:$0xff] %v11710_v9 }
 0x80d   : > { %v8545_v60 = vpop.f32.mrb[84].mxu1 }
 0x80e   : > { %v8546_v47 = vpop.f32.mrb[85].mxu1 }
 0x80f   : > { %v11712_v40 = vadd.f32 %v8546_v47, %v8545_v60  ;;  %v8548_v30 = vpop.f32.mrb[86].mxu1 }
 0x810   : > { %v8549_v48 = vpop.f32.mrb[87].mxu1 }
 0x811   : > { %12691 = vst [vmem:[#allocation16_spill] sm:$0xff] %v11712_v40  ;;  %v11714_v27 = vadd.f32 %v8549_v48, %v8548_v30 }
 0x813   : > { %12692 = vst [vmem:[#allocation17_spill] sm:$0xff] %v11714_v27 }
 0x815   : > { %v8551_v56 = vpop.f32.mrb[88].mxu1 }
 0x816   : > { %v8552_v50 = vpop.f32.mrb[89].mxu1 }
 0x817   : > { %v11716_v57 = vadd.f32 %v8552_v50, %v8551_v56  ;;  %v8554_v5 = vpop.f32.mrb[90].mxu1 }
 0x818   : > { %v8555_v45 = vpop.f32.mrb[91].mxu1 }
 0x819   : > { %12693 = vst [vmem:[#allocation18_spill] sm:$0xff] %v11716_v57  ;;  %v11718_v41 = vadd.f32 %v8555_v45, %v8554_v5 }
 0x81b   : > { %12694 = vst [vmem:[#allocation19_spill] sm:$0xff] %v11718_v41 }
 0x81d   : > { %v8557_v8 = vpop.f32.mrb[92].mxu1 }
 0x81e   : > { %v8558_v52 = vpop.f32.mrb[93].mxu1 }
 0x81f   : > { %v11720_v11 = vadd.f32 %v8558_v52, %v8557_v8  ;;  %v8560_v18 = vpop.f32.mrb[94].mxu1 }
 0x820   : > { %v8561_v9 = vpop.f32.mrb[95].mxu1 }
 0x821   : > { %12695 = vst [vmem:[#allocation20_spill] sm:$0xff] %v11720_v11  ;;  %v11722_v47 = vadd.f32 %v8561_v9, %v8560_v18 }
 0x823   : > { %12696 = vst [vmem:[#allocation21_spill] sm:$0xff] %v11722_v47 }
 0x825   : > { %v8794_v60 = vpop.f32.mrb[96].mxu1 }
 0x826   : > { %v5234_v48 = vadd.f32 %v8794_v60, %v11650_v25  ;;  %v5225_v30 = vpop.f32.mrb[97].mxu1 }
 0x827   : > { %v5226_v27 = vadd.f32 %v11640_v58, %v5225_v30  ;;  %v8795_v50 = vpop.f32.mrb[98].mxu1 }
 0x828   : > { %v11727_v56 = vmax.f32 %v11515_v22, %v5234_v48  ;;  %v5237_v45 = vadd.f32 %v8795_v50, %v11652_v0  ;;  %v5228_v5 = vpop.f32.mrb[99].mxu1 }
 0x829   : > { %v11731_v52 = vmax.f32 %v11521_v10, %v5226_v27  ;;  %v5229_v8 = vadd.f32 %v11642_v3, %v5228_v5 }
 0x82a   : > { %v11735_v9 = vmax.f32 %v11527_v39, %v5237_v45  ;;  %v5437_v25 = vrot.slane %v11727_v56, 1  ;;  %v5823_v0 = vrot.slane %v11727_v56, 2  ;;  %v6073_v10 = vrot.slane %v11727_v56, 3 }
 0x82b   : > { %v11739_v58 = vmax.f32 %v11530_v23, %v5229_v8  ;;  %v5434_v18 = vrot.slane %v11731_v52, 1  ;;  %v5820_v50 = vrot.slane %v11731_v52, 2  ;;  %v6070_v41 = vrot.slane %v11731_v52, 3 }
 0x82c   : > { %v5438_v3 = vrot.slane %v11735_v9, 1  ;;  %v5824_v27 = vrot.slane %v11735_v9, 2  ;;  %v6074_v39 = vrot.slane %v11735_v9, 3 }
 0x82d   : > { %v5435_v60 = vrot.slane %v11739_v58, 1  ;;  %v5821_v23 = vrot.slane %v11739_v58, 2  ;;  %v6071_v48 = vrot.slane %v11739_v58, 3  ;;  %v8798_v30 = vpop.f32.mrb[100].mxu1 }
 0x82e   : > { %v5250_v45 = vadd.f32 %v8798_v30, %v11666_v46  ;;  %v5241_v5 = vpop.f32.mrb[101].mxu1  ;;  %v5439_v8 = vsel %vm5433_vm4, %v5437_v25, %v5438_v3  ;;  %v11756_v22 = vsel %vm802_vm0, %v5823_v0, %v5824_v27  ;;  %v11765_v7 = vsel %vm6069_vm5, %v6073_v10, %v6074_v39 }
 0x82f   : > { %12697 = vst [vmem:[#allocation22_spill] sm:$0xff] %v11756_v22  ;;  %v5242_v47 = vadd.f32 %v11657_v17, %v5241_v5  ;;  %v8799_v57 = vpop.f32.mrb[102].mxu1  ;;  %v5436_v11 = vsel %vm5433_vm4, %v5434_v18, %v5435_v60  ;;  %v11762_v40 = vsel %vm802_vm0, %v5820_v50, %v5821_v23  ;;  %12699 = vst [vmem:[#allocation24_spill] sm:$0xff] %v11765_v7  ;;  %v6323_v10 = vrot.slane %v11735_v9, 4 }
 0x830   : > { %12698 = vst [vmem:[#allocation23_spill] sm:$0xff] %v11762_v40  ;;  %v11768_v46 = vmax.f32 %v11536_v21, %v5250_v45  ;;  %v5253_v25 = vadd.f32 %v8799_v57, %v11668_v54  ;;  %v5244_v0 = vpop.f32.mrb[103].mxu1  ;;  %v5508_v3 = vpack.c.bf16 %v5439_v8, %v5436_v11  ;;  %v11778_v60 = vsel %vm6069_vm5, %v6070_v41, %v6071_v48 }
 0x831   : > { %v11774_v17 = vmax.f32 %v11539_v20, %v5242_v47  ;;  %v5245_v18 = vadd.f32 %v11659_v51, %v5244_v0  ;;  %12701 = vst [vmem:[#allocation26_spill] sm:$0xff] %v11778_v60  ;;  %v6320_v21 = vrot.slane %v11739_v58, 4  ;;  %v6319_v50 = vrot.slane %v11731_v52, 4 }
 0x832   : > { %v5443_v39 = vrot.slane %v11768_v46, 1  ;;  %v5829_v54 = vrot.slane %v11768_v46, 2  ;;  %8834 = vmatprep.mubr.msk.bf16.mxu1 %vm5543_vm6, %v5508_v3  ;;  %v6079_v57 = vrot.slane %v11768_v46, 3  ;;  %v6328_v20 = vrot.slane %v11768_v46, 4 }
 0x833   : > { %12700 = vst [vmem:[#allocation25_spill] sm:$0xff] %v11774_v17  ;;  %v5440_v41 = vrot.slane %v11774_v17, 1  ;;  %v5826_v11 = vrot.slane %v11774_v17, 2  ;;  %v5359_v47 = vmax.f32 %v11545_v42, %v5253_v25  ;;  %v5357_v9 = vmax.f32 %v11548_v61, %v5245_v18 }
 0x834   : > { %v6076_v23 = vrot.slane %v11774_v17, 3  ;;  %v6325_v48 = vrot.slane %v11774_v17, 4  ;;  %v6322_v45 = vrot.slane %v11727_v56, 4 }
 0x835   : > { %v8802_v30 = vpop.f32.mrb[104].mxu1  ;;  %v5444_v5 = vrot.slane %v5359_v47, 1  ;;  %v5830_v8 = vrot.slane %v5359_v47, 2  ;;  %v6080_v0 = vrot.slane %v5359_v47, 3  ;;  %v6329_v3 = vrot.slane %v5359_v47, 4 }
 0x836   : > { %v5257_v27 = vpop.f32.mrb[105].mxu1  ;;  %v5441_v42 = vrot.slane %v5357_v9, 1  ;;  %v5827_v25 = vrot.slane %v5357_v9, 2  ;;  %v6077_v61 = vrot.slane %v5357_v9, 3  ;;  %v6326_v18 = vrot.slane %v5357_v9, 4 }
 0x837   : > { %v8803_v51 = vpop.f32.mrb[106].mxu1  ;;  %v5445_v58 = vsel %vm5433_vm4, %v5443_v39, %v5444_v5  ;;  %v11801_v60 = vsel %vm802_vm0, %v5829_v54, %v5830_v8  ;;  %v11804_v7 = vsel %vm6069_vm5, %v6079_v57, %v6080_v0  ;;  %v11807_v40 = vsel %vm5568_vm3, %v6328_v20, %v6329_v3  ;;  %v11835_v8 = vld [vmem:[%s12645_s7 + $0x20] ss:$0 sps:$4 sm:$0xff]  }
 0x838   : > { %12702 = vst [vmem:[#allocation27_spill] sm:$0xff] %v11807_v40  ;;  %v5260_v22 = vpop.f32.mrb[107].mxu1  ;;  %v5442_v47 = vsel %vm5433_vm4, %v5440_v41, %v5441_v42  ;;  %v11811_v17 = vsel %vm802_vm0, %v5826_v11, %v5827_v25  ;;  %v11814_v9 = vsel %vm6069_vm5, %v6076_v23, %v6077_v61  ;;  %v11817_v39 = vsel %vm5568_vm3, %v6325_v48, %v6326_v18  ;;  %v9775_v41 = vld [vmem:[%s12645_s7 + $0x8] sm:$0xff]  }
 0x839   : > { %12703 = vst [vmem:[#allocation28_spill] sm:$0xff] %v11817_v39  ;;  %v5509_v54 = vpack.c.bf16 %v5445_v58, %v5442_v47  ;;  %v5266_v11 = vadd.f32 %v8802_v30, %v11674_v26  ;;  %v5258_v23 = vadd.f32 %v11670_v34, %v5257_v27  ;;  %v5269_v48 = vadd.f32 %v8803_v51, %v11676_v31 }
 0x83a   : > { %v5261_v58 = vadd.f32 %v11672_v15, %v5260_v22  ;;  %v11839_v0 = vsel %vm5568_vm3, %v6319_v50, %v6320_v21  ;;  %v11842_v3 = vsel %vm5568_vm3, %v6322_v45, %v6323_v10 }
 0x83b   : > { %8835 = vmatmul.mubr.msk.bf16.vlgmr.msra.gmra.mrb[128].mxu1 %vm5543_vm6, %v5509_v54  ;;  %12704 = vst [vmem:[#allocation29_spill] sm:$0xff] %v11839_v0  ;;  %12705 = vst [vmem:[#allocation30_spill] sm:$0xff] %v11842_v3  ;;  %v11845_v26 = vmax.f32 %v11554_v16, %v5266_v11  ;;  %v11848_v34 = vmax.f32 %v11560_v55, %v5258_v23  ;;  %v11851_v15 = vmax.f32 %v11563_v63, %v5269_v48  ;;  %v9776_v16 = vld [vmem:[%s12645_s7 + $0x10] sm:$0xff]   ;;  %v9777_v23 = vld [vmem:[%s12645_s7 + $0x18] sm:$0xff]  }
 0x83c   : > { %v11854_v31 = vmax.f32 %v11566_v32, %v5261_v58  ;;  %8851 = vmatpush3.bf16.msra.mxu1 %v11689_v36  ;;  %v11868_v36 = vsel %vm5568_vm3, %v11835_v8, 0 }
 0x83d   : > { %v8806_v22 = vpop.f32.mrb[108].mxu1  ;;  %8852 = vmatprep.subr.bf16.mxu1 %v9775_v41  ;;  %v5450_v63 = vrot.slane %v11851_v15, 1  ;;  %v5446_v54 = vrot.slane %v11848_v34, 1  ;;  %v5449_v11 = vrot.slane %v11845_v26, 1  ;;  %v5832_v48 = vrot.slane %v11848_v34, 2 }
 0x83e   : > { %v5282_v27 = vadd.f32 %v8806_v22, %v11682_v28  ;;  %v5273_v21 = vpop.f32.mrb[109].mxu1  ;;  %v5447_v30 = vrot.slane %v11854_v31, 1  ;;  %v5833_v50 = vrot.slane %v11854_v31, 2  ;;  %v5835_v55 = vrot.slane %v11845_v26, 2 }
 0x83f   : > { %v8807_v51 = vpop.f32.mrb[110].mxu1  ;;  %v5274_v61 = vadd.f32 %v11678_v1, %v5273_v21  ;;  %v6082_v20 = vrot.slane %v11848_v34, 3  ;;  %v12738_v0 = vrot.slane %v11845_v26, 3 }
 0x840   : > { %v5276_v42 = vpop.f32.mrb[111].mxu1  ;;  %v11875_v25 = vmax.f32 %v11572_v14, %v5282_v27  ;;  %v5285_v18 = vadd.f32 %v8807_v51, %v11684_v59  ;;  %8853 = vmatpush3.bf16.msra.mxu1 %v9775_v41  ;;  %v5448_v21 = vsel %vm5433_vm4, %v5446_v54, %v5447_v30  ;;  %v5451_v51 = vsel %vm5433_vm4, %v5449_v11, %v5450_v63 }
 0x841   : > { %v5277_v47 = vadd.f32 %v11680_v53, %v5276_v42  ;;  %8854 = vmatprep.subr.bf16.mxu1 %v9776_v16  ;;  %v11893_v58 = vmax.f32 %v11578_v29, %v5274_v61  ;;  %v11900_v5 = vsel %vm802_vm0, %v5832_v48, %v5833_v50 }
 0x842   : > { %v5455_v1 = vrot.slane %v11875_v25, 1  ;;  %v5841_v59 = vrot.slane %v11875_v25, 2  ;;  %v6091_v53 = vrot.slane %v11875_v25, 3  ;;  %v6340_v41 = vrot.slane %v11875_v25, 4 }
 0x843   : > { %v5367_v22 = vmax.f32 %v11581_v62, %v5285_v18  ;;  %v5365_v27 = vmax.f32 %v11584_v35, %v5277_v47  ;;  %v5452_v62 = vrot.slane %v11893_v58, 1  ;;  %v5838_v35 = vrot.slane %v11893_v58, 2 }
 0x844   : > { %8855 = vmatpush3.bf16.msra.mxu1 %v9776_v16  ;;  %v6088_v30 = vrot.slane %v11893_v58, 3  ;;  %v6337_v16 = vrot.slane %v11893_v58, 4 }
 0x845   : > { %v8810_v42 = vpop.f32.mrb[112].mxu1  ;;  %8856 = vmatprep.subr.bf16.mxu1 %v9777_v23  ;;  %v5456_v63 = vrot.slane %v5367_v22, 1  ;;  %v5842_v50 = vrot.slane %v5367_v22, 2  ;;  %v6092_v18 = vrot.slane %v5367_v22, 3  ;;  %v6341_v54 = vrot.slane %v5367_v22, 4 }
 0x846   : > { %v5289_v61 = vpop.f32.mrb[113].mxu1  ;;  %v5453_v11 = vrot.slane %v5365_v27, 1  ;;  %v5839_v48 = vrot.slane %v5365_v27, 2  ;;  %v6089_v57 = vrot.slane %v5365_v27, 3  ;;  %v6338_v45 = vrot.slane %v5365_v27, 4 }
 0x847   : > { %v8811_v47 = vpop.f32.mrb[114].mxu1  ;;  %v5457_v29 = vsel %vm5433_vm4, %v5455_v1, %v5456_v63  ;;  %v11912_v28 = vsel %vm802_vm0, %v5841_v59, %v5842_v50  ;;  %v11915_v32 = vsel %vm6069_vm5, %v6091_v53, %v6092_v18  ;;  %v11918_v10 = vsel %vm5568_vm3, %v6340_v41, %v6341_v54  ;;  %v11932_v1 = vld [vmem:[%s12645_s7 + $0x48] sm:$0xff]  }
 0x848   : > { %v5292_v14 = vpop.f32.mrb[115].mxu1  ;;  %12706 = vst [vmem:[#allocation31_spill] sm:$0xff] %v11915_v32  ;;  %8857 = vmatpush3.bf16.msra.mxu1 %v9777_v23  ;;  %12707 = vst [vmem:[#allocation32_spill] sm:$0xff] %v11918_v10  ;;  %v5454_v39 = vsel %vm5433_vm4, %v5452_v62, %v5453_v11  ;;  %v11922_v22 = vsel %vm802_vm0, %v5838_v35, %v5839_v48  ;;  %v11925_v40 = vsel %vm6069_vm5, %v6088_v30, %v6089_v57  ;;  %v12714_v53 = vld [vmem:[#allocation4_spill] sm:$0xff] }
 0x849   : > { %12708 = vst [vmem:[#allocation33_spill] sm:$0xff] %v11925_v40  ;;  %9563 = vmatprep.subr.msk.bf16.mxu1 %vm5568_vm3, %v11835_v8  ;;  %v5511_v23 = vpack.c.bf16 %v5457_v29, %v5454_v39  ;;  %v11939_v41 = vsel %vm5568_vm3, %v6337_v16, %v6338_v45  ;;  %v5510_v27 = vpack.c.bf16 %v5451_v51, %v5448_v21  ;;  %v12710_v30 = vrot.slane %v11851_v15, 2 }
 0x84a   : > { %12709 = vst [vmem:[#allocation34_spill] sm:$0xff] %v11939_v41  ;;  %v5298_v8 = vadd.f32 %v8810_v42, %v11696_v13  ;;  %v5290_v62 = vadd.f32 %v11691_v6, %v5289_v61  ;;  %v5301_v35 = vadd.f32 %v8811_v47, %v11698_v44  ;;  %v5293_v39 = vadd.f32 %v11694_v4, %v5292_v14 }
 0x84b   : > { %v11951_v45 = vsel %vm802_vm0, %v5835_v55, %v12710_v30  ;;  %v12711_v16 = vrot.slane %v11854_v31, 3  ;;  %8838 = vmatprep.mubr.msk.bf16.mxu1 %vm5543_vm6, %v5510_v27  ;;  %v12737_v10 = vrot.slane %v11851_v15, 3 }
 0x84c   : > { %8859 = vmatpush3.bf16.msra.mxu1 %v11868_v36  ;;  %v11961_v6 = vmax.f32 %v11590_v43, %v5298_v8  ;;  %v11964_v4 = vmax.f32 %v11593_v33, %v5290_v62  ;;  %v11969_v55 = vmax.f32 %v11596_v24, %v5301_v35  ;;  %v12712_v8 = vld [vmem:[#allocation3_spill] sm:$0xff]  ;;  %v12713_v35 = vld [vmem:[#allocation13_spill] sm:$0xff] }
 0x84d   : > { %v8814_v29 = vpop.f32.mrb[116].mxu1  ;;  %v11956_v21 = vsel %vm6069_vm5, %v6082_v20, %v12711_v16  ;;  %8876 = vmatprep.subr.bf16.mxu1 %v11932_v1  ;;  %v11972_v20 = vmax.f32 %v11599_v12, %v5293_v39  ;;  %8839 = vmatmul.mubr.msk.bf16.gmra.mrb[132].mxu1 %vm5543_vm6, %v5511_v23  ;;  %v12115_v3 = vsel %vm6069_vm5, %v12738_v0, %v12737_v10 }
 0x84e   : > { %v5314_v44 = vadd.f32 %v8814_v29, %v11704_v19  ;;  %v5305_v36 = vpop.f32.mrb[117].mxu1  ;;  %v5458_v24 = vrot.slane %v11964_v4, 1  ;;  %v5462_v12 = vrot.slane %v11969_v55, 1  ;;  %v5461_v50 = vrot.slane %v11961_v6, 1 }
 0x84f   : > { %v5306_v14 = vadd.f32 %v11700_v49, %v5305_v36  ;;  %v8815_v43 = vpop.f32.mrb[118].mxu1  ;;  %v5845_v47 = vrot.slane %v11972_v20, 2  ;;  %v12715_v36 = vld [vmem:[#allocation16_spill] sm:$0xff] }
 0x850   : > { %v11979_v51 = vmax.f32 %v11602_v37, %v5314_v44  ;;  %v5317_v19 = vadd.f32 %v8815_v43, %v11706_v2  ;;  %v5308_v42 = vpop.f32.mrb[119].mxu1  ;;  %v5459_v37 = vrot.slane %v11972_v20, 1  ;;  %v5463_v16 = vsel %vm5433_vm4, %v5461_v50, %v5462_v12  ;;  %v12717_v2 = vld [vmem:[#allocation14_spill] sm:$0xff] }
 0x851   : > { %v11997_v27 = vmax.f32 %v11605_v38, %v5306_v14  ;;  %v5309_v39 = vadd.f32 %v12713_v35, %v5308_v42 }
 0x852   : > { %v5467_v11 = vrot.slane %v11979_v51, 1  ;;  %v5853_v48 = vrot.slane %v11979_v51, 2  ;;  %v6103_v23 = vrot.slane %v11979_v51, 3  ;;  %v5375_v62 = vmax.f32 %v12712_v8, %v5317_v19 }
 0x853   : > { %v5460_v29 = vsel %vm5433_vm4, %v5458_v24, %v5459_v37  ;;  %v6352_v30 = vrot.slane %v11979_v51, 4  ;;  %v5464_v14 = vrot.slane %v11997_v27, 1  ;;  %v5850_v19 = vrot.slane %v11997_v27, 2 }
 0x854   : > { %v6100_v42 = vrot.slane %v11997_v27, 3  ;;  %v6349_v37 = vrot.slane %v11997_v27, 4  ;;  %v5468_v8 = vrot.slane %v5375_v62, 1  ;;  %v5854_v12 = vrot.slane %v5375_v62, 2 }
 0x855   : > { %v8818_v44 = vpop.f32.mrb[120].mxu1  ;;  %v6104_v50 = vrot.slane %v5375_v62, 3  ;;  %v6353_v57 = vrot.slane %v5375_v62, 4  ;;  %v5373_v59 = vmax.f32 %v12714_v53, %v5309_v39  ;;  %v5512_v33 = vpack.c.bf16 %v5463_v16, %v5460_v29  ;;  %v12719_v29 = vld [vmem:[#allocation5_spill] sm:$0xff] }
 0x856   : > { %v5321_v24 = vpop.f32.mrb[121].mxu1  ;;  %v5330_v18 = vadd.f32 %v8818_v44, %v12715_v36  ;;  %v5469_v54 = vsel %vm5433_vm4, %v5467_v11, %v5468_v8  ;;  %v12017_v13 = vsel %vm802_vm0, %v5853_v48, %v5854_v12  ;;  %v12720_v11 = vld [vmem:[#allocation6_spill] sm:$0xff]  ;;  %v12721_v44 = vld [vmem:[#allocation17_spill] sm:$0xff] }
 0x857   : > { %v8819_v35 = vpop.f32.mrb[122].mxu1  ;;  %v12020_v49 = vsel %vm6069_vm5, %v6103_v23, %v6104_v50  ;;  %v5322_v61 = vadd.f32 %v12717_v2, %v5321_v24  ;;  %v12024_v63 = vsel %vm5568_vm3, %v6352_v30, %v6353_v57  ;;  %v5465_v62 = vrot.slane %v5373_v59, 1  ;;  %8842 = vmatprep.mubr.msk.bf16.mxu1 %vm5543_vm6, %v5512_v33  ;;  %v12723_v30 = vld [vmem:[#allocation15_spill] sm:$0xff] }
 0x858   : > { %v5324_v38 = vpop.f32.mrb[123].mxu1  ;;  %12716 = vst [vmem:[#allocation3_spill] sm:$0xff] %v12020_v49  ;;  %12718 = vst [vmem:[#allocation13_spill] sm:$0xff] %v12024_v63  ;;  %v5851_v43 = vrot.slane %v5373_v59, 2  ;;  %v6101_v53 = vrot.slane %v5373_v59, 3  ;;  %v6350_v39 = vrot.slane %v5373_v59, 4  ;;  %v12028_v16 = vmax.f32 %v12719_v29, %v5330_v18 }
 0x859   : > { %v12031_v48 = vmax.f32 %v12720_v11, %v5322_v61  ;;  %v5333_v23 = vadd.f32 %v8819_v35, %v12721_v44  ;;  %v5466_v36 = vsel %vm5433_vm4, %v5464_v14, %v5465_v62  ;;  %v5325_v24 = vadd.f32 %v12723_v30, %v5324_v38  ;;  %v12725_v14 = vld [vmem:[#allocation7_spill] sm:$0xff]  ;;  %v12728_v35 = vld [vmem:[#allocation18_spill] sm:$0xff] }
 0x85a   : > { %v12036_v2 = vsel %vm802_vm0, %v5850_v19, %v5851_v43  ;;  %v12039_v57 = vsel %vm6069_vm5, %v6100_v42, %v6101_v53  ;;  %v5513_v33 = vpack.c.bf16 %v5469_v54, %v5466_v36  ;;  %v12047_v18 = vsel %vm5568_vm3, %v6349_v37, %v6350_v39  ;;  %v12726_v42 = vld [vmem:[#allocation8_spill] sm:$0xff]  ;;  %v12731_v43 = vld [vmem:[#allocation21_spill] sm:$0xff]  ;;  %v12732_v59 = vld [vmem:[#allocation19_spill] sm:$0xff] }
 0x85b   : > { %12722 = vst [vmem:[#allocation4_spill] sm:$0xff] %v12039_v57  ;;  %12724 = vst [vmem:[#allocation16_spill] sm:$0xff] %v12047_v18  ;;  %v12052_v19 = vmax.f32 %v12725_v14, %v5333_v23  ;;  %v12055_v12 = vmax.f32 %v12726_v42, %v5325_v24  ;;  %v12727_v54 = vld [vmem:[#allocation20_spill] sm:$0xff]  ;;  %v5470_v37 = vrot.slane %v12031_v48, 1  ;;  %v5847_v29 = vrot.slane %v11961_v6, 2  ;;  %v12729_v42 = vld [vmem:[#allocation9_spill] sm:$0xff] }
 0x85c   : > { %8843 = vmatmul.mubr.msk.bf16.gmra.mrb[136].mxu1 %vm5543_vm6, %v5513_v33  ;;  %v5473_v30 = vrot.slane %v12028_v16, 1  ;;  %v12733_v18 = vrot.slane %v11964_v4, 2  ;;  %v5856_v41 = vrot.slane %v12031_v48, 2 }
 0x85d   : > { %v8822_v8 = vpop.f32.mrb[124].mxu1  ;;  %v5474_v11 = vrot.slane %v12052_v19, 1  ;;  %v5860_v44 = vrot.slane %v12052_v19, 2  ;;  %v5471_v33 = vrot.slane %v12055_v12, 1 }
 0x85e   : > { %v5346_v38 = vadd.f32 %v8822_v8, %v12727_v54  ;;  %v5337_v50 = vpop.f32.mrb[125].mxu1  ;;  %v5857_v8 = vrot.slane %v12055_v12, 2  ;;  %v12087_v14 = vsel %vm802_vm0, %v12733_v18, %v5845_v47 }
 0x85f   : > { %v5338_v62 = vadd.f32 %v12728_v35, %v5337_v50  ;;  %v8823_v53 = vpop.f32.mrb[126].mxu1  ;;  %v12730_v50 = vld [vmem:[#allocation10_spill] sm:$0xff]  ;;  %v5472_v23 = vsel %vm5433_vm4, %v5470_v37, %v5471_v33  ;;  %v5475_v24 = vsel %vm5433_vm4, %v5473_v30, %v5474_v11  ;;  %v12735_v30 = vld [vmem:[#allocation11_spill] sm:$0xff]  ;;  %v5859_v11 = vrot.slane %v12028_v16, 2 }
 0x860   : > { %v5340_v36 = vpop.f32.mrb[127].mxu1  ;;  %v12073_v54 = vmax.f32 %v12729_v42, %v5346_v38  ;;  %v5349_v61 = vadd.f32 %v8823_v53, %v12731_v43  ;;  %v12734_v38 = vrot.slane %v11969_v55, 2  ;;  %v12736_v42 = vld [vmem:[#allocation12_spill] sm:$0xff] }
 0x861   : > { %v12076_v35 = vmax.f32 %v12730_v50, %v5338_v62  ;;  %v5341_v39 = vadd.f32 %v12732_v59, %v5340_v36 }
 0x862   : > { %v12092_v62 = vsel %vm802_vm0, %v5847_v29, %v12734_v38  ;;  %v5479_v43 = vrot.slane %v12073_v54, 1  ;;  %v5865_v59 = vrot.slane %v12073_v54, 2  ;;  %v6115_v53 = vrot.slane %v12073_v54, 3 }
 0x863   : > { %v6364_v37 = vrot.slane %v12073_v54, 4  ;;  %v5476_v36 = vrot.slane %v12076_v35, 1  ;;  %v5862_v47 = vrot.slane %v12076_v35, 2  ;;  %v6112_v18 = vrot.slane %v12076_v35, 3 }
 0x864   : > { %v6361_v29 = vrot.slane %v12076_v35, 4  ;;  %v5383_v33 = vmax.f32 %v12735_v30, %v5349_v61  ;;  %v5381_v50 = vmax.f32 %v12736_v42, %v5341_v39  ;;  %v5514_v38 = vpack.c.bf16 %v5475_v24, %v5472_v23 }
 0x866   : > { %v5480_v57 = vrot.slane %v5383_v33, 1  ;;  %v5866_v49 = vrot.slane %v5383_v33, 2  ;;  %v6116_v61 = vrot.slane %v5383_v33, 3  ;;  %v6365_v30 = vrot.slane %v5383_v33, 4  ;;  %8846 = vmatprep.mubr.msk.bf16.mxu1 %vm5543_vm6, %v5514_v38 }
 0x867   : > { %v5477_v39 = vrot.slane %v5381_v50, 1  ;;  %v5863_v23 = vrot.slane %v5381_v50, 2  ;;  %v6113_v24 = vrot.slane %v5381_v50, 3  ;;  %v6362_v42 = vrot.slane %v5381_v50, 4 }
 0x868   : > { %v5481_v63 = vsel %vm5433_vm4, %v5479_v43, %v5480_v57  ;;  %v12120_v40 = vsel %vm802_vm0, %v5865_v59, %v5866_v49  ;;  %v12123_v32 = vsel %vm6069_vm5, %v6115_v53, %v6116_v61  ;;  %v12126_v0 = vsel %vm5568_vm3, %v6364_v37, %v6365_v30 }
 0x869   : > { %v5478_v10 = vsel %vm5433_vm4, %v5476_v36, %v5477_v39  ;;  %v12130_v33 = vsel %vm802_vm0, %v5862_v47, %v5863_v23  ;;  %v12133_v38 = vsel %vm6069_vm5, %v6112_v18, %v6113_v24  ;;  %v12136_v50 = vsel %vm5568_vm3, %v6361_v29, %v6362_v42 }
 0x86a   : > { %v5515_v57 = vpack.c.bf16 %v5481_v63, %v5478_v10  ;;  %v5901_v49 = vpack.c.bf16 %v12120_v40, %v12130_v33  ;;  %v12145_v53 = vsel %vm802_vm0, %v5856_v41, %v5857_v8  ;;  %v12148_v37 = vsel %vm802_vm0, %v5859_v11, %v5860_v44  ;;  %v9794_v44 = vld [vmem:[%s12648_s10] sm:$0xff]   ;;  %v9795_v8 = vld [vmem:[%s12648_s10 + $0x8] sm:$0xff]  }
 0x86b   : > { %v6146_v36 = vpack.c.bf16 %v12115_v3, %v11956_v21  ;;  %v6094_v63 = vrot.slane %v11964_v4, 3  ;;  %v5900_v47 = vpack.c.bf16 %v12148_v37, %v12145_v53  ;;  %v6097_v18 = vrot.slane %v11961_v6, 3  ;;  %8986 = vmatprep.subr.bf16.mxu0 %v9794_v44  ;;  %v9791_v40 = vld [vmem:[%s12645_s7 + $0xa0] sm:$0xff]   ;;  %v9792_v33 = vld [vmem:[%s12645_s7 + $0xa8] sm:$0xff]   ;;  %v9793_v3 = vld [vmem:[%s12645_s7 + $0xb0] ss:$0 sps:$4 sm:$0xff]  }
 0x86c   : > { %8847 = vmatmul.mubr.msk.bf16.gmra.mrb[140].mxu1 %vm5543_vm6, %v5515_v57  ;;  %v6106_v29 = vrot.slane %v12031_v48, 3  ;;  %v6109_v41 = vrot.slane %v12028_v16, 3  ;;  %v6356_v11 = vrot.slane %v12055_v12, 4  ;;  %v12739_v61 = vpack.c.bf16 %v11727_v56, %v11731_v52  ;;  %8987 = vmatpush3.bf16.msra.mxu0 %v9794_v44  ;;  %v9780_v44 = vld [vmem:[%s12645_s7 + $0x50] sm:$0xff]   ;;  %v9796_v53 = vld [vmem:[%s12647_s9] sm:$0xff]  }
 0x86d   : > { %v12740_v30 = vrot.slane %v11972_v20, 3  ;;  %v6331_v23 = vrot.slane %v11848_v34, 4  ;;  %v6334_v24 = vrot.slane %v11845_v26, 4  ;;  %v12741_v42 = vrot.slane %v11969_v55, 3  ;;  %8988 = vmatprep.subr.bf16.mxu0 %v9795_v8  ;;  %v12772_v37 = vld [vmem:[#allocation3_spill] sm:$0xff] }
 0x86e   : > { %8860 = vmatprep.mubr.msk.bf16.mxu1 %vm5543_vm6, %v12739_v61  ;;  %v12742_v57 = vrot.slane %v12055_v12, 3  ;;  %v12743_v52 = vrot.slane %v12052_v19, 3  ;;  %v6346_v43 = vrot.slane %v11961_v6, 4  ;;  %v6453_v21 = vsel %vm5568_vm3, %v9793_v3, 0 }
 0x86f   : > { %v12173_v39 = vsel %vm6069_vm5, %v6094_v63, %v12740_v30  ;;  %v12180_v10 = vsel %vm6069_vm5, %v6097_v18, %v12741_v42  ;;  %v6343_v63 = vrot.slane %v11964_v4, 4  ;;  %v12744_v42 = vrot.slane %v11854_v31, 4 }
 0x870   : > { %v12185_v56 = vsel %vm6069_vm5, %v6106_v29, %v12742_v57  ;;  %v12190_v61 = vsel %vm6069_vm5, %v6109_v41, %v12743_v52  ;;  %v6148_v30 = vpack.c.bf16 %v12180_v10, %v12173_v39  ;;  %v12745_v29 = vrot.slane %v11851_v15, 4  ;;  %v9799_v15 = vld [vmem:[%s12648_s10 + $0x10] sm:$0xff]   ;;  %8989 = vmatpush3.bf16.msra.mxu0 %v9795_v8  ;;  %v9803_v8 = vld [vmem:[%s12648_s10 + $0x20] sm:$0xff]  }
 0x871   : > { %v12200_v12 = vsel %vm5568_vm3, %v6331_v23, %v12744_v42  ;;  %v12746_v52 = vrot.slane %v11972_v20, 4  ;;  %v6355_v31 = vrot.slane %v12031_v48, 4  ;;  %v6358_v23 = vrot.slane %v12028_v16, 4  ;;  %v12749_v41 = vld [vmem:[#allocation25_spill] sm:$0xff]  ;;  %8990 = vmatprep.subr.bf16.mxu0 %v9799_v15 }
 0x872   : > { %v12205_v57 = vsel %vm5568_vm3, %v6334_v24, %v12745_v29  ;;  %v12747_v20 = vrot.slane %v11969_v55, 4  ;;  %v12748_v29 = vrot.slane %v12052_v19, 4  ;;  %v12750_v18 = vpack.c.bf16 %v11768_v46, %v12749_v41  ;;  %v9781_v46 = vld [vmem:[%s12645_s7 + $0x58] sm:$0xff]  }
 0x873   : > { %v12212_v59 = vsel %vm5568_vm3, %v6343_v63, %v12746_v52  ;;  %v12229_v63 = vsel %vm5568_vm3, %v6355_v31, %v6356_v11  ;;  %v12751_v19 = vpack.c.bf16 %v11845_v26, %v11848_v34  ;;  %v9782_v26 = vld [vmem:[%s12645_s7 + $0x60] sm:$0xff]   ;;  %v12752_v34 = vpack.c.bf16 %v11875_v25, %v11893_v58  ;;  %v9784_v58 = vld [vmem:[%s12645_s7 + $0x6c] sm:$0xff]  }
 0x874   : > { %v12226_v24 = vsel %vm5568_vm3, %v6346_v43, %v12747_v20  ;;  %v12236_v52 = vsel %vm5568_vm3, %v6358_v23, %v12748_v29  ;;  %8861 = vmatmul.mubr.msk.bf16.vlgmr.msra.gmra.mrb[128].mxu1 %vm5543_vm6, %v12750_v18  ;;  %v9801_v43 = vld [vmem:[%s12648_s10 + $0x18] sm:$0xff]   ;;  %8991 = vmatpush3.bf16.msra.mxu0 %v9799_v15  ;;  %v12753_v11 = vpack.c.bf16 %v11961_v6, %v11964_v4  ;;  %v9783_v18 = vld [vmem:[%s12645_s7 + $0x68] ss:$0 sps:$4 sm:$0xff]  }
 0x875   : > { %v6397_v42 = vpack.c.bf16 %v12226_v24, %v12212_v59  ;;  %v6399_v55 = vpack.c.bf16 %v12236_v52, %v12229_v63  ;;  %8864 = vmatprep.mubr.msk.bf16.mxu1 %vm5543_vm6, %v12751_v19  ;;  %8877 = vmatpush3.bf16.msra.mxu1 %v11932_v1  ;;  %v9805_v1 = vld [vmem:[%s12648_s10 + $0x28] sm:$0xff]   ;;  %v5954_v25 = vsel %vm5568_vm3, %v9783_v18, 0  ;;  %v12754_v6 = vpack.c.bf16 %v11979_v51, %v11997_v27  ;;  %v12757_v31 = vld [vmem:[#allocation22_spill] sm:$0xff]  ;;  %v9806_v24 = vld [vmem:[%s12647_s9 + $0x30] sm:$0xff]  }
 0x876   : > { %8878 = vmatprep.subr.bf16.mxu1 %v9780_v44  ;;  %8992 = vmatprep.subr.bf16.mxu0 %v9801_v43  ;;  %v12755_v4 = vpack.c.bf16 %v12028_v16, %v12031_v48  ;;  %v12756_v41 = vpack.c.bf16 %v12073_v54, %v12076_v35  ;;  %v12758_v15 = vld [vmem:[#allocation23_spill] sm:$0xff]  ;;  %v9785_v51 = vld [vmem:[%s12645_s7 + $0x74] sm:$0xff]   ;;  %v12760_v27 = vpack.c.bf16 %v11801_v60, %v11811_v17 }
 0x877   : > { %v12759_v23 = vpack.c.bf16 %v12757_v31, %v12758_v15  ;;  %v12761_v16 = vpack.c.bf16 %v11951_v45, %v11900_v5  ;;  %v9786_v48 = vld [vmem:[%s12645_s7 + $0x7c] sm:$0xff]   ;;  %v9787_v54 = vld [vmem:[%s12645_s7 + $0x84] sm:$0xff]   ;;  %v12762_v17 = vpack.c.bf16 %v11912_v28, %v11922_v22  ;;  %v12763_v60 = vpack.c.bf16 %v12092_v62, %v12087_v14  ;;  %v9788_v5 = vld [vmem:[%s12645_s7 + $0x8c] ss:$0 sps:$4 sm:$0xff]  }
 0x878   : > { %8993 = vmatpush3.bf16.msra.mxu0 %v9801_v43  ;;  %v6204_v45 = vsel %vm5568_vm3, %v9788_v5, 0  ;;  %v9789_v28 = vld [vmem:[%s12645_s7 + $0x90] sm:$0xff]   ;;  %v12764_v22 = vpack.c.bf16 %v12017_v13, %v12036_v2  ;;  %v12766_v35 = vld [vmem:[#allocation26_spill] sm:$0xff]  ;;  %v12768_v2 = vpack.c.bf16 %v11804_v7, %v11814_v9  ;;  %v12769_v7 = vld [vmem:[#allocation31_spill] sm:$0xff]  ;;  %v12775_v39 = vpack.c.bf16 %v12190_v61, %v12185_v56 }
 0x879   : > { %8879 = vmatpush3.bf16.msra.mxu1 %v9780_v44  ;;  %8994 = vmatprep.subr.bf16.mxu0 %v9803_v8  ;;  %v12765_v14 = vld [vmem:[#allocation24_spill] sm:$0xff]  ;;  %v9790_v13 = vld [vmem:[%s12645_s7 + $0x98] sm:$0xff]   ;;  %v12776_v10 = vpack.c.bf16 %v12123_v32, %v12133_v38  ;;  %v12780_v43 = vld [vmem:[#allocation27_spill] sm:$0xff]  ;;  %v12783_v19 = vpack.c.bf16 %v12205_v57, %v12200_v12  ;;  %v12790_v59 = vpack.c.bf16 %v12126_v0, %v12136_v50 }
 0x87a   : > { %8880 = vmatprep.subr.bf16.mxu1 %v9781_v46  ;;  %v12767_v62 = vpack.c.bf16 %v12765_v14, %v12766_v35  ;;  %v12770_v9 = vld [vmem:[#allocation33_spill] sm:$0xff]  ;;  %v9797_v29 = vld [vmem:[%s12647_s9 + $0x8] sm:$0xff]   ;;  %v9802_v12 = vld [vmem:[%s12647_s9 + $0x20] sm:$0xff]  }
 0x87b   : > { %v12778_v44 = vld [vmem:[#allocation29_spill] sm:$0xff]  ;;  %v12781_v56 = vld [vmem:[#allocation28_spill] sm:$0xff]  ;;  %v8232_v0 = vld [vmem:[%s12646_s8] ss:$0 sm:$0xff] }
 0x87c   : > { %8865 = vmatmul.mubr.msk.bf16.gmra.mrb[132].mxu1 %vm5543_vm6, %v12752_v34  ;;  %8995 = vmatpush3.bf16.msra.mxu0 %v9803_v8  ;;  %v12782_v61 = vpack.c.bf16 %v12780_v43, %v12781_v56  ;;  %v9798_v32 = vld [vmem:[%s12647_s9 + $0x10] sm:$0xff]   ;;  %v9800_v38 = vld [vmem:[%s12647_s9 + $0x18] sm:$0xff]   ;;  %v9804_v57 = vld [vmem:[%s12647_s9 + $0x28] sm:$0xff]  }
 0x87d   : > { %8868 = vmatprep.mubr.msk.bf16.mxu1 %vm5543_vm6, %v12753_v11  ;;  %8881 = vmatpush3.bf16.msra.mxu1 %v9781_v46  ;;  %v12784_v46 = vld [vmem:[#allocation32_spill] sm:$0xff]  ;;  %v12785_v8 = vld [vmem:[#allocation34_spill] sm:$0xff]  ;;  %v12787_v34 = vld [vmem:[#allocation13_spill] sm:$0xff] }
 0x87e   : > { %8882 = vmatprep.subr.bf16.mxu1 %v9782_v26  ;;  %8996 = vmatprep.subr.bf16.mxu0 %v9805_v1  ;;  %v9808_v63 = vld [vmem:[%s12647_s9 + $0x38] sm:$0xff]  }
 0x87f   : > { %v9809_v52 = vld [vmem:[%s12648_s10 + $0x38] sm:$0xff]  }
 0x880   : > { %8997 = vmatpush3.bf16.msra.mxu0 %v9805_v1  ;;  %v12788_v1 = vld [vmem:[#allocation16_spill] sm:$0xff] }
 0x881   : > { %8883 = vmatpush3.bf16.msra.mxu1 %v9782_v26  ;;  %v12786_v26 = vpack.c.bf16 %v12784_v46, %v12785_v8  ;;  %v12789_v11 = vpack.c.bf16 %v12787_v34, %v12788_v1  ;;  %v9810_v1 = vld [vmem:[%s12649_s11] sm:$0xff]  }
 0x882   : > { %9564 = vmatprep.subr.msk.bf16.mxu1 %vm5568_vm3, %v9783_v18 }
 0x884   : > { %8869 = vmatmul.mubr.msk.bf16.gmra.mrb[136].mxu1 %vm5543_vm6, %v12754_v6 }
 0x885   : > { %8872 = vmatprep.mubr.msk.bf16.mxu1 %vm5543_vm6, %v12755_v4  ;;  %8885 = vmatpush3.bf16.msra.mxu1 %v5954_v25 }
 0x886   : > { %8902 = vmatprep.subr.bf16.mxu1 %v9784_v58 }
 0x88c   : > { %8873 = vmatmul.mubr.msk.bf16.gmra.mrb[140].mxu1 %vm5543_vm6, %v12756_v41 }
 0x88d   : > { %8886 = vmatprep.mubr.msk.bf16.mxu1 %vm5543_vm6, %v12759_v23 }
 0x894   : > { %8887 = vmatmul.mubr.msk.bf16.vlgmr.msra.gmra.mrb[128].mxu1 %vm5543_vm6, %v12760_v27 }
 0x895   : > { %8890 = vmatprep.mubr.msk.bf16.mxu1 %vm5543_vm6, %v12761_v16  ;;  %8903 = vmatpush3.bf16.msra.mxu1 %v9784_v58 }
 0x896   : > { %8904 = vmatprep.subr.bf16.mxu1 %v9785_v51 }
 0x899   : > { %8905 = vmatpush3.bf16.msra.mxu1 %v9785_v51 }
 0x89a   : > { %8906 = vmatprep.subr.bf16.mxu1 %v9786_v48 }
 0x89c   : > { %8891 = vmatmul.mubr.msk.bf16.gmra.mrb[132].mxu1 %vm5543_vm6, %v12762_v17 }
 0x89d   : > { %8894 = vmatprep.mubr.msk.bf16.mxu1 %vm5543_vm6, %v12763_v60  ;;  %8907 = vmatpush3.bf16.msra.mxu1 %v9786_v48 }
 0x89e   : > { %8908 = vmatprep.subr.bf16.mxu1 %v9787_v54 }
 0x8a1   : > { %8909 = vmatpush3.bf16.msra.mxu1 %v9787_v54 }
 0x8a2   : > { %9565 = vmatprep.subr.msk.bf16.mxu1 %vm5568_vm3, %v9788_v5 }
 0x8a4   : > { %8895 = vmatmul.mubr.msk.bf16.gmra.mrb[136].mxu1 %vm5543_vm6, %v12764_v22 }
 0x8a5   : > { %8898 = vmatprep.mubr.msk.bf16.mxu1 %vm5543_vm6, %v5900_v47  ;;  %8911 = vmatpush3.bf16.msra.mxu1 %v6204_v45 }
 0x8a6   : > { %8928 = vmatprep.subr.bf16.mxu1 %v9789_v28 }
 0x8ac   : > { %8899 = vmatmul.mubr.msk.bf16.gmra.mrb[140].mxu1 %vm5543_vm6, %v5901_v49  ;;  %v12771_v49 = vpack.c.bf16 %v12769_v7, %v12770_v9 }
 0x8ad   : > { %8912 = vmatprep.mubr.msk.bf16.mxu1 %vm5543_vm6, %v12767_v62 }
 0x8b4   : > { %8913 = vmatmul.mubr.msk.bf16.vlgmr.msra.gmra.mrb[128].mxu1 %vm5543_vm6, %v12768_v2 }
 0x8b5   : > { %8916 = vmatprep.mubr.msk.bf16.mxu1 %vm5543_vm6, %v6146_v36  ;;  %8929 = vmatpush3.bf16.msra.mxu1 %v9789_v28  ;;  %v12773_v36 = vld [vmem:[#allocation4_spill] sm:$0xff] }
 0x8b6   : > { %8930 = vmatprep.subr.bf16.mxu1 %v9790_v13  ;;  %v12774_v47 = vpack.c.bf16 %v12772_v37, %v12773_v36 }
 0x8b9   : > { %8931 = vmatpush3.bf16.msra.mxu1 %v9790_v13 }
 0x8ba   : > { %8932 = vmatprep.subr.bf16.mxu1 %v9791_v40 }
 0x8bc   : > { %8917 = vmatmul.mubr.msk.bf16.gmra.mrb[132].mxu1 %vm5543_vm6, %v12771_v49 }
 0x8bd   : > { %8920 = vmatprep.mubr.msk.bf16.mxu1 %vm5543_vm6, %v6148_v30  ;;  %8933 = vmatpush3.bf16.msra.mxu1 %v9791_v40  ;;  %v12777_v30 = vld [vmem:[#allocation30_spill] sm:$0xff] }
 0x8be   : > { %8934 = vmatprep.subr.bf16.mxu1 %v9792_v33  ;;  %v12779_v20 = vpack.c.bf16 %v12777_v30, %v12778_v44 }
 0x8c1   : > { %8935 = vmatpush3.bf16.msra.mxu1 %v9792_v33 }
 0x8c2   : > { %9566 = vmatprep.subr.msk.bf16.mxu1 %vm5568_vm3, %v9793_v3 }
 0x8c4   : > { %8921 = vmatmul.mubr.msk.bf16.gmra.mrb[136].mxu1 %vm5543_vm6, %v12774_v47 }
 0x8c5   : > { %8924 = vmatprep.mubr.msk.bf16.mxu1 %vm5543_vm6, %v12775_v39  ;;  %8937 = vmatpush3.bf16.msra.mxu1 %v6453_v21 }
 0x8c6   : > { %8954 = vmatprep.subr.bf16.mxu1 %v9796_v53 }
 0x8cc   : > { %8925 = vmatmul.mubr.msk.bf16.gmra.mrb[140].mxu1 %vm5543_vm6, %v12776_v10 }
 0x8cd   : > { %8938 = vmatprep.mubr.msk.bf16.mxu1 %vm5543_vm6, %v12779_v20 }
 0x8d4   : > { %8939 = vmatmul.mubr.msk.bf16.vlgmr.msra.gmra.mrb[128].mxu1 %vm5543_vm6, %v12782_v61 }
 0x8d5   : > { %8942 = vmatprep.mubr.msk.bf16.mxu1 %vm5543_vm6, %v12783_v19  ;;  %8955 = vmatpush3.bf16.msra.mxu1 %v9796_v53 }
 0x8d6   : > { %8956 = vmatprep.subr.bf16.mxu1 %v9797_v29 }
 0x8d9   : > { %8957 = vmatpush3.bf16.msra.mxu1 %v9797_v29 }
 0x8da   : > { %8958 = vmatprep.subr.bf16.mxu1 %v9798_v32 }
 0x8dc   : > { %8943 = vmatmul.mubr.msk.bf16.gmra.mrb[132].mxu1 %vm5543_vm6, %v12786_v26 }
 0x8dd   : > { %8946 = vmatprep.mubr.msk.bf16.mxu1 %vm5543_vm6, %v6397_v42  ;;  %8959 = vmatpush3.bf16.msra.mxu1 %v9798_v32  ;;  %v9807_v42 = vld [vmem:[%s12648_s10 + $0x30] sm:$0xff]  }
 0x8de   : > { %8960 = vmatprep.subr.bf16.mxu1 %v9800_v38  ;;  %8998 = vmatprep.subr.bf16.mxu0 %v9807_v42 }
 0x8df   : > { %8999 = vmatpush3.bf16.msra.mxu0 %v9807_v42 }
 0x8e0   : > { %9000 = vmatprep.subr.bf16.mxu0 %v9809_v52 }
 0x8e1   : > { %8961 = vmatpush3.bf16.msra.mxu1 %v9800_v38 }
 0x8e2   : > { %8962 = vmatprep.subr.bf16.mxu1 %v9802_v12 }
 0x8e3   : > { %9001 = vmatpush3.bf16.msra.mxu0 %v9809_v52 }
 0x8e4   : > { %8947 = vmatmul.mubr.msk.bf16.gmra.mrb[136].mxu1 %vm5543_vm6, %v12789_v11  ;;  %v9811_v11 = vld [vmem:[%s12650_s12] sm:$0xff]  }
 0x8e5   : > { %8950 = vmatprep.mubr.msk.bf16.mxu1 %vm5543_vm6, %v6399_v55  ;;  %8963 = vmatpush3.bf16.msra.mxu1 %v9802_v12 }
 0x8e6   : > { %8964 = vmatprep.subr.bf16.mxu1 %v9804_v57 }
 0x8e9   : > { %8965 = vmatpush3.bf16.msra.mxu1 %v9804_v57 }
 0x8ea   : > { %8966 = vmatprep.subr.bf16.mxu1 %v9806_v24 }
 0x8ec   : > { %8951 = vmatmul.mubr.msk.bf16.gmra.mrb[140].mxu1 %vm5543_vm6, %v12790_v59 }
 0x8ed   : > { %8967 = vmatpush3.bf16.msra.mxu1 %v9806_v24 }
 0x8ee   : > { %8968 = vmatprep.subr.bf16.mxu1 %v9808_v63 }
 0x8f1   : > { %8969 = vmatpush3.bf16.msra.mxu1 %v9808_v63 }
 0x9a7   : > { %v8940_v50 = vpop.f32.mrb[128].mxu1 }
 0x9a8   : > { %v6577_v55 = vadd.f32 %v8940_v50, %v8232_v0  ;;  %v6489_v18 = vpop.f32.mrb[129].mxu1 }
 0x9a9   : > { %v6575_v25 = vadd.f32 %v8232_v0, %v6489_v18  ;;  %v8941_v58 = vpop.f32.mrb[130].mxu1 }
 0x9aa   : > { %v6578_v6 = vadd.f32 %v8941_v58, %v8232_v0  ;;  %v6492_v4 = vpop.f32.mrb[131].mxu1  ;;  %v6593_v31 = vmax.f32 %v6577_v55, 0.0 }
 0x9ab   : > { %v6576_v41 = vadd.f32 %v8232_v0, %v6492_v4  ;;  %v6591_v23 = vmax.f32 %v6575_v25, 0.0 }
 0x9ac   : > { %v6594_v15 = vmax.f32 %v6578_v6, 0.0 }
 0x9ad   : > { %v6592_v51 = vmax.f32 %v6576_v41, 0.0 }
 0x9ae   : > { %v6624_v27 = vpack.c.bf16 %v6594_v15, %v6593_v31 }
 0x9af   : > { %v6623_v16 = vpack.c.bf16 %v6592_v51, %v6591_v23  ;;  %v8944_v48 = vpop.f32.mrb[132].mxu1 }
 0x9b0   : > { %v6581_v54 = vadd.f32 %v8944_v48, %v8232_v0  ;;  %v6505_v17 = vpop.f32.mrb[133].mxu1 }
 0x9b1   : > { %v6579_v60 = vadd.f32 %v8232_v0, %v6505_v17  ;;  %v8945_v5 = vpop.f32.mrb[134].mxu1  ;;  %8970 = vmatprep.mubr.bf16.mxu1 %v6623_v16  ;;  %9002 = vmatprep.mubr.bf16.mxu0 %v6623_v16 }
 0x9b2   : > { %v6582_v45 = vadd.f32 %v8945_v5, %v8232_v0  ;;  %v6508_v28 = vpop.f32.mrb[135].mxu1  ;;  %8971 = vmatmul.mubr.bf16.vlgmr.msra.gmra.mrb[144].mxu1 %v6624_v27  ;;  %9003 = vmatmul.mubr.bf16.vlgmr.msra.gmra.mrb[96].mxu0 %v6624_v27  ;;  %v6597_v14 = vmax.f32 %v6581_v54, 0.0 }
 0x9b3   : > { %v6580_v22 = vadd.f32 %v8232_v0, %v6508_v28  ;;  %v6595_v62 = vmax.f32 %v6579_v60, 0.0 }
 0x9b4   : > { %v6598_v35 = vmax.f32 %v6582_v45, 0.0 }
 0x9b5   : > { %v6596_v13 = vmax.f32 %v6580_v22, 0.0 }
 0x9b6   : > { %v6626_v2 = vpack.c.bf16 %v6598_v35, %v6597_v14 }
 0x9b7   : > { %v6625_v40 = vpack.c.bf16 %v6596_v13, %v6595_v62  ;;  %v8948_v33 = vpop.f32.mrb[136].mxu1 }
 0x9b8   : > { %v6585_v7 = vadd.f32 %v8948_v33, %v8232_v0  ;;  %v6521_v9 = vpop.f32.mrb[137].mxu1 }
 0x9b9   : > { %v6583_v49 = vadd.f32 %v8232_v0, %v6521_v9  ;;  %v8949_v3 = vpop.f32.mrb[138].mxu1  ;;  %8974 = vmatprep.mubr.bf16.mxu1 %v6625_v40  ;;  %9006 = vmatprep.mubr.bf16.mxu0 %v6625_v40 }
 0x9ba   : > { %v6586_v21 = vadd.f32 %v8949_v3, %v8232_v0  ;;  %v6524_v53 = vpop.f32.mrb[139].mxu1  ;;  %8975 = vmatmul.mubr.bf16.gmra.mrb[148].mxu1 %v6626_v2  ;;  %9007 = vmatmul.mubr.bf16.gmra.mrb[100].mxu0 %v6626_v2  ;;  %v6601_v36 = vmax.f32 %v6585_v7, 0.0 }
 0x9bb   : > { %v6584_v37 = vadd.f32 %v8232_v0, %v6524_v53  ;;  %v6599_v39 = vmax.f32 %v6583_v49, 0.0 }
 0x9bc   : > { %v6602_v47 = vmax.f32 %v6586_v21, 0.0 }
 0x9bd   : > { %v6600_v10 = vmax.f32 %v6584_v37, 0.0 }
 0x9be   : > { %v6628_v30 = vpack.c.bf16 %v6602_v47, %v6601_v36 }
 0x9bf   : > { %v6627_v44 = vpack.c.bf16 %v6600_v10, %v6599_v39  ;;  %v8952_v20 = vpop.f32.mrb[140].mxu1 }
 0x9c0   : > { %v6589_v29 = vadd.f32 %v8952_v20, %v8232_v0  ;;  %v6537_v43 = vpop.f32.mrb[141].mxu1 }
 0x9c1   : > { %v6587_v56 = vadd.f32 %v8232_v0, %v6537_v43  ;;  %v8953_v61 = vpop.f32.mrb[142].mxu1  ;;  %8978 = vmatprep.mubr.bf16.mxu1 %v6627_v44  ;;  %9010 = vmatprep.mubr.bf16.mxu0 %v6627_v44 }
 0x9c2   : > { %v6590_v19 = vadd.f32 %v8953_v61, %v8232_v0  ;;  %v6540_v32 = vpop.f32.mrb[143].mxu1  ;;  %8979 = vmatmul.mubr.bf16.gmra.mrb[152].mxu1 %v6628_v30  ;;  %9011 = vmatmul.mubr.bf16.gmra.mrb[104].mxu0 %v6628_v30  ;;  %v6605_v46 = vmax.f32 %v6589_v29, 0.0 }
 0x9c3   : > { %v6588_v38 = vadd.f32 %v8232_v0, %v6540_v32  ;;  %v6603_v26 = vmax.f32 %v6587_v56, 0.0 }
 0x9c4   : > { %v6606_v8 = vmax.f32 %v6590_v19, 0.0 }
 0x9c5   : > { %v6604_v12 = vmax.f32 %v6588_v38, 0.0 }
 0x9c6   : > { %v6630_v57 = vpack.c.bf16 %v6606_v8, %v6605_v46  ;;  %v9812_v46 = vld [vmem:[%s12649_s11 + $0x8] sm:$0xff]  }
 0x9c7   : > { %v6629_v34 = vpack.c.bf16 %v6604_v12, %v6603_v26  ;;  %v9813_v8 = vld [vmem:[%s12650_s12 + $0x8] sm:$0xff]   ;;  %v9814_v26 = vld [vmem:[%s12649_s11 + $0x10] sm:$0xff]  }
 0x9c8   : > { %v9815_v12 = vld [vmem:[%s12650_s12 + $0x10] sm:$0xff]  }
 0x9c9   : > { %8982 = vmatprep.mubr.bf16.mxu1 %v6629_v34  ;;  %9014 = vmatprep.mubr.bf16.mxu0 %v6629_v34  ;;  %v9818_v34 = vld [vmem:[%s12651_s13 + $0x20] sm:$0xff]  }
 0x9ca   : > { %8983 = vmatmul.mubr.bf16.gmra.mrb[156].mxu1 %v6630_v57  ;;  %9015 = vmatmul.mubr.bf16.gmra.mrb[108].mxu0 %v6630_v57  ;;  %v9851_v57 = vmov 0.0  }
 0x9cb   : > { %9034 = vmatprep.mubr.bf16.mxu1 %v9810_v1  ;;  %9058 = vmatprep.mubr.bf16.mxu0 %v9811_v11  ;;  %v9819_v1 = vld [vmem:[%s12651_s13] sm:$0xff]   ;;  %v9820_v11 = vld [vmem:[%s12651_s13 + $0x28] sm:$0xff]  }
 0xa85   : > { %v8972_v59 = vpop.f32.mrb[144].mxu1  ;;  %v9004_v24 = vpop.f32.mrb[96].mxu0 }
 0xa86   : > { %v6939_v42 = vmax.f32 %v8972_v59, %v9004_v24  ;;  %v6713_v63 = vpop.f32.mrb[145].mxu1  ;;  %v6874_v52 = vpop.f32.mrb[97].mxu0  ;;  %v9821_v59 = vld [vmem:[%s12651_s13 + $0x8] sm:$0xff]   ;;  %v9816_v24 = vld [vmem:[%s12649_s11 + $0x18] sm:$0xff]  }
 0xa87   : > { %v6937_v0 = vmax.f32 %v6713_v63, %v6874_v52  ;;  %v8973_v50 = vpop.f32.mrb[146].mxu1  ;;  %v9005_v55 = vpop.f32.mrb[98].mxu0  ;;  %v9822_v63 = vld [vmem:[%s12651_s13 + $0x30] sm:$0xff]  }
 0xa88   : > { %v6940_v18 = vmax.f32 %v8973_v50, %v9005_v55  ;;  %v6716_v25 = vpop.f32.mrb[147].mxu1  ;;  %v6877_v58 = vpop.f32.mrb[99].mxu0  ;;  %v9823_v52 = vld [vmem:[%s12651_s13 + $0x10] sm:$0xff]   ;;  %v9825_v50 = vld [vmem:[%s12651_s13 + $0x18] sm:$0xff]  }
 0xa89   : > { %v6938_v6 = vmax.f32 %v6716_v25, %v6877_v58 }
 0xa8a   : > { %v6962_v4 = vpack.c.bf16 %v6940_v18, %v6939_v42  ;;  %v9817_v42 = vld [vmem:[%s12650_s12 + $0x18] sm:$0xff]  }
 0xa8b   : > { %v6961_v41 = vpack.c.bf16 %v6938_v6, %v6937_v0  ;;  %v9824_v0 = vld [vmem:[%s12651_s13 + $0x38] sm:$0xff]  }
 0xa8d   : > { %v8976_v31 = vpop.f32.mrb[148].mxu1  ;;  %v9008_v15 = vpop.f32.mrb[100].mxu0  ;;  %9018 = vmatprep.subr.bf16.mxu1 %v6961_v41  ;;  %9042 = vmatprep.subr.bf16.mxu0 %v6961_v41 }
 0xa8e   : > { %v6943_v23 = vmax.f32 %v8976_v31, %v9008_v15  ;;  %v6729_v51 = vpop.f32.mrb[149].mxu1  ;;  %v6890_v27 = vpop.f32.mrb[101].mxu0  ;;  %9019 = vmatpush3.bf16.msra.mxu1 %v6961_v41  ;;  %9043 = vmatpush3.bf16.msra.mxu0 %v6961_v41 }
 0xa8f   : > { %v6941_v16 = vmax.f32 %v6729_v51, %v6890_v27  ;;  %v8977_v48 = vpop.f32.mrb[150].mxu1  ;;  %v9009_v54 = vpop.f32.mrb[102].mxu0  ;;  %9020 = vmatprep.subr.bf16.mxu1 %v6962_v4  ;;  %9044 = vmatprep.subr.bf16.mxu0 %v6962_v4 }
 0xa90   : > { %v6944_v17 = vmax.f32 %v8977_v48, %v9009_v54  ;;  %v6732_v60 = vpop.f32.mrb[151].mxu1  ;;  %v6893_v5 = vpop.f32.mrb[103].mxu0  ;;  %v9827_v54 = vld [vmem:[%s12651_s13 + $0x60] sm:$0xff]  }
 0xa91   : > { %v6942_v45 = vmax.f32 %v6732_v60, %v6893_v5  ;;  %v9828_v60 = vld [vmem:[%s12651_s13 + $0x48] sm:$0xff]  }
 0xa92   : > { %v6964_v28 = vpack.c.bf16 %v6944_v17, %v6943_v23  ;;  %9021 = vmatpush3.bf16.msra.mxu1 %v6962_v4  ;;  %9045 = vmatpush3.bf16.msra.mxu0 %v6962_v4 }
 0xa93   : > { %v6963_v22 = vpack.c.bf16 %v6942_v45, %v6941_v16  ;;  %v9826_v16 = vld [vmem:[%s12651_s13 + $0x40] sm:$0xff]  }
 0xa95   : > { %v8980_v14 = vpop.f32.mrb[152].mxu1  ;;  %v9012_v35 = vpop.f32.mrb[104].mxu0  ;;  %9022 = vmatprep.subr.bf16.mxu1 %v6963_v22  ;;  %9046 = vmatprep.subr.bf16.mxu0 %v6963_v22 }
 0xa96   : > { %v6947_v62 = vmax.f32 %v8980_v14, %v9012_v35  ;;  %v6745_v13 = vpop.f32.mrb[153].mxu1  ;;  %v6906_v2 = vpop.f32.mrb[105].mxu0  ;;  %9023 = vmatpush3.bf16.msra.mxu1 %v6963_v22  ;;  %9047 = vmatpush3.bf16.msra.mxu0 %v6963_v22 }
 0xa97   : > { %v6945_v40 = vmax.f32 %v6745_v13, %v6906_v2  ;;  %v8981_v33 = vpop.f32.mrb[154].mxu1  ;;  %v9013_v7 = vpop.f32.mrb[106].mxu0  ;;  %9024 = vmatprep.subr.bf16.mxu1 %v6964_v28  ;;  %9048 = vmatprep.subr.bf16.mxu0 %v6964_v28 }
 0xa98   : > { %v6948_v9 = vmax.f32 %v8981_v33, %v9013_v7  ;;  %v6748_v49 = vpop.f32.mrb[155].mxu1  ;;  %v6909_v3 = vpop.f32.mrb[107].mxu0 }
 0xa99   : > { %v6946_v21 = vmax.f32 %v6748_v49, %v6909_v3 }
 0xa9a   : > { %v6966_v53 = vpack.c.bf16 %v6948_v9, %v6947_v62  ;;  %9025 = vmatpush3.bf16.msra.mxu1 %v6964_v28  ;;  %9049 = vmatpush3.bf16.msra.mxu0 %v6964_v28  ;;  %v9829_v28 = vld [vmem:[%s12651_s13 + $0x68] sm:$0xff]   ;;  %v9830_v9 = vld [vmem:[%s12651_s13 + $0x50] sm:$0xff]  }
 0xa9b   : > { %v6965_v37 = vpack.c.bf16 %v6946_v21, %v6945_v40  ;;  %v9831_v21 = vld [vmem:[%s12651_s13 + $0x70] sm:$0xff]  }
 0xa9d   : > { %v8984_v36 = vpop.f32.mrb[156].mxu1  ;;  %v9016_v47 = vpop.f32.mrb[108].mxu0  ;;  %9026 = vmatprep.subr.bf16.mxu1 %v6965_v37  ;;  %9050 = vmatprep.subr.bf16.mxu0 %v6965_v37 }
 0xa9e   : > { %v6951_v39 = vmax.f32 %v8984_v36, %v9016_v47  ;;  %v6761_v10 = vpop.f32.mrb[157].mxu1  ;;  %v6922_v30 = vpop.f32.mrb[109].mxu0  ;;  %9027 = vmatpush3.bf16.msra.mxu1 %v6965_v37  ;;  %9051 = vmatpush3.bf16.msra.mxu0 %v6965_v37  ;;  %v9832_v37 = vld [vmem:[%s12651_s13 + $0x58] sm:$0xff]  }
 0xa9f   : > { %v6949_v44 = vmax.f32 %v6761_v10, %v6922_v30  ;;  %v8985_v20 = vpop.f32.mrb[158].mxu1  ;;  %v9017_v29 = vpop.f32.mrb[110].mxu0  ;;  %9028 = vmatprep.subr.bf16.mxu1 %v6966_v53  ;;  %9052 = vmatprep.subr.bf16.mxu0 %v6966_v53  ;;  %v9833_v36 = vld [vmem:[%s12651_s13 + $0x78] sm:$0xff]  }
 0xaa0   : > { %v6952_v43 = vmax.f32 %v8985_v20, %v9017_v29  ;;  %v6764_v56 = vpop.f32.mrb[159].mxu1  ;;  %v6925_v61 = vpop.f32.mrb[111].mxu0 }
 0xaa1   : > { %v6950_v19 = vmax.f32 %v6764_v56, %v6925_v61 }
 0xaa2   : > { %v6968_v32 = vpack.c.bf16 %v6952_v43, %v6951_v39  ;;  %9029 = vmatpush3.bf16.msra.mxu1 %v6966_v53  ;;  %9053 = vmatpush3.bf16.msra.mxu0 %v6966_v53 }
 0xaa3   : > { %v6967_v38 = vpack.c.bf16 %v6950_v19, %v6949_v44 }
 0xaa5   : > { %9030 = vmatprep.subr.bf16.mxu1 %v6967_v38  ;;  %9054 = vmatprep.subr.bf16.mxu0 %v6967_v38 }
 0xaa6   : > { %9031 = vmatpush3.bf16.msra.mxu1 %v6967_v38  ;;  %9055 = vmatpush3.bf16.msra.mxu0 %v6967_v38 }
 0xaa7   : > { %9032 = vmatprep.subr.bf16.mxu1 %v6968_v32  ;;  %9056 = vmatprep.subr.bf16.mxu0 %v6968_v32 }
 0xaaa   : > { %9033 = vmatpush3.bf16.msra.mxu1 %v6968_v32  ;;  %9057 = vmatpush3.bf16.msra.mxu0 %v6968_v32 }
 0xaab   : > { %9066 = vmatprep.subr.bf16.mxu1 %v9851_v57  ;;  %9078 = vmatprep.subr.bf16.mxu0 %v9851_v57 }
 0xaad   : > { %9035 = vmatmul.mubr.bf16.vlgmr.msra.gmra.mrb[160].mxu1 %v9812_v46  ;;  %9059 = vmatmul.mubr.bf16.vlgmr.msra.gmra.mrb[112].mxu0 %v9813_v8  ;;  %v8301_v8 = vld [vmem:[%s12652_s14] ss:$0 sm:$0xff] }
 0xaae   : > { %9038 = vmatprep.mubr.bf16.mxu1 %v9814_v26  ;;  %9062 = vmatprep.mubr.bf16.mxu0 %v9815_v12 }
 0xaaf   : > { %9067 = vmatpush3.bf16.msra.mxu1 %v9818_v34  ;;  %9079 = vmatpush3.bf16.msra.mxu0 %v9819_v1 }
 0xab0   : > { %9068 = vmatprep.subr.bf16.mxu1 %v9851_v57  ;;  %9080 = vmatprep.subr.bf16.mxu0 %v9851_v57 }
 0xab3   : > { %9069 = vmatpush3.bf16.msra.mxu1 %v9820_v11  ;;  %9081 = vmatpush3.bf16.msra.mxu0 %v9821_v59 }
 0xab4   : > { %9070 = vmatprep.subr.bf16.mxu1 %v9851_v57  ;;  %9082 = vmatprep.subr.bf16.mxu0 %v9851_v57 }
 0xab5   : > { %9039 = vmatmul.mubr.bf16.gmra.mrb[164].mxu1 %v9816_v24  ;;  %9063 = vmatmul.mubr.bf16.gmra.mrb[116].mxu0 %v9817_v42 }
 0xab6   : > { %9074 = vmatprep.mubr.msk.bf16.mxu1 %vm9852_vm7, %v9851_v57  ;;  %9086 = vmatprep.mubr.msk.bf16.mxu0 %vm9852_vm7, %v9851_v57 }
 0xab7   : > { %9071 = vmatpush3.bf16.msra.mxu1 %v9822_v63  ;;  %9083 = vmatpush3.bf16.msra.mxu0 %v9823_v52  ;;  %v8302_v63 = vld [vmem:[%s12653_s15] ss:$0 sm:$0xff] }
 0xab8   : > { %9072 = vmatprep.subr.bf16.mxu1 %v9851_v57  ;;  %9084 = vmatprep.subr.bf16.mxu0 %v9851_v57 }
 0xabb   : > { %9073 = vmatpush3.bf16.msra.mxu1 %v9824_v0  ;;  %9085 = vmatpush3.bf16.msra.mxu0 %v9825_v50 }
 0xabc   : > { %9090 = vmatprep.subr.bf16.mxu1 %v9851_v57  ;;  %9102 = vmatprep.subr.bf16.mxu0 %v9851_v57 }
 0xb80   : > { %v9036_v55 = vpop.f32.mrb[160].mxu1  ;;  %v9060_v18 = vpop.f32.mrb[112].mxu0 }
 0xb81   : > { %v7157_v25 = vmax.f32 %v9036_v55, %v9060_v18  ;;  %v7027_v58 = vpop.f32.mrb[161].mxu1  ;;  %v7124_v6 = vpop.f32.mrb[113].mxu0 }
 0xb82   : > { %v7155_v4 = vmax.f32 %v7027_v58, %v7124_v6  ;;  %v9037_v41 = vpop.f32.mrb[162].mxu1  ;;  %v9061_v31 = vpop.f32.mrb[114].mxu0  ;;  %v8303_v6 = vld [vmem:[#allocation2] ss:$0 sm:$0xff] }
 0xb83   : > { %v7158_v15 = vmax.f32 %v9037_v41, %v9061_v31  ;;  %v7030_v23 = vpop.f32.mrb[163].mxu1  ;;  %v7127_v51 = vpop.f32.mrb[115].mxu0 }
 0xb84   : > { %v7156_v27 = vmax.f32 %v7030_v23, %v7127_v51 }
 0xb85   : > { %v7181_v48 = vpack.c.bf16 %v7158_v15, %v7157_v25 }
 0xb86   : > { %v7171_v17 = vpack.c.bf16 %v7156_v27, %v7155_v4 }
 0xb87   : > { %9075 = vmatmul.mubr.msk.bf16.vlgmr.msra.gmra.mrb[168].mxu1 %vm7206_vm8, %v7181_v48 }
 0xb88   : > { %9091 = vmatpush3.bf16.msra.mxu1 %v9826_v16  ;;  %9087 = vmatmul.mubr.msk.bf16.vlgmr.msra.gmra.mrb[120].mxu0 %vm7206_vm8, %v7171_v17  ;;  %v9040_v5 = vpop.f32.mrb[164].mxu1  ;;  %v9064_v45 = vpop.f32.mrb[116].mxu0 }
 0xb89   : > { %9103 = vmatpush3.bf16.msra.mxu0 %v9827_v54  ;;  %9092 = vmatprep.subr.bf16.mxu1 %v9851_v57  ;;  %v7161_v22 = vmax.f32 %v9040_v5, %v9064_v45  ;;  %v7043_v14 = vpop.f32.mrb[165].mxu1  ;;  %v7140_v35 = vpop.f32.mrb[117].mxu0 }
 0xb8a   : > { %9104 = vmatprep.subr.bf16.mxu0 %v9851_v57  ;;  %v7159_v62 = vmax.f32 %v7043_v14, %v7140_v35  ;;  %v9041_v13 = vpop.f32.mrb[166].mxu1  ;;  %v9065_v2 = vpop.f32.mrb[118].mxu0  ;;  %9098 = vmatprep.mubr.msk.bf16.mxu1 %vm9852_vm7, %v9851_v57 }
 0xb8b   : > { %v7162_v40 = vmax.f32 %v9041_v13, %v9065_v2  ;;  %v7046_v33 = vpop.f32.mrb[167].mxu1  ;;  %v7143_v7 = vpop.f32.mrb[119].mxu0  ;;  %9110 = vmatprep.mubr.msk.bf16.mxu0 %vm9852_vm7, %v9851_v57  ;;  %v9853_v2 = vmov 683565275  }
 0xb8c   : > { %9093 = vmatpush3.bf16.msra.mxu1 %v9828_v60  ;;  %v7160_v49 = vmax.f32 %v7046_v33, %v7143_v7 }
 0xb8d   : > { %9105 = vmatpush3.bf16.msra.mxu0 %v9829_v28  ;;  %9094 = vmatprep.subr.bf16.mxu1 %v9851_v57  ;;  %v7408_v3 = vpack.c.bf16 %v7162_v40, %v7161_v22 }
 0xb8e   : > { %9106 = vmatprep.subr.bf16.mxu0 %v9851_v57  ;;  %v7328_v53 = vpack.c.bf16 %v7160_v49, %v7159_v62 }
 0xb90   : > { %9095 = vmatpush3.bf16.msra.mxu1 %v9830_v9  ;;  %v9854_v9 = vmov 2475754826  }
 0xb91   : > { %9107 = vmatpush3.bf16.msra.mxu0 %v9831_v21  ;;  %9096 = vmatprep.subr.bf16.mxu1 %v9851_v57 }
 0xb92   : > { %9108 = vmatprep.subr.bf16.mxu0 %v9851_v57 }
 0xb94   : > { %9097 = vmatpush3.bf16.msra.mxu1 %v9832_v37 }
 0xb95   : > { %9109 = vmatpush3.bf16.msra.mxu0 %v9833_v36  ;;  %v9857_v36 = vmov 920167782  }
 0xb97   : > { %9099 = vmatmul.mubr.msk.bf16.vlgmr.msra.gmra.mrb[172].mxu1 %vm7206_vm8, %v7328_v53  ;;  %v9856_v53 = vmov 2102212464  }
 0xb98   : > { %9111 = vmatmul.mubr.msk.bf16.vlgmr.msra.gmra.mrb[124].mxu0 %vm7206_vm8, %v7408_v3  ;;  %v9855_v3 = vmov 2131351028  }
 0xc5a   : > { %v7244_v47 = vpop.f32.mrb[168].mxu1 }
 0xc5b   : > { %v9076_v39 = vpop.f32.mrb[169].mxu1  ;;  %v7312_v10 = vpop.f32.mrb[120].mxu0 }
 0xc5c   : > { %v7247_v30 = vpop.f32.mrb[170].mxu1  ;;  %v7313_v44 = vadd.f32 %v7312_v10, %v7244_v47  ;;  %v9088_v20 = vpop.f32.mrb[121].mxu0 }
 0xc5d   : > { %v9077_v29 = vpop.f32.mrb[171].mxu1  ;;  %v7315_v43 = vpop.f32.mrb[122].mxu0 }
 0xc5e   : > { %v7316_v56 = vadd.f32 %v7315_v43, %v7247_v30  ;;  %v9089_v61 = vpop.f32.mrb[123].mxu0  ;;  %v9858_v29 = vmov 1326507024  }
 0xc6a   : > { %v7390_v19 = vpop.f32.mrb[172].mxu1 }
 0xc6b   : > { %v7397_v32 = vadd.f32 %v7390_v19, %v7313_v44  ;;  %v7470_v38 = vpop.f32.mrb[124].mxu0  ;;  %v9100_v46 = vpop.f32.mrb[173].mxu1 }
 0xc6c   : > { %v7393_v26 = vpop.f32.mrb[174].mxu1  ;;  %v9112_v12 = vpop.f32.mrb[125].mxu0 }
 0xc6d   : > { %v7477_v57 = vadd.f32 %v7470_v38, %v7397_v32  ;;  %v7398_v34 = vadd.f32 %v7393_v26, %v7316_v56  ;;  %v7473_v1 = vpop.f32.mrb[126].mxu0  ;;  %v9101_v11 = vpop.f32.mrb[175].mxu1 }
 0xc6e   : > { %v9113_v59 = vpop.f32.mrb[127].mxu0 }
 0xc6f   : > { %v7486_v24 = vadd.f32 %v8301_v8, %v7477_v57  ;;  %v7478_v42 = vadd.f32 %v7473_v1, %v7398_v34 }
 0xc71   : > { %v7488_v52 = vmax.f32 %v7486_v24, 0.0  ;;  %v7487_v0 = vadd.f32 %v8301_v8, %v7478_v42 }
 0xc73   : > { %v7489_v50 = vmax.f32 %v7487_v0, 0.0  ;;  %v7497_v55 = vmul.f32 %v8302_v63, %v7488_v52 }
 0xc75   : > { %v7499_v18 = vsel %vm7206_vm8, %v7497_v55, 0.0  ;;  %v7498_v25 = vmul.f32 %v8302_v63, %v7489_v50 }
 0xc76   : > { %7500 = vadd.xlane.f32.xlu0 %v7499_v18 }
 0xc77   : > { %v7502_v58 = vsel %vm7206_vm8, %v7498_v25, 0.0 }
 0xc7a   : > { %7503 = vadd.xlane.f32.xlu0 %v7502_v58 }
 0xd03   : > { %v7501_v4 = vpop.xlane.xlu0 %7500 }
 0xd04   : > { %v12560_v41 = vadd.f32 %v8303_v6, %v7501_v4 }
 0xd06   : > { %v7514_v31 = vand.u32 2147483647, %v12560_v41  ;;  %v7517_v15 = vand.u32 2139095040, %v12560_v41  ;;  %vm7516_vm7 = vcmp.lt.s32.totalorder %v12560_v41, 0 }
 0xd07   : > { %v7504_v23 = vpop.xlane.xlu0 %7503 }
 0xd08   : > { %v7518_v51 = vshrl.u32 %v7517_v15, 23  ;;  %v12564_v27 = vadd.f32 %v8303_v6, %v7504_v23  ;;  %v7521_v16 = vand.u32 8388607, %v7514_v31  ;;  %vm7515_vm8 = vcmp.le.f32.partialorder %v7514_v31, 0.7853982 }
 0xd0a   : > { %v8304_v48 = vadd.s32 4294967169, %v7518_v51  ;;  %v7621_v54 = vand.u32 2139095040, %v12564_v27  ;;  %v7522_v60 = vor.u32 8388608, %v7521_v16  ;;  %v7618_v45 = vand.u32 2147483647, %v12564_v27 }
 0xd0c   : > { %v7524_v17 = vadd.s32 1, %v8304_v48  ;;  %v7622_v5 = vshrl.u32 %v7621_v54, 23  ;;  %v12570_v62 = vshll.u32 %v7522_v60, 8  ;;  %v7625_v33 = vand.u32 8388607, %v7618_v45 }
 0xd0e   : > { %vm7525_vm9 = vcmp.gt.s32.totalorder %v7524_v17, 0  ;;  %v8308_v22 = vadd.s32 4294967169, %v7622_v5  ;;  %v7626_v59 = vor.u32 8388608, %v7625_v33 }
 0xd0f   : > { %v7526_v28 = vsel %vm7525_vm9, %v7524_v17, 0  ;;  %vm7620_vm9 = vcmp.lt.s32.totalorder %v12564_v27, 0 }
 0xd10   : > { %v7527_v14 = vshrl.u32 %v7526_v28, 5  ;;  %v7528_v35 = vand.u32 31, %v7526_v28  ;;  %v7628_v7 = vadd.s32 1, %v8308_v22  ;;  %v7666_v15 = vshll.u32 %v7626_v59, 8 }
 0xd12   : > { %v7529_v13 = vsub.s32 32, %v7528_v35  ;;  %v7531_v40 = vshll.u32 %v9853_v2, %v7528_v35  ;;  %v7534_v49 = vshll.u32 %v9854_v9, %v7528_v35  ;;  %v7537_v21 = vshll.u32 %v9855_v3, %v7528_v35 }
 0xd13   : > { %v7540_v37 = vshll.u32 %v9856_v53, %v7528_v35  ;;  %v7543_v47 = vshll.u32 %v9857_v36, %v7528_v35  ;;  %vm7546_vm10 = vcmp.lt.s32.totalorder %v7527_v14, 1  ;;  %vm7548_vm11 = vcmp.lt.s32.totalorder %v7527_v14, 3 }
 0xd14   : > { %v7532_v39 = vshrl.u32 %v9854_v9, %v7529_v13  ;;  %v7535_v10 = vshrl.u32 %v9855_v3, %v7529_v13  ;;  %v7538_v30 = vshrl.u32 %v9856_v53, %v7529_v13  ;;  %v7530_v44 = vshrl.u32 %v9853_v2, %v7529_v13 }
 0xd15   : > { %v7541_v20 = vshrl.u32 %v9857_v36, %v7529_v13  ;;  %v7544_v43 = vshrl.u32 %v9858_v29, %v7529_v13  ;;  %vm7629_vm12 = vcmp.gt.s32.totalorder %v7628_v7, 0  ;;  %vm7549_vm13 = vcmp.lt.s32.totalorder %v7527_v14, 4 }
 0xd16   : > { %v7533_v56 = vor.u32 %v7532_v39, %v7531_v40  ;;  %v7536_v61 = vor.u32 %v7535_v10, %v7534_v49  ;;  %v7539_v19 = vor.u32 %v7538_v30, %v7537_v21  ;;  %v7630_v46 = vsel %vm7629_vm12, %v7628_v7, 0 }
 0xd17   : > { %v7542_v32 = vor.u32 %v7541_v20, %v7540_v37  ;;  %v7545_v38 = vor.u32 %v7544_v43, %v7543_v47  ;;  %vm7547_vm14 = vcmp.lt.s32.totalorder %v7527_v14, 2  ;;  %v7632_v63 = vand.u32 31, %v7630_v46 }
 0xd18   : > { %v7550_v8 = vsel %vm7546_vm10, %v7530_v44, %v7533_v56  ;;  %v7551_v26 = vsel %vm7549_vm13, %v7539_v19, 2102212464  ;;  %v7554_v12 = vsel %vm7546_vm10, %v7533_v56, %v7536_v61  ;;  %v7558_v57 = vsel %vm7546_vm10, %v7536_v61, %v7539_v19 }
 0xd19   : > { %v7552_v34 = vsel %vm7548_vm11, %v7536_v61, %v7551_v26  ;;  %v7555_v1 = vsel %vm7549_vm13, %v7542_v32, 920167782  ;;  %v7559_v11 = vsel %vm7549_vm13, %v7545_v38, 1326507024  ;;  %v7631_v6 = vshrl.u32 %v7630_v46, 5 }
 0xd1a   : > { %v7556_v24 = vsel %vm7548_vm11, %v7539_v19, %v7555_v1  ;;  %v7560_v42 = vsel %vm7548_vm11, %v7542_v32, %v7559_v11  ;;  %v7553_v52 = vsel %vm7547_vm14, %v7550_v8, %v7552_v34  ;;  %v7633_v4 = vsub.s32 32, %v7632_v63 }
 0xd1b   : > { %v7557_v0 = vsel %vm7547_vm14, %v7554_v12, %v7556_v24  ;;  %v7561_v50 = vsel %vm7547_vm14, %v7558_v57, %v7560_v42  ;;  %v7569_v23 = vmul.u32 %v12570_v62, %v7553_v52  ;;  %v7635_v51 = vshll.u32 %v9853_v2, %v7632_v63 }
 0xd1c   : > { %v12583_v55 = vmul.u32.u64.low %v12570_v62, %v7561_v50  ;;  %v12584_v18 = vmul.u32.u64.high %v12570_v62, %v7561_v50, %v12583_v55  ;;  %v12587_v25 = vmul.u32.u64.low %v12570_v62, %v7557_v0  ;;  %v12588_v58 = vmul.u32.u64.high %v12570_v62, %v7557_v0, %v12587_v25 }
 0xd1d   : > { %v7638_v16 = vshll.u32 %v9854_v9, %v7632_v63  ;;  %v7641_v48 = vshll.u32 %v9855_v3, %v7632_v63  ;;  %v7636_v54 = vshrl.u32 %v9854_v9, %v7633_v4  ;;  %v7639_v17 = vshrl.u32 %v9855_v3, %v7633_v4 }
 0xd1e   : > { %v7642_v60 = vshrl.u32 %v9856_v53, %v7633_v4  ;;  %v7644_v5 = vshll.u32 %v9856_v53, %v7632_v63  ;;  %vm7571_vm15 = vc.u32 %v12584_v18, %v12587_v25  ;;  %v7572_v28 = vadd.s32 1, %v12588_v58 }
 0xd1f   : > { %v7645_v22 = vshrl.u32 %v9857_v36, %v7633_v4  ;;  %v7647_v14 = vshll.u32 %v9857_v36, %v7632_v63  ;;  %v7637_v35 = vor.u32 %v7636_v54, %v7635_v51  ;;  %v7640_v13 = vor.u32 %v7639_v17, %v7638_v16 }
 0xd20   : > { %v7643_v40 = vor.u32 %v7642_v60, %v7641_v48  ;;  %v7648_v33 = vshrl.u32 %v9858_v29, %v7633_v4  ;;  %v7573_v62 = vsel %vm7571_vm15, %v7572_v28, %v12588_v58  ;;  %vm7650_vm0 = vcmp.lt.s32.totalorder %v7631_v6, 1 }
 0xd21   : > { %v7646_v7 = vor.u32 %v7645_v22, %v7644_v5  ;;  %vm7653_vm1 = vcmp.lt.s32.totalorder %v7631_v6, 4  ;;  %v7574_v9 = vadd.s32 %v7573_v62, %v7569_v23  ;;  %vm7652_vm2 = vcmp.lt.s32.totalorder %v7631_v6, 3 }
 0xd22   : > { %v7649_v49 = vor.u32 %v7648_v33, %v7647_v14  ;;  %v7655_v3 = vsel %vm7653_vm1, %v7643_v40, 2102212464  ;;  %v7634_v21 = vshrl.u32 %v9853_v2, %v7633_v4  ;;  %v7658_v53 = vsel %vm7650_vm0, %v7637_v35, %v7640_v13 }
 0xd23   : > { %v7659_v37 = vsel %vm7653_vm1, %v7646_v7, 920167782  ;;  %v7662_v47 = vsel %vm7650_vm0, %v7640_v13, %v7643_v40  ;;  %v7575_v39 = vadd.s32 536870912, %v7574_v9  ;;  %vm7651_vm3 = vcmp.lt.s32.totalorder %v7631_v6, 2 }
 0xd24   : > { %v7660_v36 = vsel %vm7652_vm2, %v7643_v40, %v7659_v37  ;;  %v7663_v10 = vsel %vm7653_vm1, %v7649_v49, 1326507024  ;;  %v7654_v30 = vsel %vm7650_vm0, %v7634_v21, %v7637_v35  ;;  %v7656_v44 = vsel %vm7652_vm2, %v7640_v13, %v7655_v3 }
 0xd25   : > { %v7661_v20 = vsel %vm7651_vm3, %v7658_v53, %v7660_v36  ;;  %v7664_v29 = vsel %vm7652_vm2, %v7646_v7, %v7663_v10  ;;  %v7576_v43 = vshrl.u32 %v7575_v39, 30  ;;  %v7657_v46 = vsel %vm7651_vm3, %v7654_v30, %v7656_v44 }
 0xd26   : > { %v7665_v56 = vsel %vm7651_vm3, %v7662_v47, %v7664_v29  ;;  %v12598_v61 = vmul.u32.u64.low %v7666_v15, %v7661_v20  ;;  %v12599_v19 = vmul.u32.u64.high %v7666_v15, %v7661_v20, %v12598_v61  ;;  %v7673_v12 = vmul.u32 %v7666_v15, %v7657_v46 }
 0xd27   : > { %v12601_v32 = vmul.u32.u64.low %v7666_v15, %v7665_v56  ;;  %v12602_v38 = vmul.u32.u64.high %v7666_v15, %v7665_v56, %v12601_v32  ;;  %v7577_v2 = vshll.u32 %v7576_v43, 30  ;;  %v7570_v55 = vadd.s32 %v12587_v25, %v12584_v18 }
 0xd28   : > { %v7676_v26 = vadd.s32 1, %v12599_v19  ;;  %v7600_v13 = vsub.s32 4, %v7576_v43  ;;  %vm12619_vm10 = vcmp.le.f32.partialorder %v7618_v45, 0.7853982  ;;  %vm7606_vm14 = vweird.f32 %v12560_v41 }
 0xd29   : > { %v7578_v8 = vsub.s32 %v7574_v9, %v7577_v2  ;;  %vm7675_vm4 = vc.u32 %v12602_v38, %v12598_v61  ;;  %v7674_v18 = vadd.s32 %v12598_v61, %v12602_v38  ;;  %vm7726_vm15 = vcmask 7168  }
 0xd2a   : > { %v7677_v34 = vsel %vm7675_vm4, %v7676_v26, %v12599_v19  ;;  %v7601_v3 = vsel %vm7516_vm7, %v7600_v13, %v7576_v43  ;;  %vm7710_vm3 = vweird.f32 %v12564_v27  ;;  %vm7739_vm4 = vcmask 15368  }
 0xd2b   : > { %v7580_v57 = vsub.s32 0, %v7578_v8  ;;  %v7678_v1 = vadd.s32 %v7677_v34, %v7673_v12  ;;  %v7603_v39 = vsel %vm7515_vm8, 0, %v7601_v3 }
 0xd2c   : > { %v7607_v30 = vadd.s32 3, %v7603_v39 }
 0xd2d   : > { %v8305_v11 = vmin.u32 %v7580_v57, %v7578_v8  ;;  %v7679_v59 = vadd.s32 536870912, %v7678_v1 }
 0xd2e   : > { %v7608_v31 = vand.u32 3, %v7607_v30 }
 0xd2f   : > { %v7582_v24 = vclz %v8305_v11  ;;  %v7680_v42 = vshrl.u32 %v7679_v59, 30 }
 0xd30   : > { %vm7613_vm11 = vcmp.eq.s32.totalorder %v7608_v31, 2  ;;  %vm7610_vm12 = vcmp.eq.s32.totalorder %v7608_v31, 0  ;;  %vm7609_vm13 = vcmp.lt.s32.totalorder %v7608_v31, 2 }
 0xd31   : > { %v8306_v63 = vadd.s32 4294967294, %v7582_v24  ;;  %v7681_v52 = vshll.u32 %v7680_v42, 30  ;;  %v7704_v20 = vsub.s32 4, %v7680_v42 }
 0xd33   : > { %vm8307_vm5 = vcmp.lt.s32.totalorder %v8306_v63, 0  ;;  %v7682_v50 = vsub.s32 %v7678_v1, %v7681_v52  ;;  %v7705_v61 = vsel %vm7620_vm9, %v7704_v20, %v7680_v42 }
 0xd34   : > { %v7585_v0 = vsel %vm8307_vm5, 0, %v8306_v63  ;;  %v7707_v45 = vsel %vm12619_vm10, 0, %v7705_v61 }
 0xd35   : > { %v7586_v58 = vsub.s32 32, %v7585_v0  ;;  %v7590_v6 = vsub.s32 4294967266, %v7585_v0  ;;  %v7684_v4 = vsub.s32 0, %v7682_v50  ;;  %v7587_v15 = vshll.u32 %v7578_v8, %v7585_v0 }
 0xd36   : > { %v7711_v57 = vadd.s32 3, %v7707_v45 }
 0xd37   : > { %v7588_v23 = vshrl.u32 %v7570_v55, %v7586_v58  ;;  %v7591_v51 = vadd.s32 127, %v7590_v6  ;;  %v8309_v16 = vmin.u32 %v7684_v4, %v7682_v50 }
 0xd38   : > { %v7712_v59 = vand.u32 3, %v7711_v57 }
 0xd39   : > { %v7589_v48 = vor.u32 %v7588_v23, %v7587_v15  ;;  %v7592_v54 = vshll.u32 %v7591_v51, 23  ;;  %v7686_v17 = vclz %v8309_v16 }
 0xd3a   : > { %vm7717_vm0 = vcmp.eq.s32.totalorder %v7712_v59, 2  ;;  %vm7714_vm1 = vcmp.eq.s32.totalorder %v7712_v59, 0  ;;  %vm7713_vm2 = vcmp.lt.s32.totalorder %v7712_v59, 2 }
 0xd3b   : > { %v7593_v60 = vor.u32 4788187, %v7592_v54  ;;  %v8310_v5 = vadd.s32 4294967294, %v7686_v17  ;;  %v7596_v22 = vcvt.s32.f32 %v7589_v48 }
 0xd3d   : > { %v7594_v28 = vand.u32 2147483647, %v7593_v60  ;;  %vm8311_vm6 = vcmp.lt.s32.totalorder %v8310_v5, 0 }
 0xd3e   : > { %v7689_v35 = vsel %vm8311_vm6, 0, %v8310_v5 }
 0xd3f   : > { %v7597_v14 = vmul.f32 %v7596_v22, %v7594_v28  ;;  %v7690_v25 = vsub.s32 32, %v7689_v35  ;;  %v7694_v40 = vsub.s32 4294967266, %v7689_v35  ;;  %v7691_v62 = vshll.u32 %v7682_v50, %v7689_v35 }
 0xd41   : > { %v7598_v33 = vxor.u32 2147483648, %v7597_v14  ;;  %v7692_v7 = vshrl.u32 %v7674_v18, %v7690_v25  ;;  %v7695_v9 = vadd.s32 127, %v7694_v40 }
 0xd43   : > { %v7599_v49 = vsel %vm7516_vm7, %v7598_v33, %v7597_v14  ;;  %v7693_v53 = vor.u32 %v7692_v7, %v7691_v62  ;;  %v7696_v37 = vshll.u32 %v7695_v9, 23 }
 0xd44   : > { %v7602_v21 = vsel %vm7515_vm8, %v12560_v41, %v7599_v49 }
 0xd45   : > { %9834 = vcosq.f32 %v7602_v21  ;;  %v7697_v47 = vor.u32 4788187, %v7696_v37  ;;  %v7700_v10 = vcvt.s32.f32 %v7693_v53 }
 0xd46   : > { %9836 = vsinq.f32 %v7602_v21 }
 0xd47   : > { %v7698_v36 = vand.u32 2147483647, %v7697_v47 }
 0xd49   : > { %v7701_v44 = vmul.f32 %v7700_v10, %v7698_v36 }
 0xd4b   : > { %v7702_v29 = vxor.u32 2147483648, %v7701_v44 }
 0xd4d   : > { %v7703_v56 = vsel %vm7620_vm9, %v7702_v29, %v7701_v44 }
 0xd4e   : > { %v7706_v32 = vsel %vm12619_vm10, %v12564_v27, %v7703_v56 }
 0xd4f   : > { %v9835_v19 = vpop.eup %9834  ;;  %9838 = vcosq.f32 %v7706_v32 }
 0xd50   : > { %v9837_v38 = vpop.eup %9836  ;;  %v7614_v2 = vxor.u32 2147483648, %v9835_v19  ;;  %9840 = vsinq.f32 %v7706_v32 }
 0xd51   : > { %v7611_v46 = vxor.u32 2147483648, %v9837_v38 }
 0xd52   : > { %v7615_v8 = vsel %vm7613_vm11, %v7614_v2, %v9837_v38 }
 0xd53   : > { %v7612_v26 = vsel %vm7610_vm12, %v9835_v19, %v7611_v46 }
 0xd54   : > { %v7616_v12 = vsel %vm7609_vm13, %v7612_v26, %v7615_v8 }
 0xd55   : > { %v7617_v34 = vsel %vm7606_vm14, nan, %v7616_v12 }
 0xd56   : > { %v7722_v1 = vadd.f32 1.0, %v7617_v34 }
 0xd58   : > { %v7724_v11 = vmul.f32 0.5, %v7722_v1 }
 0xd59   : > { %v9839_v24 = vpop.eup %9838 }
 0xd5a   : > { %v7729_v42 = vsub.f32 1.0, %v7724_v11  ;;  %7727 = vst.msk [vmem:[%s555_s30] sm:$0xff] %vm7726_vm15, %v7724_v11  ;;  %v9841_v63 = vpop.eup %9840  ;;  %v7718_v52 = vxor.u32 2147483648, %v9839_v24 }
 0xd5b   : > { %v7715_v41 = vxor.u32 2147483648, %v9841_v63 }
 0xd5c   : > { %7733 = vrot.lane.b32.xlu1 %v7729_v42, %s9859_s18  ;;  %v7719_v0 = vsel %vm7717_vm0, %v7718_v52, %v9841_v63 }
 0xd5d   : > { %v7716_v50 = vsel %vm7714_vm1, %v9839_v24, %v7715_v41 }
 0xd5e   : > { %v7720_v55 = vsel %vm7713_vm2, %v7716_v50, %v7719_v0 }
 0xd5f   : > { %v7721_v58 = vsel %vm7710_vm3, nan, %v7720_v55 }
 0xd60   : > { %v7723_v6 = vadd.f32 1.0, %v7721_v58 }
 0xd62   : > { %v7725_v4 = vmul.f32 0.5, %v7723_v6 }
 0xd64   : > { %v7730_v15 = vsub.f32 1.0, %v7725_v4  ;;  %7728 = vst.msk [vmem:[%s555_s30 + $0x8] sm:$0xff] %vm7726_vm15, %v7725_v4 }
 0xd66   : > { %7735 = vrot.lane.b32.xlu1 %v7730_v15, %s9859_s18 }
 0xdce   : > { %v7734_v23 = vpop.permute.xlu1 %7733 }
 0xdcf   : > { %7740 = vst.msk [vmem:[%s555_s30] sm:$0xff] %vm7739_vm4, %v7734_v23 }
 0xdd8   : > { %v7736_v51 = vpop.permute.xlu1 %7735 }
 0xdd9   : > { %7741 = vst.msk [vmem:[%s555_s30 + $0x8] sm:$0xff] %vm7739_vm4, %v7736_v51 }
 0xdda PF: > { %s29_s26 = sadd.s32 1, %s9848_s26  }
 0xddb   : > { %p26_p5 = scmp.ge.s32.totalorder %s29_s26, 4  }
 0xddd   :  { %28 = sbr.rel (!%p26_p5) target bundleno = 3 (0x3), region = 129 }

</bundles_post_ra>
